<compile_context>
chip_gen: v6e
topology: v6e:2x2x1
jax: 0.10.0
libtpu: 0.0.40
codegen_flags: <defaults>
</compile_context>

<pallas_src>
import functools
import math

import jax
import jax.numpy as jnp
import numpy as np
from jax.experimental import pallas as pl
from jax.experimental.pallas import tpu as pltpu

LN_EPS = 1e-5      # torch.nn.LayerNorm default eps (espnet LayerNorm wrapper)
NOUT = 128         # lane-padded projection width (real outputs live in lanes 0:2)
NVEC = 16          # rows in the stacked small-parameter slab (10 used)


def _round_up(x, m):
    return (x + m - 1) // m * m


# ----------------------------- kernel helpers -------------------------------
def _layer_norm(h, gamma, beta, n_real):
    # One-pass LayerNorm over the channel (lane) axis.  Padded lanes are exactly 0 and
    # gamma/beta are zero there, so the sums only need dividing by the real channel count.
    inv_n = 1.0 / n_real
    mu = jnp.sum(h, axis=-1, keepdims=True) * inv_n
    ex2 = jnp.sum(h * h, axis=-1, keepdims=True) * inv_n
    var = jnp.maximum(ex2 - mu * mu, 0.0)            # guard E[x^2] - mu^2 >= 0
    return (h - mu) * jax.lax.rsqrt(var + LN_EPS) * gamma + beta


def _conv_relu_ln(h, m, w_ref, vec_ref, rows, f_real):
    # h: (W, Cin) f32.  m: (W, 1) f32 mask.  w_ref: (K*Cin, Fp).
    big_w, cin = h.shape
    fp = w_ref.shape[1]
    k_taps = w_ref.shape[0] // cin
    pad = k_taps // 2
    hm = h * m
    # Conv1d as K accumulated matmuls over rolled taps:
    #   tap k needs in[t + k - pad]  ==  roll(in, pad - k)[t]
    # (rolls on the f32 tile; wrap-around garbage lands only in the discarded halo rows).
    y = None
    for k in range(k_taps):
        s = (pad - k) % big_w
        xk = hm if s == 0 else pltpu.roll(hm, shift=s, axis=0)
        part = jnp.dot(xk.astype(w_ref.dtype), w_ref[k * cin:(k + 1) * cin, :],
                       preferred_element_type=jnp.float32)
        y = part if y is None else y + part
    b_row, ga_row, be_row = rows
    y = jnp.maximum(y + vec_ref[b_row:b_row + 1, :fp], 0.0)          # bias + ReLU
    return _layer_norm(y, vec_ref[ga_row:ga_row + 1, :fp],
                       vec_ref[be_row:be_row + 1, :fp], f_real)


# --------------------------------- kernel -----------------------------------
def _dp_kernel(halo, f_real,
               len_ref, prev_ref, cen_ref, next_ref, gbias_ref,
               w1_ref, w2_ref, w3_ref, wp_ref, vec_ref, o_ref):
    b = pl.program_id(0)
    t = pl.program_id(1)
    t_tile = o_ref.shape[1]
    big_w = t_tile + 2 * halo

    # mask from per-batch length (scalar prefetch) + window-absolute time index
    length = len_ref[b]
    row = jax.lax.broadcasted_iota(jnp.int32, (big_w, 1), 0)
    abs_t = t * t_tile - halo + row
    m = jnp.logical_and(abs_t >= 0, abs_t < length).astype(jnp.float32)

    # assemble the haloed window from prev-tail / center / next-head blocks
    x_win = jnp.concatenate([prev_ref[...], cen_ref[...], next_ref[...]], axis=0)
    h = x_win.astype(jnp.float32) + gbias_ref[...]       # x + conv1x1(g) + bg

    h = _conv_relu_ln(h, m, w1_ref, vec_ref, (0, 1, 2), f_real)
    # TODO(synk): dropout is identity in eval/inference mode; training-mode RNG not implemented.
    h = _conv_relu_ln(h, m, w2_ref, vec_ref, (3, 4, 5), f_real)
    h = _conv_relu_ln(h, m, w3_ref, vec_ref, (6, 7, 8), f_real)

    # 1x1 projection on the kept rows only; write a time-major (8, t_tile) block
    # (real channels in sublanes 0:2) -> ~16x less HBM writeback than (t_tile, 128) f32.
    hm = (h * m)[halo:halo + t_tile, :]
    out = jnp.dot(hm.astype(wp_ref.dtype), wp_ref[...],
                  preferred_element_type=jnp.float32)
    out = (out + vec_ref[9:10, :NOUT]) * m[halo:halo + t_tile, :]
    o_ref[...] = jnp.transpose(out)[:8, :]


# -------------------------------- wrapper ------------------------------------
@functools.partial(jax.jit, static_argnames=("t_tile", "compute_dtype"))
def duration_predictor_pallas(x, x_mask, g, params, t_tile=1024,
                              compute_dtype=jnp.bfloat16):
    """x: (B, C, T), x_mask: (B, 1, T) non-pad prefix mask, g: (B, G, 1) -> (B, 2, T)."""
    B, c_in, T = x.shape
    F, _, K = params["w1"].shape
    assert K % 2 == 1, "kernel assumes odd ('same'-padded) conv kernel size"

    # --- static tiling geometry -------------------------------------------------
    halo = _round_up(3 * (K // 2), 8)            # 3 convs deep, rounded to sublanes
    step = math.lcm(128, halo)                   # t_tile multiple of 128 (lane-dense
                                                 # transposed store) and of halo
    t_tile = max(step, min(_round_up(t_tile, step), _round_up(T, step)))
    n_t = -(-T // t_tile)
    if B * n_t < 2:                              # v7x: keep both TensorCores busy
        half = _round_up(-(-T // 2), step)
        if half < t_tile:
            t_tile = half
            n_t = -(-T // t_tile)
    t_round = n_t * t_tile
    tb = t_tile // halo                          # halo-sized blocks per tile
    nb = t_round // halo                         # halo-sized blocks along padded time

    cp = _round_up(c_in, 128)                    # lane-padded channel widths
    fp = _round_up(F, 128)
    lane = max(fp, NOUT)

    # --- activations: one channels-last padded array; halos come from BlockSpecs --
    x_btc = jnp.transpose(x, (0, 2, 1))
    x_btc = jnp.pad(x_btc, ((0, 0), (0, t_round - T), (0, cp - c_in)))
    x_btc = x_btc.astype(compute_dtype)                                 # (B, Tr, Cp)

    # non-pad prefix mask -> per-batch lengths (scalar-prefetched into SMEM)
    lengths = jnp.rint(jnp.sum(x_mask[:, 0, :].astype(jnp.float32),
                               axis=-1)).astype(jnp.int32)              # (B,)

    # global conditioning bias, computed once per batch in XLA: (B, 1, Cp) f32
    gb = jnp.einsum("bg,cg->bc", g[:, :, 0].astype(jnp.float32),
                    params["wg"][:, :, 0].astype(jnp.float32))
    gb = gb + jnp.asarray(params["bg"], jnp.float32)[None, :]
    gbias = jnp.pad(gb, ((0, 0), (0, cp - c_in)))[:, None, :]

    # --- weights: conv taps flattened to (K*Cin_p, Fp); small vectors stacked ------
    def conv_w(w, cin_pad, cout_pad):            # torch layout (Cout, Cin, K)
        wk = jnp.transpose(w, (2, 1, 0))         # (K, Cin, Cout)
        wk = jnp.pad(wk, ((0, 0), (0, cin_pad - wk.shape[1]),
                          (0, cout_pad - wk.shape[2])))
        return wk.reshape(-1, cout_pad).astype(compute_dtype)

    w1 = conv_w(params["w1"], cp, fp)
    w2 = conv_w(params["w2"], fp, fp)
    w3 = conv_w(params["w3"], fp, fp)
    wp = jnp.pad(jnp.transpose(params["wp"][:, :, 0], (1, 0)),
                 ((0, fp - F), (0, NOUT - 2))).astype(compute_dtype)    # (Fp, 128)

    def vrow(v):
        v = jnp.asarray(v, jnp.float32).reshape(-1)
        return jnp.pad(v, (0, lane - v.shape[0]))

    vecs = jnp.stack(
        [vrow(params["b1"]), vrow(params["ga1"]), vrow(params["be1"]),
         vrow(params["b2"]), vrow(params["ga2"]), vrow(params["be2"]),
         vrow(params["b3"]), vrow(params["ga3"]), vrow(params["be3"]),
         vrow(params["bp"])]
        + [jnp.zeros((lane,), jnp.float32)] * (NVEC - 10))              # (16, lane)

    # --- pallas_call ---------------------------------------------------------------
    def full_spec(a):
        zeros = (0,) * a.ndim
        return pl.BlockSpec(a.shape, lambda bi, ti, lens, _z=zeros: _z)

    in_specs = [
        # prev-halo: last `halo` rows of the previous tile (clamped at t == 0; those
        # rows are masked to zero in-kernel, so the clamped read is harmless).
        pl.BlockSpec((None, halo, cp),
                     lambda bi, ti, lens: (bi, jnp.maximum(ti * tb - 1, 0), 0)),
        # center tile
        pl.BlockSpec((None, t_tile, cp), lambda bi, ti, lens: (bi, ti, 0)),
        # next-halo: first `halo` rows of the next tile (clamped at the last tile).
        pl.BlockSpec((None, halo, cp),
                     lambda bi, ti, lens: (bi, jnp.minimum((ti + 1) * tb, nb - 1), 0)),
        pl.BlockSpec((None, 1, cp), lambda bi, ti, lens: (bi, 0, 0)),    # gbias
        full_spec(w1), full_spec(w2), full_spec(w3), full_spec(wp), full_spec(vecs),
    ]
    out_spec = pl.BlockSpec((None, None, 8, t_tile),
                            lambda bi, ti, lens: (bi, ti, 0, 0))

    out = pl.pallas_call(
        functools.partial(_dp_kernel, halo, F),
        out_shape=jax.ShapeDtypeStruct((B, n_t, 8, t_tile), jnp.float32),
        grid_spec=pltpu.PrefetchScalarGridSpec(
            num_scalar_prefetch=1,
            grid=(B, n_t),
            in_specs=in_specs,
            out_specs=out_spec,
        ),
        compiler_params=pltpu.CompilerParams(
            dimension_semantics=("parallel", "parallel"),
            # headroom over v5e's 16 MiB scoped default; well under physical everywhere.
            vmem_limit_bytes=32 * 1024 * 1024,
        ),
    )(lengths, x_btc, x_btc, x_btc, gbias, w1, w2, w3, wp, vecs)

    # (B, n_t, 8, t_tile) time-major blocks -> (B, 2, T)
    out = jnp.transpose(out[:, :, :2, :], (0, 2, 1, 3)).reshape(B, 2, t_round)
    return out[:, :, :T]


# ------------------------- pure-JAX reference --------------------------------
def duration_predictor_ref(x, x_mask, g, params):
    def conv1d(h, w, b, pad):
        out = jax.lax.conv_general_dilated(
            h, w, window_strides=(1,), padding=[(pad, pad)],
            dimension_numbers=("NCH", "OIH", "NCH"))
        return out + b[None, :, None]

    def layer_norm(h, gamma, beta):
        mu = jnp.mean(h, axis=1, keepdims=True)
        var = jnp.mean((h - mu) ** 2, axis=1, keepdims=True)
        hn = (h - mu) / jnp.sqrt(var + LN_EPS)
        return hn * gamma[None, :, None] + beta[None, :, None]

    K = params["w1"].shape[2]
    pad = K // 2
    x = x + conv1d(g, params["wg"], params["bg"], 0)
    h = conv1d(x * x_mask, params["w1"], params["b1"], pad)
    h = layer_norm(jax.nn.relu(h), params["ga1"], params["be1"])
    h = conv1d(h * x_mask, params["w2"], params["b2"], pad)
    h = layer_norm(jax.nn.relu(h), params["ga2"], params["be2"])
    h = conv1d(h * x_mask, params["w3"], params["b3"], pad)
    h = layer_norm(jax.nn.relu(h), params["ga3"], params["be3"])
    out = conv1d(h * x_mask, params["wp"], params["bp"], 0)
    return out * x_mask


def _make_params(key, C, F, K, G):
    ks = jax.random.split(key, 16)
    return {
        "wg": 0.2 * jax.random.normal(ks[0], (C, G, 1), jnp.float32),
        "bg": 0.1 * jax.random.normal(ks[1], (C,), jnp.float32),
        "w1": 0.2 * jax.random.normal(ks[2], (F, C, K), jnp.float32),
        "b1": 0.1 * jax.random.normal(ks[3], (F,), jnp.float32),
        "ga1": 1.0 + 0.1 * jax.random.normal(ks[4], (F,), jnp.float32),
        "be1": 0.1 * jax.random.normal(ks[5], (F,), jnp.float32),
        "w2": 0.2 * jax.random.normal(ks[6], (F, F, K), jnp.float32),
        "b2": 0.1 * jax.random.normal(ks[7], (F,), jnp.float32),
        "ga2": 1.0 + 0.1 * jax.random.normal(ks[8], (F,), jnp.float32),
        "be2": 0.1 * jax.random.normal(ks[9], (F,), jnp.float32),
        "w3": 0.2 * jax.random.normal(ks[10], (F, F, K), jnp.float32),
        "b3": 0.1 * jax.random.normal(ks[11], (F,), jnp.float32),
        "ga3": 1.0 + 0.1 * jax.random.normal(ks[12], (F,), jnp.float32),
        "be3": 0.1 * jax.random.normal(ks[13], (F,), jnp.float32),
        "wp": 0.2 * jax.random.normal(ks[14], (2, F, 1), jnp.float32),
        "bp": 0.1 * jax.random.normal(ks[15], (2,), jnp.float32),
    }


# ----------------------------------- main ------------------------------------
if __name__ == "__main__":
    key = jax.random.PRNGKey(0)
    k1, k2, k3, k4, k5, k6 = jax.random.split(key, 6)

    # ---- case 1: tiny shapes, f32 compute (tight structural check) --------------
    B, C, F, K, G, T = 2, 8, 16, 3, 4, 16
    params = _make_params(k1, C, F, K, G)
    x = jax.random.normal(k2, (B, C, T), jnp.float32)
    g = jax.random.normal(k3, (B, G, 1), jnp.float32)
    lengths = jnp.array([T, T - 4])
    x_mask = (jnp.arange(T)[None, None, :] < lengths[:, None, None]).astype(jnp.float32)

    ref = duration_predictor_ref(x, x_mask, g, params)
    out = duration_predictor_pallas(x, x_mask, g, params, compute_dtype=jnp.float32)
    out = jax.block_until_ready(out)
    assert out.shape == (B, 2, T)
    np.testing.assert_allclose(np.asarray(out), np.asarray(ref), rtol=1e-4, atol=1e-4)

    # ---- case 2: tiny shapes, default bf16 MXU fast path -------------------------
    out_bf16 = jax.block_until_ready(duration_predictor_pallas(x, x_mask, g, params))
    assert out_bf16.shape == (B, 2, T)
    np.testing.assert_allclose(np.asarray(out_bf16), np.asarray(ref),
                               rtol=5e-2, atol=1e-1)

    # ---- case 3: multi-tile case (inter-tile halos + clamped edges + masking) ----
    B, C, F, K, G, T = 2, 96, 128, 3, 16, 640
    params = _make_params(k4, C, F, K, G)
    x = jax.random.normal(k5, (B, C, T), jnp.float32)
    g = jax.random.normal(k6, (B, G, 1), jnp.float32)
    lengths = jnp.array([T, T - 140])
    x_mask = (jnp.arange(T)[None, None, :] < lengths[:, None, None]).astype(jnp.float32)

    ref = duration_predictor_ref(x, x_mask, g, params)
    out = duration_predictor_pallas(x, x_mask, g, params, t_tile=256,
                                    compute_dtype=jnp.float32)
    out = jax.block_until_ready(out)
    assert out.shape == (B, 2, T)
    np.testing.assert_allclose(np.asarray(out), np.asarray(ref), rtol=1e-3, atol=1e-3)

    print("KERNEL_OK")
</pallas_src>

<mosaic_0001>
module attributes {stable_mosaic.version = 11 : i64} {
  func.func @_dp_kernel(%arg0: i32, %arg1: i32, %arg2: memref<2xi32, #tpu.memory_space<smem>>, %arg3: memref<1x8x128xf32, #tpu.memory_space<vmem>>, %arg4: memref<1x128x128xf32, #tpu.memory_space<vmem>>, %arg5: memref<1x8x128xf32, #tpu.memory_space<vmem>>, %arg6: memref<1x1x128xf32, #tpu.memory_space<vmem>>, %arg7: memref<384x128xf32, #tpu.memory_space<vmem>>, %arg8: memref<384x128xf32, #tpu.memory_space<vmem>>, %arg9: memref<384x128xf32, #tpu.memory_space<vmem>>, %arg10: memref<128x128xf32, #tpu.memory_space<vmem>>, %arg11: memref<16x128xf32, #tpu.memory_space<vmem>>, %arg12: memref<1x1x8x128xf32, #tpu.memory_space<vmem>>) attributes {dimension_semantics = [#tpu.dimension_semantics<parallel>, #tpu.dimension_semantics<parallel>], iteration_bounds = array<i64: 2, 1>, scalar_prefetch = 1 : i64, scratch_operands = 0 : i64, tpu.core_type = #tpu.core_type<tc>, window_params = [{transform_indices = @transform_0, window_bounds = array<i64: 1, 8, 128>}, {transform_indices = @transform_1, window_bounds = array<i64: 1, 128, 128>}, {transform_indices = @transform_2, window_bounds = array<i64: 1, 8, 128>}, {transform_indices = @transform_3, window_bounds = array<i64: 1, 1, 128>}, {pipeline_mode = #tpu.pipeline_mode<synchronous>, transform_indices = @transform_4, window_bounds = array<i64: 384, 128>}, {pipeline_mode = #tpu.pipeline_mode<synchronous>, transform_indices = @transform_5, window_bounds = array<i64: 384, 128>}, {pipeline_mode = #tpu.pipeline_mode<synchronous>, transform_indices = @transform_6, window_bounds = array<i64: 384, 128>}, {pipeline_mode = #tpu.pipeline_mode<synchronous>, transform_indices = @transform_7, window_bounds = array<i64: 128, 128>}, {pipeline_mode = #tpu.pipeline_mode<synchronous>, transform_indices = @transform_8, window_bounds = array<i64: 16, 128>}, {transform_indices = @transform_9, window_bounds = array<i64: 1, 1, 8, 128>}]} {
    %0 = arith.index_cast %arg0 : i32 to index
    %1 = memref.load %arg2[%0] : memref<2xi32, #tpu.memory_space<smem>>
    %2 = tpu.iota {dimensions = array<i32: 0>} : vector<144x1xi32>
    %c128_i32 = arith.constant 128 : i32
    %3 = arith.muli %arg1, %c128_i32 : i32
    %c8_i32 = arith.constant 8 : i32
    %4 = arith.subi %3, %c8_i32 : i32
    %5 = vector.broadcast %4 : i32 to vector<144x1xi32>
    %6 = arith.addi %5, %2 : vector<144x1xi32>
    %c0_i32 = arith.constant 0 : i32
    %7 = vector.broadcast %c0_i32 : i32 to vector<144x1xi32>
    %8 = arith.cmpi sge, %6, %7 : vector<144x1xi32>
    %9 = vector.broadcast %1 : i32 to vector<144x1xi32>
    %10 = arith.cmpi slt, %6, %9 : vector<144x1xi32>
    %11 = arith.andi %8, %10 : vector<144x1xi1>
    %12 = arith.extui %11 : vector<144x1xi1> to vector<144x1xi32>
    %13 = arith.sitofp %12 : vector<144x1xi32> to vector<144x1xf32>
    %c0 = arith.constant 0 : index
    %c0_0 = arith.constant 0 : index
    %c0_1 = arith.constant 0 : index
    %14 = vector.load %arg3[%c0, %c0_0, %c0_1] : memref<1x8x128xf32, #tpu.memory_space<vmem>>, vector<1x8x128xf32>
    %15 = vector.shape_cast %14 : vector<1x8x128xf32> to vector<8x128xf32>
    %c0_2 = arith.constant 0 : index
    %c0_3 = arith.constant 0 : index
    %c0_4 = arith.constant 0 : index
    %16 = vector.load %arg4[%c0_2, %c0_3, %c0_4] : memref<1x128x128xf32, #tpu.memory_space<vmem>>, vector<1x128x128xf32>
    %17 = vector.shape_cast %16 : vector<1x128x128xf32> to vector<128x128xf32>
    %c0_5 = arith.constant 0 : index
    %c0_6 = arith.constant 0 : index
    %c0_7 = arith.constant 0 : index
    %18 = vector.load %arg5[%c0_5, %c0_6, %c0_7] : memref<1x8x128xf32, #tpu.memory_space<vmem>>, vector<1x8x128xf32>
    %19 = vector.shape_cast %18 : vector<1x8x128xf32> to vector<8x128xf32>
    %20 = tpu.concatenate %15, %17, %19 in 0 : vector<8x128xf32>, vector<128x128xf32>, vector<8x128xf32> -> vector<144x128xf32>
    %c0_8 = arith.constant 0 : index
    %c0_9 = arith.constant 0 : index
    %c0_10 = arith.constant 0 : index
    %21 = vector.load %arg6[%c0_8, %c0_9, %c0_10] : memref<1x1x128xf32, #tpu.memory_space<vmem>>, vector<1x1x128xf32>
    %22 = vector.shape_cast %21 : vector<1x1x128xf32> to vector<1x128xf32>
    %23 = vector.broadcast %22 : vector<1x128xf32> to vector<144x128xf32>
    %24 = arith.addf %20, %23 : vector<144x128xf32>
    %25 = vector.broadcast %13 : vector<144x1xf32> to vector<144x128xf32>
    %26 = arith.mulf %24, %25 : vector<144x128xf32>
    %c1_i32 = arith.constant 1 : i32
    %27 = tpu.dynamic_rotate %26 by %c1_i32 dim 0 : vector<144x128xf32>, i32 -> vector<144x128xf32>
    %c0_11 = arith.constant 0 : index
    %c0_12 = arith.constant 0 : index
    %28 = vector.load %arg7[%c0_11, %c0_12] : memref<384x128xf32, #tpu.memory_space<vmem>>, vector<128x128xf32>
    %cst = arith.constant dense<0.000000e+00> : vector<144x128xf32>
    %29 = tpu.matmul %27, %28, %cst {dimension_numbers = #tpu.dot_dimension_numbers<[1], [0], [0], [1], [0, 0, 1, 1], [], []>} : vector<144x128xf32>, vector<128x128xf32>, vector<144x128xf32> -> vector<144x128xf32>
    %c128 = arith.constant 128 : index
    %c0_13 = arith.constant 0 : index
    %30 = vector.load %arg7[%c128, %c0_13] : memref<384x128xf32, #tpu.memory_space<vmem>>, vector<128x128xf32>
    %cst_14 = arith.constant dense<0.000000e+00> : vector<144x128xf32>
    %31 = tpu.matmul %26, %30, %cst_14 {dimension_numbers = #tpu.dot_dimension_numbers<[1], [0], [0], [1], [0, 0, 1, 1], [], []>} : vector<144x128xf32>, vector<128x128xf32>, vector<144x128xf32> -> vector<144x128xf32>
    %32 = arith.addf %29, %31 : vector<144x128xf32>
    %c143_i32 = arith.constant 143 : i32
    %33 = tpu.dynamic_rotate %26 by %c143_i32 dim 0 : vector<144x128xf32>, i32 -> vector<144x128xf32>
    %c256 = arith.constant 256 : index
    %c0_15 = arith.constant 0 : index
    %34 = vector.load %arg7[%c256, %c0_15] : memref<384x128xf32, #tpu.memory_space<vmem>>, vector<128x128xf32>
    %cst_16 = arith.constant dense<0.000000e+00> : vector<144x128xf32>
    %35 = tpu.matmul %33, %34, %cst_16 {dimension_numbers = #tpu.dot_dimension_numbers<[1], [0], [0], [1], [0, 0, 1, 1], [], []>} : vector<144x128xf32>, vector<128x128xf32>, vector<144x128xf32> -> vector<144x128xf32>
    %36 = arith.addf %32, %35 : vector<144x128xf32>
    %c0_17 = arith.constant 0 : index
    %c0_18 = arith.constant 0 : index
    %37 = vector.load %arg11[%c0_17, %c0_18] : memref<16x128xf32, #tpu.memory_space<vmem>>, vector<1x128xf32>
    %38 = vector.broadcast %37 : vector<1x128xf32> to vector<144x128xf32>
    %39 = arith.addf %36, %38 : vector<144x128xf32>
    %cst_19 = arith.constant 0.000000e+00 : f32
    %40 = vector.broadcast %cst_19 : f32 to vector<144x128xf32>
    %41 = arith.maximumf %39, %40 : vector<144x128xf32>
    %c1 = arith.constant 1 : index
    %c0_20 = arith.constant 0 : index
    %42 = vector.load %arg11[%c1, %c0_20] : memref<16x128xf32, #tpu.memory_space<vmem>>, vector<1x128xf32>
    %c2 = arith.constant 2 : index
    %c0_21 = arith.constant 0 : index
    %43 = vector.load %arg11[%c2, %c0_21] : memref<16x128xf32, #tpu.memory_space<vmem>>, vector<1x128xf32>
    %cst_22 = arith.constant dense<0.000000e+00> : vector<144xf32>
    %44 = vector.multi_reduction <add>, %41, %cst_22 [1] : vector<144x128xf32> to vector<144xf32>
    %45 = vector.shape_cast %44 : vector<144xf32> to vector<144x1xf32>
    %cst_23 = arith.constant 6.250000e-02 : f32
    %46 = vector.broadcast %cst_23 : f32 to vector<144x1xf32>
    %47 = arith.mulf %45, %46 : vector<144x1xf32>
    %48 = arith.mulf %41, %41 : vector<144x128xf32>
    %cst_24 = arith.constant dense<0.000000e+00> : vector<144xf32>
    %49 = vector.multi_reduction <add>, %48, %cst_24 [1] : vector<144x128xf32> to vector<144xf32>
    %50 = vector.shape_cast %49 : vector<144xf32> to vector<144x1xf32>
    %cst_25 = arith.constant 6.250000e-02 : f32
    %51 = vector.broadcast %cst_25 : f32 to vector<144x1xf32>
    %52 = arith.mulf %50, %51 : vector<144x1xf32>
    %53 = arith.mulf %47, %47 : vector<144x1xf32>
    %54 = arith.subf %52, %53 : vector<144x1xf32>
    %cst_26 = arith.constant 0.000000e+00 : f32
    %55 = vector.broadcast %cst_26 : f32 to vector<144x1xf32>
    %56 = arith.maximumf %54, %55 : vector<144x1xf32>
    %57 = vector.broadcast %47 : vector<144x1xf32> to vector<144x128xf32>
    %58 = arith.subf %41, %57 : vector<144x128xf32>
    %cst_27 = arith.constant 9.99999974E-6 : f32
    %59 = vector.broadcast %cst_27 : f32 to vector<144x1xf32>
    %60 = arith.addf %56, %59 : vector<144x1xf32>
    %61 = math.rsqrt %60 : vector<144x1xf32>
    %62 = vector.broadcast %61 : vector<144x1xf32> to vector<144x128xf32>
    %63 = arith.mulf %58, %62 : vector<144x128xf32>
    %64 = vector.broadcast %42 : vector<1x128xf32> to vector<144x128xf32>
    %65 = arith.mulf %63, %64 : vector<144x128xf32>
    %66 = vector.broadcast %43 : vector<1x128xf32> to vector<144x128xf32>
    %67 = arith.addf %65, %66 : vector<144x128xf32>
    %68 = vector.broadcast %13 : vector<144x1xf32> to vector<144x128xf32>
    %69 = arith.mulf %67, %68 : vector<144x128xf32>
    %c1_i32_28 = arith.constant 1 : i32
    %70 = tpu.dynamic_rotate %69 by %c1_i32_28 dim 0 : vector<144x128xf32>, i32 -> vector<144x128xf32>
    %c0_29 = arith.constant 0 : index
    %c0_30 = arith.constant 0 : index
    %71 = vector.load %arg8[%c0_29, %c0_30] : memref<384x128xf32, #tpu.memory_space<vmem>>, vector<128x128xf32>
    %cst_31 = arith.constant dense<0.000000e+00> : vector<144x128xf32>
    %72 = tpu.matmul %70, %71, %cst_31 {dimension_numbers = #tpu.dot_dimension_numbers<[1], [0], [0], [1], [0, 0, 1, 1], [], []>} : vector<144x128xf32>, vector<128x128xf32>, vector<144x128xf32> -> vector<144x128xf32>
    %c128_32 = arith.constant 128 : index
    %c0_33 = arith.constant 0 : index
    %73 = vector.load %arg8[%c128_32, %c0_33] : memref<384x128xf32, #tpu.memory_space<vmem>>, vector<128x128xf32>
    %cst_34 = arith.constant dense<0.000000e+00> : vector<144x128xf32>
    %74 = tpu.matmul %69, %73, %cst_34 {dimension_numbers = #tpu.dot_dimension_numbers<[1], [0], [0], [1], [0, 0, 1, 1], [], []>} : vector<144x128xf32>, vector<128x128xf32>, vector<144x128xf32> -> vector<144x128xf32>
    %75 = arith.addf %72, %74 : vector<144x128xf32>
    %c143_i32_35 = arith.constant 143 : i32
    %76 = tpu.dynamic_rotate %69 by %c143_i32_35 dim 0 : vector<144x128xf32>, i32 -> vector<144x128xf32>
    %c256_36 = arith.constant 256 : index
    %c0_37 = arith.constant 0 : index
    %77 = vector.load %arg8[%c256_36, %c0_37] : memref<384x128xf32, #tpu.memory_space<vmem>>, vector<128x128xf32>
    %cst_38 = arith.constant dense<0.000000e+00> : vector<144x128xf32>
    %78 = tpu.matmul %76, %77, %cst_38 {dimension_numbers = #tpu.dot_dimension_numbers<[1], [0], [0], [1], [0, 0, 1, 1], [], []>} : vector<144x128xf32>, vector<128x128xf32>, vector<144x128xf32> -> vector<144x128xf32>
    %79 = arith.addf %75, %78 : vector<144x128xf32>
    %c3 = arith.constant 3 : index
    %c0_39 = arith.constant 0 : index
    %80 = vector.load %arg11[%c3, %c0_39] : memref<16x128xf32, #tpu.memory_space<vmem>>, vector<1x128xf32>
    %81 = vector.broadcast %80 : vector<1x128xf32> to vector<144x128xf32>
    %82 = arith.addf %79, %81 : vector<144x128xf32>
    %cst_40 = arith.constant 0.000000e+00 : f32
    %83 = vector.broadcast %cst_40 : f32 to vector<144x128xf32>
    %84 = arith.maximumf %82, %83 : vector<144x128xf32>
    %c4 = arith.constant 4 : index
    %c0_41 = arith.constant 0 : index
    %85 = vector.load %arg11[%c4, %c0_41] : memref<16x128xf32, #tpu.memory_space<vmem>>, vector<1x128xf32>
    %c5 = arith.constant 5 : index
    %c0_42 = arith.constant 0 : index
    %86 = vector.load %arg11[%c5, %c0_42] : memref<16x128xf32, #tpu.memory_space<vmem>>, vector<1x128xf32>
    %cst_43 = arith.constant dense<0.000000e+00> : vector<144xf32>
    %87 = vector.multi_reduction <add>, %84, %cst_43 [1] : vector<144x128xf32> to vector<144xf32>
    %88 = vector.shape_cast %87 : vector<144xf32> to vector<144x1xf32>
    %cst_44 = arith.constant 6.250000e-02 : f32
    %89 = vector.broadcast %cst_44 : f32 to vector<144x1xf32>
    %90 = arith.mulf %88, %89 : vector<144x1xf32>
    %91 = arith.mulf %84, %84 : vector<144x128xf32>
    %cst_45 = arith.constant dense<0.000000e+00> : vector<144xf32>
    %92 = vector.multi_reduction <add>, %91, %cst_45 [1] : vector<144x128xf32> to vector<144xf32>
    %93 = vector.shape_cast %92 : vector<144xf32> to vector<144x1xf32>
    %cst_46 = arith.constant 6.250000e-02 : f32
    %94 = vector.broadcast %cst_46 : f32 to vector<144x1xf32>
    %95 = arith.mulf %93, %94 : vector<144x1xf32>
    %96 = arith.mulf %90, %90 : vector<144x1xf32>
    %97 = arith.subf %95, %96 : vector<144x1xf32>
    %cst_47 = arith.constant 0.000000e+00 : f32
    %98 = vector.broadcast %cst_47 : f32 to vector<144x1xf32>
    %99 = arith.maximumf %97, %98 : vector<144x1xf32>
    %100 = vector.broadcast %90 : vector<144x1xf32> to vector<144x128xf32>
    %101 = arith.subf %84, %100 : vector<144x128xf32>
    %cst_48 = arith.constant 9.99999974E-6 : f32
    %102 = vector.broadcast %cst_48 : f32 to vector<144x1xf32>
    %103 = arith.addf %99, %102 : vector<144x1xf32>
    %104 = math.rsqrt %103 : vector<144x1xf32>
    %105 = vector.broadcast %104 : vector<144x1xf32> to vector<144x128xf32>
    %106 = arith.mulf %101, %105 : vector<144x128xf32>
    %107 = vector.broadcast %85 : vector<1x128xf32> to vector<144x128xf32>
    %108 = arith.mulf %106, %107 : vector<144x128xf32>
    %109 = vector.broadcast %86 : vector<1x128xf32> to vector<144x128xf32>
    %110 = arith.addf %108, %109 : vector<144x128xf32>
    %111 = vector.broadcast %13 : vector<144x1xf32> to vector<144x128xf32>
    %112 = arith.mulf %110, %111 : vector<144x128xf32>
    %c1_i32_49 = arith.constant 1 : i32
    %113 = tpu.dynamic_rotate %112 by %c1_i32_49 dim 0 : vector<144x128xf32>, i32 -> vector<144x128xf32>
    %c0_50 = arith.constant 0 : index
    %c0_51 = arith.constant 0 : index
    %114 = vector.load %arg9[%c0_50, %c0_51] : memref<384x128xf32, #tpu.memory_space<vmem>>, vector<128x128xf32>
    %cst_52 = arith.constant dense<0.000000e+00> : vector<144x128xf32>
    %115 = tpu.matmul %113, %114, %cst_52 {dimension_numbers = #tpu.dot_dimension_numbers<[1], [0], [0], [1], [0, 0, 1, 1], [], []>} : vector<144x128xf32>, vector<128x128xf32>, vector<144x128xf32> -> vector<144x128xf32>
    %c128_53 = arith.constant 128 : index
    %c0_54 = arith.constant 0 : index
    %116 = vector.load %arg9[%c128_53, %c0_54] : memref<384x128xf32, #tpu.memory_space<vmem>>, vector<128x128xf32>
    %cst_55 = arith.constant dense<0.000000e+00> : vector<144x128xf32>
    %117 = tpu.matmul %112, %116, %cst_55 {dimension_numbers = #tpu.dot_dimension_numbers<[1], [0], [0], [1], [0, 0, 1, 1], [], []>} : vector<144x128xf32>, vector<128x128xf32>, vector<144x128xf32> -> vector<144x128xf32>
    %118 = arith.addf %115, %117 : vector<144x128xf32>
    %c143_i32_56 = arith.constant 143 : i32
    %119 = tpu.dynamic_rotate %112 by %c143_i32_56 dim 0 : vector<144x128xf32>, i32 -> vector<144x128xf32>
    %c256_57 = arith.constant 256 : index
    %c0_58 = arith.constant 0 : index
    %120 = vector.load %arg9[%c256_57, %c0_58] : memref<384x128xf32, #tpu.memory_space<vmem>>, vector<128x128xf32>
    %cst_59 = arith.constant dense<0.000000e+00> : vector<144x128xf32>
    %121 = tpu.matmul %119, %120, %cst_59 {dimension_numbers = #tpu.dot_dimension_numbers<[1], [0], [0], [1], [0, 0, 1, 1], [], []>} : vector<144x128xf32>, vector<128x128xf32>, vector<144x128xf32> -> vector<144x128xf32>
    %122 = arith.addf %118, %121 : vector<144x128xf32>
    %c6 = arith.constant 6 : index
    %c0_60 = arith.constant 0 : index
    %123 = vector.load %arg11[%c6, %c0_60] : memref<16x128xf32, #tpu.memory_space<vmem>>, vector<1x128xf32>
    %124 = vector.broadcast %123 : vector<1x128xf32> to vector<144x128xf32>
    %125 = arith.addf %122, %124 : vector<144x128xf32>
    %cst_61 = arith.constant 0.000000e+00 : f32
    %126 = vector.broadcast %cst_61 : f32 to vector<144x128xf32>
    %127 = arith.maximumf %125, %126 : vector<144x128xf32>
    %c7 = arith.constant 7 : index
    %c0_62 = arith.constant 0 : index
    %128 = vector.load %arg11[%c7, %c0_62] : memref<16x128xf32, #tpu.memory_space<vmem>>, vector<1x128xf32>
    %c8 = arith.constant 8 : index
    %c0_63 = arith.constant 0 : index
    %129 = vector.load %arg11[%c8, %c0_63] : memref<16x128xf32, #tpu.memory_space<vmem>>, vector<1x128xf32>
    %cst_64 = arith.constant dense<0.000000e+00> : vector<144xf32>
    %130 = vector.multi_reduction <add>, %127, %cst_64 [1] : vector<144x128xf32> to vector<144xf32>
    %131 = vector.shape_cast %130 : vector<144xf32> to vector<144x1xf32>
    %cst_65 = arith.constant 6.250000e-02 : f32
    %132 = vector.broadcast %cst_65 : f32 to vector<144x1xf32>
    %133 = arith.mulf %131, %132 : vector<144x1xf32>
    %134 = arith.mulf %127, %127 : vector<144x128xf32>
    %cst_66 = arith.constant dense<0.000000e+00> : vector<144xf32>
    %135 = vector.multi_reduction <add>, %134, %cst_66 [1] : vector<144x128xf32> to vector<144xf32>
    %136 = vector.shape_cast %135 : vector<144xf32> to vector<144x1xf32>
    %cst_67 = arith.constant 6.250000e-02 : f32
    %137 = vector.broadcast %cst_67 : f32 to vector<144x1xf32>
    %138 = arith.mulf %136, %137 : vector<144x1xf32>
    %139 = arith.mulf %133, %133 : vector<144x1xf32>
    %140 = arith.subf %138, %139 : vector<144x1xf32>
    %cst_68 = arith.constant 0.000000e+00 : f32
    %141 = vector.broadcast %cst_68 : f32 to vector<144x1xf32>
    %142 = arith.maximumf %140, %141 : vector<144x1xf32>
    %143 = vector.broadcast %133 : vector<144x1xf32> to vector<144x128xf32>
    %144 = arith.subf %127, %143 : vector<144x128xf32>
    %cst_69 = arith.constant 9.99999974E-6 : f32
    %145 = vector.broadcast %cst_69 : f32 to vector<144x1xf32>
    %146 = arith.addf %142, %145 : vector<144x1xf32>
    %147 = math.rsqrt %146 : vector<144x1xf32>
    %148 = vector.broadcast %147 : vector<144x1xf32> to vector<144x128xf32>
    %149 = arith.mulf %144, %148 : vector<144x128xf32>
    %150 = vector.broadcast %128 : vector<1x128xf32> to vector<144x128xf32>
    %151 = arith.mulf %149, %150 : vector<144x128xf32>
    %152 = vector.broadcast %129 : vector<1x128xf32> to vector<144x128xf32>
    %153 = arith.addf %151, %152 : vector<144x128xf32>
    %154 = vector.broadcast %13 : vector<144x1xf32> to vector<144x128xf32>
    %155 = arith.mulf %153, %154 : vector<144x128xf32>
    %156 = vector.extract_strided_slice %155 {offsets = [8, 0], sizes = [128, 128], strides = [1, 1]} : vector<144x128xf32> to vector<128x128xf32>
    %c0_70 = arith.constant 0 : index
    %c0_71 = arith.constant 0 : index
    %157 = vector.load %arg10[%c0_70, %c0_71] : memref<128x128xf32, #tpu.memory_space<vmem>>, vector<128x128xf32>
    %cst_72 = arith.constant dense<0.000000e+00> : vector<128x128xf32>
    %158 = tpu.matmul %156, %157, %cst_72 {dimension_numbers = #tpu.dot_dimension_numbers<[1], [0], [0], [1], [0, 0, 1, 1], [], []>} : vector<128x128xf32>, vector<128x128xf32>, vector<128x128xf32> -> vector<128x128xf32>
    %c9 = arith.constant 9 : index
    %c0_73 = arith.constant 0 : index
    %159 = vector.load %arg11[%c9, %c0_73] : memref<16x128xf32, #tpu.memory_space<vmem>>, vector<1x128xf32>
    %160 = vector.broadcast %159 : vector<1x128xf32> to vector<128x128xf32>
    %161 = arith.addf %158, %160 : vector<128x128xf32>
    %162 = vector.extract_strided_slice %13 {offsets = [8, 0], sizes = [128, 1], strides = [1, 1]} : vector<144x1xf32> to vector<128x1xf32>
    %163 = vector.broadcast %162 : vector<128x1xf32> to vector<128x128xf32>
    %164 = arith.mulf %161, %163 : vector<128x128xf32>
    %165 = tpu.transpose %164, [1, 0] : vector<128x128xf32> -> vector<128x128xf32>
    %166 = vector.extract_strided_slice %165 {offsets = [0, 0], sizes = [8, 128], strides = [1, 1]} : vector<128x128xf32> to vector<8x128xf32>
    %c0_74 = arith.constant 0 : index
    %c0_75 = arith.constant 0 : index
    %c0_76 = arith.constant 0 : index
    %c0_77 = arith.constant 0 : index
    %167 = vector.load %arg12[%c0_74, %c0_75, %c0_76, %c0_77] : memref<1x1x8x128xf32, #tpu.memory_space<vmem>>, vector<1x1x8x128xf32>
    %168 = vector.shape_cast %167 : vector<1x1x8x128xf32> to vector<8x128xf32>
    %169 = vector.shape_cast %166 : vector<8x128xf32> to vector<1x1x8x128xf32>
    tpu.vector_store %arg12[%c0_74, %c0_75, %c0_76, %c0_77], %169 {strides = array<i32>} : memref<1x1x8x128xf32, #tpu.memory_space<vmem>>, vector<1x1x8x128xf32>,
    return
  }
  func.func @transform_0(%arg0: i32, %arg1: i32, %arg2: memref<2xi32, #tpu.memory_space<smem>>) -> (i32, i32, i32) {
    %c16_i32 = arith.constant 16 : i32
    %0 = arith.muli %arg1, %c16_i32 : i32
    %c1_i32 = arith.constant 1 : i32
    %1 = arith.subi %0, %c1_i32 : i32
    %c0_i32 = arith.constant 0 : i32
    %2 = arith.maxsi %1, %c0_i32 : i32
    %c0_i32_0 = arith.constant 0 : i32
    %c0_i32_1 = arith.constant 0 : i32
    return %arg0, %2, %c0_i32_0 : i32, i32, i32
  }
  func.func @transform_1(%arg0: i32, %arg1: i32, %arg2: memref<2xi32, #tpu.memory_space<smem>>) -> (i32, i32, i32) {
    %c0_i32 = arith.constant 0 : i32
    %c0_i32_0 = arith.constant 0 : i32
    return %arg0, %arg1, %c0_i32 : i32, i32, i32
  }
  func.func @transform_2(%arg0: i32, %arg1: i32, %arg2: memref<2xi32, #tpu.memory_space<smem>>) -> (i32, i32, i32) {
    %c1_i32 = arith.constant 1 : i32
    %0 = arith.addi %arg1, %c1_i32 : i32
    %c16_i32 = arith.constant 16 : i32
    %1 = arith.muli %0, %c16_i32 : i32
    %c15_i32 = arith.constant 15 : i32
    %2 = arith.minsi %1, %c15_i32 : i32
    %c0_i32 = arith.constant 0 : i32
    %c0_i32_0 = arith.constant 0 : i32
    return %arg0, %2, %c0_i32 : i32, i32, i32
  }
  func.func @transform_3(%arg0: i32, %arg1: i32, %arg2: memref<2xi32, #tpu.memory_space<smem>>) -> (i32, i32, i32) {
    %c0_i32 = arith.constant 0 : i32
    %c0_i32_0 = arith.constant 0 : i32
    %c0_i32_1 = arith.constant 0 : i32
    return %arg0, %c0_i32, %c0_i32_0 : i32, i32, i32
  }
  func.func @transform_4(%arg0: i32, %arg1: i32, %arg2: memref<2xi32, #tpu.memory_space<smem>>) -> (i32, i32) {
    %c0_i32 = arith.constant 0 : i32
    %c0_i32_0 = arith.constant 0 : i32
    %c0_i32_1 = arith.constant 0 : i32
    return %c0_i32, %c0_i32_0 : i32, i32
  }
  func.func @transform_5(%arg0: i32, %arg1: i32, %arg2: memref<2xi32, #tpu.memory_space<smem>>) -> (i32, i32) {
    %c0_i32 = arith.constant 0 : i32
    %c0_i32_0 = arith.constant 0 : i32
    %c0_i32_1 = arith.constant 0 : i32
    return %c0_i32, %c0_i32_0 : i32, i32
  }
  func.func @transform_6(%arg0: i32, %arg1: i32, %arg2: memref<2xi32, #tpu.memory_space<smem>>) -> (i32, i32) {
    %c0_i32 = arith.constant 0 : i32
    %c0_i32_0 = arith.constant 0 : i32
    %c0_i32_1 = arith.constant 0 : i32
    return %c0_i32, %c0_i32_0 : i32, i32
  }
  func.func @transform_7(%arg0: i32, %arg1: i32, %arg2: memref<2xi32, #tpu.memory_space<smem>>) -> (i32, i32) {
    %c0_i32 = arith.constant 0 : i32
    %c0_i32_0 = arith.constant 0 : i32
    %c0_i32_1 = arith.constant 0 : i32
    return %c0_i32, %c0_i32_0 : i32, i32
  }
  func.func @transform_8(%arg0: i32, %arg1: i32, %arg2: memref<2xi32, #tpu.memory_space<smem>>) -> (i32, i32) {
    %c0_i32 = arith.constant 0 : i32
    %c0_i32_0 = arith.constant 0 : i32
    %c0_i32_1 = arith.constant 0 : i32
    return %c0_i32, %c0_i32_0 : i32, i32
  }
  func.func @transform_9(%arg0: i32, %arg1: i32, %arg2: memref<2xi32, #tpu.memory_space<smem>>) -> (i32, i32, i32, i32) {
    %c0_i32 = arith.constant 0 : i32
    %c0_i32_0 = arith.constant 0 : i32
    %c0_i32_1 = arith.constant 0 : i32
    return %arg0, %arg1, %c0_i32, %c0_i32_0 : i32, i32, i32, i32
  }
}

</mosaic_0001>

<bundles_post_ra>
// kernel: duration_predictor_pallas.1
= control target key start
LH: loop header
LB: loop body
LE: loop exit
PB: predicated region body
PF: predicated region fallthrough
CT: control target
= control target key end

     0   :  { %s7322_s0 = inlined_call_operand.vmem [shape: s32[2], index: 0, kind: input, shape index: {}]   ;;  %s7323_s1 = inlined_call_operand.vmem [shape: f32[2,128,128], index: 1, kind: input, shape index: {}, may-alias: {1,2,3}]   ;;  %s7324_s2 = inlined_call_operand.vmem [shape: f32[2,128,128], index: 2, kind: input, shape index: {}, may-alias: {1,2,3}]   ;;  %s7325_s3 = inlined_call_operand.vmem [shape: f32[2,128,128], index: 3, kind: input, shape index: {}, may-alias: {1,2,3}]   ;;  %s7326_s4 = inlined_call_operand.vmem [shape: f32[2,1,128], index: 4, kind: input, shape index: {}]   ;;  %s7327_s5 = inlined_call_operand.vmem [shape: f32[384,128], index: 5, kind: input, shape index: {}]   ;;  %s7328_s6 = inlined_call_operand.vmem [shape: f32[384,128], index: 6, kind: input, shape index: {}]   ;;  %s7329_s7 = inlined_call_operand.vmem [shape: f32[384,128], index: 7, kind: input, shape index: {}]   ;;  %s7330_s8 = inlined_call_operand.vmem [shape: f32[128,128], index: 8, kind: input, shape index: {}]   ;;  %s7331_s9 = inlined_call_operand.vmem [shape: f32[16,128], index: 9, kind: input, shape index: {}]   ;;  %s7332_s10 = inlined_call_operand.vmem [shape: f32[2,1,8,128], index: 10, kind: output, shape index: {}]  }
   0x1   :  { %s15_s15 = sshll.u32 %s7322_s0, 4  ;;  %s16_s15 = int_to_ptr.vmem [resolvable:$true] %s15_s15 }
   0x2   :  { %s4974_s16 = scalar_lea.vmem %s16_s15, 16  ;;  %p4979_p1 = scmp.lt.s32.totalorder %s16_s15, %s16_s15 }
   0x3   :  { %p4975_p0 = scmp.ne.s32.totalorder %s16_s15, %s4974_s16  ;;  %p4980_p2 = scmp.lt.s32.totalorder %s4974_s16, %s4974_s16 }
   0x5   :  { %p4981_p3 = por %p4980_p2, %p4979_p1 }
   0x7   :  { %p4982_p4 = pnand %p4981_p3, %p4975_p0 }
   0x9   :  { %4985 = shalt.err (!%p4982_p4)  }
   0xa   :  { %s5012_s17 = smov [#allocation3]  }
   0xb   :  { %18 = dma.vmem_to_smem %s16_s15, 16, %s5012_s17, [#allocation2] }
   0xc   :  { %4998 = dma.done.wait [#allocation2], 16 }
   0xd   :  { %4999 = vsyncadd [#allocation2], 4294967280 }
   0xe   :  { %20 = sfence }
   0xf   :  { %s5072_s18 = smov 0   ;;  %s5074_s19 = smov 0  }
  0x10   :  { %s5076_s20 = smov 0  }
  0x11 LB: > { %s38_s0 = sadd.s32 1, %s5006_s19  ;;  %p3876_p5 = scmp.ge.s32.totalorder %s5010_s20, 1  ;;  %s5010_s20 = sphi %s5076_s20, %s26_s20   ;;  %s5006_s19 = sphi %s5074_s19, %s7338_s19   ;;  %s5002_s18 = sphi %s5072_s18, %s7337_s18  }
  0x12   : > { %p40_p6 = scmp.ge.s32.totalorder %s38_s0, 2  ;;  %p385_p7 = scmp.lt.s32.totalorder %s5010_s20, 3 }
  0x14   : > { %s7340_s0 = smov (%p40_p6, %s38_s0), 0  ;;  %p386_p8 = pnand %p3876_p5, %p385_p7 }
  0x15   : > { %p458_p9 = scmp.lt.s32.totalorder (!%p386_p8), %s5002_s18, 1  ;;  %s5123_s21 = sld [smem:[#allocation3 + %s5002_s18]] (!%p386_p8) }
  0x16   : > { %389 = sbr.rel (%p386_p8) target bundleno = 1685 (0x695), region = 56 }
  0x1b   : > { %v767_v0 = vld [vmem:[%s7327_s5 + $0xf8] sm:$0xff]  ;;  %v766_v2 = vld [vmem:[%s7327_s5 + $0xf0] sm:$0xff]  ;;  %v507_v3 = vlaneseq  ;;  %v765_v5 = vld [vmem:[%s7327_s5 + $0xe8] sm:$0xff]  ;;  %s5112_s13 = scalar_select %p458_p9, %s5002_s18, 1  ;;  %v5174_v23 = vstv %s5123_s21  ;;  %v5013_v43 = vmov 0.0  }
  0x1c   : > { %v751_v1 = vld [vmem:[%s7327_s5 + $0x78] sm:$0xff]  ;;  %4257 = vmatprep.subr.mxu0 %v767_v0  ;;  %v750_v4 = vld [vmem:[%s7327_s5 + $0x70] sm:$0xff]  ;;  %v749_v6 = vld [vmem:[%s7327_s5 + $0x68] sm:$0xff] }
  0x1d   : > { %4316 = vmatprep.subr.mxu1 %v751_v1  ;;  %4258 = vmatpush3.msra.mxu0 %v767_v0  ;;  %v764_v7 = vld [vmem:[%s7327_s5 + $0xe0] sm:$0xff]  ;;  %v5120_v9 = vshrl.u32 %v507_v3, 7  ;;  %v763_v10 = vld [vmem:[%s7327_s5 + $0xd8] sm:$0xff]  ;;  %s5132_s26 = sshll.u32 %s5112_s13, 7  ;;  %v762_v12 = vld [vmem:[%s7327_s5 + $0xd0] sm:$0xff]  ;;  %s498_s25 = scalar_lea.vmem %s7326_s4, %s5112_s13 }
  0x1e   : > { %4317 = vmatpush3.msra.mxu1 %v751_v1  ;;  %4259 = vmatprep.subr.mxu0 %v766_v2  ;;  %v748_v8 = vld [vmem:[%s7327_s5 + $0x60] sm:$0xff]  ;;  %v747_v11 = vld [vmem:[%s7327_s5 + $0x58] sm:$0xff]  ;;  %v746_v13 = vld [vmem:[%s7327_s5 + $0x50] sm:$0xff]  ;;  %s3917_s30 = sadd.s32 120, %s5132_s26  ;;  %s465_s22 = scalar_lea.vmem %s7323_s1, %s5132_s26 }
  0x1f   : > { %4318 = vmatprep.subr.mxu1 %v750_v4  ;;  %4260 = vmatpush3.msra.mxu0 %v766_v2  ;;  %v525_v14 = vadd.s32 136, %v5120_v9  ;;  %v509_v15 = vadd.s32 8, %v5120_v9  ;;  %v510_v16 = vadd.s32 16, %v5120_v9  ;;  %v761_v17 = vld [vmem:[%s7327_s5 + $0xc8] sm:$0xff]  ;;  %v760_v19 = vld [vmem:[%s7327_s5 + $0xc0] sm:$0xff]  ;;  %s5168_s14 = scalar_lea.vmem %s7324_s2, %s5132_s26  ;;  %s491_s17 = scalar_lea.vmem %s7325_s3, %s3917_s30  ;;  %v511_v25 = vadd.s32 24, %v5120_v9 }
  0x20   : > { %4319 = vmatpush3.msra.mxu1 %v750_v4  ;;  %4261 = vmatprep.subr.mxu0 %v765_v5  ;;  %v745_v18 = vld [vmem:[%s7327_s5 + $0x48] sm:$0xff]  ;;  %v744_v20 = vld [vmem:[%s7327_s5 + $0x40] sm:$0xff]  ;;  %v759_v26 = vld [vmem:[%s7327_s5 + $0xb8] sm:$0xff]  ;;  %v512_v32 = vadd.s32 32, %v5120_v9  ;;  %v513_v37 = vadd.s32 40, %v5120_v9  ;;  %v514_v47 = vadd.s32 48, %v5120_v9 }
  0x21   : > { %4320 = vmatprep.subr.mxu1 %v749_v6  ;;  %4262 = vmatpush3.msra.mxu0 %v765_v5  ;;  %v546_v21 = vadd.s32 4294967288, %v525_v14  ;;  %v530_v22 = vadd.s32 4294967288, %v509_v15  ;;  %v531_v24 = vadd.s32 4294967288, %v510_v16  ;;  %v743_v27 = vld [vmem:[%s7327_s5 + $0x38] sm:$0xff]  ;;  %v638_v28 = vld [vmem:[%s465_s22] sm:$0xff]  ;;  %v758_v33 = vld [vmem:[%s7327_s5 + $0xb0] sm:$0xff] }
  0x22   : > { %4321 = vmatpush3.msra.mxu1 %v749_v6  ;;  %4263 = vmatprep.subr.mxu0 %v764_v7  ;;  %v655_v29 = vld [vmem:[%s491_s17] sm:$0xff]  ;;  %v742_v34 = vld [vmem:[%s7327_s5 + $0x30] sm:$0xff]  ;;  %v640_v35 = vld [vmem:[%s5168_s14 + $0x8] sm:$0xff]  ;;  %v532_v36 = vadd.s32 4294967288, %v511_v25  ;;  %v533_v46 = vadd.s32 4294967288, %v512_v32  ;;  %v534_v53 = vadd.s32 4294967288, %v513_v37 }
  0x23   : > { %4322 = vmatprep.subr.mxu1 %v748_v8  ;;  %4264 = vmatpush3.msra.mxu0 %v764_v7  ;;  %v5183_v30 = vld [vmem:[%s498_s25] ss:$0 sm:$0xff]  ;;  %vm583_vm0 = vcmp.lt.s32.totalorder %v546_v21, %v5174_v23  ;;  %vm567_vm1 = vcmp.lt.s32.totalorder %v530_v22, %v5174_v23  ;;  %vm568_vm2 = vcmp.lt.s32.totalorder %v531_v24, %v5174_v23  ;;  %v757_v38 = vld [vmem:[%s7327_s5 + $0xa8] sm:$0xff]  ;;  %v641_v51 = vld [vmem:[%s5168_s14 + $0x10] sm:$0xff]  ;;  %v515_v54 = vadd.s32 56, %v5120_v9  ;;  %s3883_s21 = sshll.u32 %s5112_s13, 3 }
  0x24   : > { %4323 = vmatpush3.msra.mxu1 %v748_v8  ;;  %4265 = vmatprep.subr.mxu0 %v763_v10  ;;  %v639_v31 = vld [vmem:[%s5168_s14] sm:$0xff]  ;;  %v741_v39 = vld [vmem:[%s7327_s5 + $0x28] sm:$0xff]  ;;  %v663_v40 = vadd.f32 %v5183_v30, %v638_v28  ;;  %v680_v41 = vadd.f32 %v5183_v30, %v655_v29  ;;  %v5210_v44 = vsel %vm583_vm0, 1.0, %v5013_v43  ;;  %v5215_v45 = vsel %vm567_vm1, 1.0, %v5013_v43  ;;  %v755_v55 = vld [vmem:[%s7327_s5 + $0x98] sm:$0xff]  ;;  %s505_s28 = scalar_lea.vmem %s7332_s10, %s3883_s21 }
  0x25   : > { %4324 = vmatprep.subr.mxu1 %v747_v11  ;;  %4266 = vmatpush3.msra.mxu0 %v763_v10  ;;  %v664_v42 = vadd.f32 %v5183_v30, %v639_v31  ;;  %v756_v48 = vld [vmem:[%s7327_s5 + $0xa0] sm:$0xff]  ;;  %v665_v50 = vadd.f32 %v5183_v30, %v640_v35  ;;  %v5229_v52 = vsel %vm568_vm2, 1.0, %v5013_v43  ;;  %vm569_vm3 = vcmp.lt.s32.totalorder %v532_v36, %v5174_v23  ;;  %v739_v56 = vld [vmem:[%s7327_s5 + $0x18] sm:$0xff]  ;;  %v754_v0 = vld [vmem:[%s7327_s5 + $0x90] sm:$0xff] }
  0x26   : > { %4325 = vmatpush3.msra.mxu1 %v747_v11  ;;  %4267 = vmatprep.subr.mxu0 %v762_v12  ;;  %v740_v49 = vld [vmem:[%s7327_s5 + $0x20] sm:$0xff]  ;;  %v5239_v57 = vmul.f32 0.0, %v663_v40  ;;  %v5242_v58 = vmul.f32 %v5210_v44, %v680_v41  ;;  %v642_v60 = vld [vmem:[%s5168_s14 + $0x18] sm:$0xff]  ;;  %v666_v61 = vadd.f32 %v5183_v30, %v641_v51  ;;  %vm570_vm4 = vcmp.lt.s32.totalorder %v533_v46, %v5174_v23  ;;  %v738_v1 = vld [vmem:[%s7327_s5 + $0x10] sm:$0xff] }
  0x27   : > { %4326 = vmatprep.subr.mxu1 %v746_v13  ;;  %4268 = vmatpush3.msra.mxu0 %v762_v12  ;;  %v5245_v59 = vmul.f32 %v5215_v45, %v664_v42  ;;  %v535_v62 = vadd.s32 4294967288, %v514_v47  ;;  %v516_v63 = vadd.s32 64, %v5120_v9  ;;  %v5258_v2 = vmul.f32 %v5229_v52, %v665_v50  ;;  %v753_v4 = vld [vmem:[%s7327_s5 + $0x88] sm:$0xff]  ;;  %v643_v6 = vld [vmem:[%s5168_s14 + $0x20] sm:$0xff]  ;;  %v645_v24 = vld [vmem:[%s5168_s14 + $0x30] sm:$0xff] }
  0x28   : > { %4327 = vmatpush3.msra.mxu1 %v746_v13  ;;  %4269 = vmatprep.subr.mxu0 %v761_v17  ;;  %v5263_v3 = vsel %vm569_vm3, 1.0, %v5013_v43  ;;  %v667_v5 = vadd.f32 %v5183_v30, %v642_v60  ;;  %vm571_vm5 = vcmp.lt.s32.totalorder %v534_v53, %v5174_v23  ;;  %v536_v7 = vadd.s32 4294967288, %v515_v54  ;;  %v737_v10 = vld [vmem:[%s7327_s5 + $0x8] sm:$0xff]  ;;  %v647_v42 = vld [vmem:[%s5168_s14 + $0x40] sm:$0xff]  ;;  %v1129_v50 = vld [vmem:[%s7327_s5 + $0x170] sm:$0xff] }
  0x29   : > { %4328 = vmatprep.subr.mxu1 %v745_v18  ;;  %4270 = vmatpush3.msra.mxu0 %v761_v17  ;;  %v517_v8 = vadd.s32 72, %v5120_v9  ;;  %v699_v11 = vrot.slane %v5239_v57, 7  ;;  %v716_v12 = vrot.slane %v5242_v58, 7  ;;  %v700_v13 = vrot.slane %v5245_v59, 7  ;;  %v644_v15 = vld [vmem:[%s5168_s14 + $0x28] sm:$0xff] }
  0x2a   : > { %4329 = vmatpush3.msra.mxu1 %v745_v18  ;;  %4271 = vmatprep.subr.mxu0 %v760_v19  ;;  %v5281_v14 = vsel %vm570_vm4, 1.0, %v5013_v43  ;;  %vm717_vm6 = vcmp.lt.s32.totalorder %v5120_v9, 1  ;;  %v5286_v16 = vmul.f32 %v5263_v3, %v666_v61  ;;  %vm572_vm7 = vcmp.lt.s32.totalorder %v535_v62, %v5174_v23  ;;  %v752_v18 = vld [vmem:[%s7327_s5 + $0x80] sm:$0xff]  ;;  %v648_v61 = vld [vmem:[%s5168_s14 + $0x48] sm:$0xff] }
  0x2b   : > { %4330 = vmatprep.subr.mxu1 %v744_v20  ;;  %4272 = vmatpush3.msra.mxu0 %v760_v19  ;;  %v537_v17 = vadd.s32 4294967288, %v516_v63  ;;  %v736_v19 = vld [vmem:[%s7327_s5] sm:$0xff]  ;;  %v5299_v21 = vsel %vm571_vm5, 1.0, %v5013_v43  ;;  %v668_v22 = vadd.f32 %v5183_v30, %v643_v6  ;;  %v518_v25 = vadd.s32 80, %v5120_v9 }
  0x2c   : > { %4331 = vmatpush3.msra.mxu1 %v744_v20  ;;  %4273 = vmatprep.subr.mxu0 %v759_v26  ;;  %v701_v20 = vrot.slane %v5258_v2, 7  ;;  %vm573_vm8 = vcmp.lt.s32.totalorder %v536_v7, %v5174_v23  ;;  %v538_v28 = vadd.s32 4294967288, %v517_v8  ;;  %v735_v29 = vsel %vm717_vm6, %v716_v12, %v699_v11  ;;  %v649_v8 = vld [vmem:[%s5168_s14 + $0x50] sm:$0xff] }
  0x2d   : > { %4332 = vmatprep.subr.mxu1 %v743_v27  ;;  %4274 = vmatpush3.msra.mxu0 %v759_v26  ;;  %v5305_v26 = vmul.f32 %v5281_v14, %v667_v5  ;;  %v734_v31 = vsel %vm717_vm6, %v699_v11, %v700_v13  ;;  %v5318_v32 = vsel %vm572_vm7, 1.0, %v5013_v43  ;;  %v702_v35 = vrot.slane %v5286_v16, 7  ;;  %v650_v11 = vld [vmem:[%s5168_s14 + $0x58] sm:$0xff] }
  0x2e   : > { %4333 = vmatpush3.msra.mxu1 %v743_v27  ;;  %4275 = vmatprep.subr.mxu0 %v758_v33  ;;  %v669_v27 = vadd.f32 %v5183_v30, %v644_v15  ;;  %v670_v36 = vadd.f32 %v5183_v30, %v645_v24  ;;  %vm574_vm9 = vcmp.lt.s32.totalorder %v537_v17, %v5174_v23  ;;  %v520_v37 = vadd.s32 96, %v5120_v9  ;;  %v1127_v17 = vld [vmem:[%s7327_s5 + $0x160] sm:$0xff] }
  0x2f   : > { %4334 = vmatprep.subr.mxu1 %v742_v34  ;;  %4276 = vmatpush3.msra.mxu0 %v758_v33  ;;  %v646_v33 = vld [vmem:[%s5168_s14 + $0x38] sm:$0xff]  ;;  %v5333_v40 = vmul.f32 %v5299_v21, %v668_v22  ;;  %v5338_v41 = vsel %vm573_vm8, 1.0, %v5013_v43  ;;  %v539_v46 = vadd.s32 4294967288, %v518_v25  ;;  %v703_v47 = vrot.slane %v5305_v26, 7 }
  0x30   : > { %4335 = vmatpush3.msra.mxu1 %v742_v34  ;;  %4277 = vmatprep.subr.mxu0 %v757_v38  ;;  %v519_v34 = vadd.s32 88, %v5120_v9  ;;  %vm575_vm10 = vcmp.lt.s32.totalorder %v538_v28, %v5174_v23  ;;  %v5354_v51 = vsel %vm574_vm9, 1.0, %v5013_v43  ;;  %v521_v54 = vadd.s32 104, %v5120_v9  ;;  %v1126_v28 = vld [vmem:[%s7327_s5 + $0x158] sm:$0xff] }
  0x31   : > { %4336 = vmatprep.subr.mxu1 %v741_v39  ;;  %4278 = vmatpush3.msra.mxu0 %v757_v38  ;;  %v1130_v38 = vld [vmem:[%s7327_s5 + $0x178] sm:$0xff]  ;;  %v672_v60 = vadd.f32 %v5183_v30, %v647_v42  ;;  %v541_v62 = vadd.s32 4294967288, %v520_v37  ;;  %v704_v63 = vrot.slane %v5333_v40, 7  ;;  %vm576_vm11 = vcmp.lt.s32.totalorder %v539_v46, %v5174_v23  ;;  %v1125_v42 = vld [vmem:[%s7327_s5 + $0x150] sm:$0xff] }
  0x32   : > { %4337 = vmatpush3.msra.mxu1 %v741_v39  ;;  %4279 = vmatprep.subr.mxu0 %v756_v48  ;;  %v733_v39 = vsel %vm717_vm6, %v700_v13, %v701_v20  ;;  %v540_v53 = vadd.s32 4294967288, %v519_v34  ;;  %v731_v5 = vsel %vm717_vm6, %v702_v35, %v703_v47  ;;  %v542_v13 = vadd.s32 4294967288, %v521_v54  ;;  %v1124_v54 = vld [vmem:[%s7327_s5 + $0x148] sm:$0xff] }
  0x33   : > { %4338 = vmatprep.subr.mxu1 %v740_v49  ;;  %4280 = vmatpush3.msra.mxu0 %v756_v48  ;;  %v5343_v48 = vmul.f32 %v5318_v32, %v669_v27  ;;  %v523_v15 = vadd.s32 120, %v5120_v9  ;;  %vm578_vm13 = vcmp.lt.s32.totalorder %v541_v62, %v5174_v23  ;;  %v730_v22 = vsel %vm717_vm6, %v703_v47, %v704_v63  ;;  %v652_v47 = vld [vmem:[%s5168_s14 + $0x68] sm:$0xff] }
  0x34   : > { %4339 = vmatpush3.msra.mxu1 %v740_v49  ;;  %4281 = vmatprep.subr.mxu0 %v755_v55  ;;  %v671_v49 = vadd.f32 %v5183_v30, %v646_v33  ;;  %vm577_vm12 = vcmp.lt.s32.totalorder %v540_v53, %v5174_v23  ;;  %v674_v24 = vadd.f32 %v5183_v30, %v649_v8  ;;  %v524_v27 = vadd.s32 128, %v5120_v9  ;;  %v654_v8 = vld [vmem:[%s5168_s14 + $0x78] sm:$0xff] }
  0x35   : > { %4340 = vmatprep.subr.mxu1 %v739_v56  ;;  %4282 = vmatpush3.msra.mxu0 %v755_v55  ;;  %v732_v55 = vsel %vm717_vm6, %v701_v20, %v702_v35  ;;  %v705_v6 = vrot.slane %v5343_v48, 7  ;;  %v5399_v20 = vsel %vm576_vm11, 1.0, %v5013_v43  ;;  %v5415_v33 = vsel %vm577_vm12, 1.0, %v5013_v43  ;;  %v651_v35 = vld [vmem:[%s5168_s14 + $0x60] sm:$0xff] }
  0x36   : > { %4341 = vmatpush3.msra.mxu1 %v739_v56  ;;  %4283 = vmatprep.subr.mxu0 %v754_v0  ;;  %v5361_v56 = vmul.f32 %v5338_v41, %v670_v36  ;;  %v5380_v7 = vmul.f32 %v5354_v51, %v671_v49  ;;  %v675_v34 = vadd.f32 %v5183_v30, %v650_v11  ;;  %v5426_v37 = vsel %vm578_vm13, 1.0, %v5013_v43 }
  0x37   : > { %4342 = vmatprep.subr.mxu1 %v738_v1  ;;  %4284 = vmatpush3.msra.mxu0 %v754_v0  ;;  %v5369_v0 = vsel %vm575_vm10, 1.0, %v5013_v43  ;;  %vm579_vm14 = vcmp.lt.s32.totalorder %v542_v13, %v5174_v23  ;;  %v5438_v49 = vmul.f32 %v5415_v33, %v674_v24  ;;  %v545_v53 = vadd.s32 4294967288, %v524_v27  ;;  %v1121_v27 = vld [vmem:[%s7327_s5 + $0x130] sm:$0xff] }
  0x38   : > { %4343 = vmatpush3.msra.mxu1 %v738_v1  ;;  %4285 = vmatprep.subr.mxu0 %v753_v4  ;;  %v522_v1 = vadd.s32 112, %v5120_v9  ;;  %vm1096_vm2 = vcmp.lt.s32.totalorder %v5120_v9, 7 }
  0x39   : > { %4344 = vmatprep.subr.mxu1 %v737_v10  ;;  %4286 = vmatpush3.msra.mxu0 %v753_v4  ;;  %v1128_v4 = vld [vmem:[%s7327_s5 + $0x168] sm:$0xff]  ;;  %vm582_vm1 = vcmp.lt.s32.totalorder %v545_v53, %v5174_v23 }
  0x3a   : > { %4345 = vmatpush3.msra.mxu1 %v737_v10  ;;  %4287 = vmatprep.subr.mxu0 %v752_v18  ;;  %v673_v10 = vadd.f32 %v5183_v30, %v648_v61  ;;  %v543_v25 = vadd.s32 4294967288, %v522_v1  ;;  %v653_v61 = vld [vmem:[%s5168_s14 + $0x70] sm:$0xff]  ;;  %v677_v1 = vadd.f32 %v5183_v30, %v652_v47 }
  0x3b   : > { %4346 = vmatprep.subr.mxu1 %v736_v19  ;;  %4288 = vmatpush3.msra.mxu0 %v752_v18  ;;  %v706_v18 = vrot.slane %v5361_v56, 7  ;;  %v678_v13 = vadd.f32 %v5183_v30, %v653_v61  ;;  %v1078_v61 = vrot.slane %v5239_v57, 1 }
  0x3c   : > { %4289 = vmatprep.mubr.f32.mxu0 %v5239_v57  ;;  %4347 = vmatpush3.msra.mxu1 %v736_v19  ;;  %v5394_v19 = vmul.f32 %v5369_v0, %v672_v60  ;;  %v5421_v36 = vmul.f32 %v5399_v20, %v673_v10  ;;  %vm580_vm15 = vcmp.lt.s32.totalorder %v543_v25, %v5174_v23  ;;  %v5451_v60 = vsel %vm579_vm14, 1.0, %v5013_v43 }
  0x3d   : > { %4348 = vmatprep.mubr.f32.mxu1 %v735_v29  ;;  %4290 = vmatmul.mubr.f32.vlgmr.msra.gmra.mxu0 %v5245_v59  ;;  %v729_v29 = vsel %vm717_vm6, %v704_v63, %v705_v6  ;;  %v710_v10 = vrot.slane %v5438_v49, 7  ;;  %v679_v25 = vadd.f32 %v5183_v30, %v654_v8 }
  0x3e   : > { %4349 = vmatmul.mubr.f32.vlgmr.msra.gmra.mxu1 %v734_v31  ;;  %4375 = vmatprep.subr.mxu0 %v1130_v38  ;;  %v707_v31 = vrot.slane %v5380_v7, 7  ;;  %v708_v46 = vrot.slane %v5394_v19, 7  ;;  %v709_v63 = vrot.slane %v5421_v36, 7 }
  0x3f   : > { %4292 = vmatprep.mubr.f32.mxu0 %v5258_v2  ;;  %4376 = vmatpush3.msra.mxu0 %v1130_v38  ;;  %v544_v38 = vadd.s32 4294967288, %v523_v15  ;;  %v1122_v15 = vld [vmem:[%s7327_s5 + $0x138] sm:$0xff] }
  0x40   : > { %4351 = vmatprep.mubr.f32.mxu1 %v733_v39  ;;  %4377 = vmatprep.subr.mxu0 %v1129_v50  ;;  %v728_v39 = vsel %vm717_vm6, %v705_v6, %v706_v18  ;;  %v727_v62 = vsel %vm717_vm6, %v706_v18, %v707_v31  ;;  %v5468_v6 = vsel %vm580_vm15, 1.0, %v5013_v43 }
  0x41   : > { %4293 = vmatmul.mubr.f32.gmra.mxu0 %v5286_v16  ;;  %vm581_vm0 = vcmp.lt.s32.totalorder %v544_v38, %v5174_v23  ;;  %v5491_v24 = vmul.f32 %v5468_v6, %v677_v1  ;;  %v5498_v23 = vsel %vm582_vm1, 1.0, %v5013_v43  ;;  %v1080_v1 = vrot.slane %v5258_v2, 1  ;;  %v1115_v2 = vld [vmem:[%s7327_s5 + $0x100] sm:$0xff] }
  0x42   : > { %4352 = vmatmul.mubr.f32.gmra.mxu1 %v732_v55  ;;  %4378 = vmatpush3.msra.mxu0 %v1129_v50  ;;  %v676_v50 = vadd.f32 %v5183_v30, %v651_v35  ;;  %v5446_v55 = vmul.f32 %v5426_v37, %v675_v34  ;;  %v5485_v18 = vsel %vm581_vm0, 1.0, %v5013_v43  ;;  %v1120_v43 = vld [vmem:[%s7327_s5 + $0x128] sm:$0xff]  ;;  %v5515_v35 = vmul.f32 %v5498_v23, %v679_v25 }
  0x43   : > { %4295 = vmatprep.mubr.f32.mxu0 %v5305_v26  ;;  %4379 = vmatprep.subr.mxu0 %v1128_v4  ;;  %v713_v34 = vrot.slane %v5491_v24, 7 }
  0x44   : > { %4354 = vmatprep.mubr.f32.mxu1 %v731_v5  ;;  %4380 = vmatpush3.msra.mxu0 %v1128_v4  ;;  %v726_v4 = vsel %vm717_vm6, %v707_v31, %v708_v46  ;;  %v1123_v5 = vld [vmem:[%s7327_s5 + $0x140] sm:$0xff]  ;;  %v5474_v11 = vmul.f32 %v5451_v60, %v676_v50  ;;  %v5505_v31 = vmul.f32 %v5485_v18, %v678_v13  ;;  %v715_v47 = vrot.slane %v5515_v35, 7  ;;  %v1118_v50 = vld [vmem:[%s7327_s5 + $0x118] sm:$0xff] }
  0x45   : > { %4381 = vmatprep.subr.mxu0 %v1127_v17  ;;  %4296 = vmatmul.mubr.f32.gmra.mxu0 %v5333_v40  ;;  %v1083_v13 = vrot.slane %v5333_v40, 1  ;;  %v1086_v40 = vrot.slane %v5380_v7, 1 }
  0x46   : > { %4355 = vmatmul.mubr.f32.gmra.mxu1 %v730_v22  ;;  %4382 = vmatpush3.msra.mxu0 %v1127_v17  ;;  %v711_v17 = vrot.slane %v5446_v55, 7  ;;  %v725_v22 = vsel %vm717_vm6, %v708_v46, %v709_v63 }
  0x47   : > { %4383 = vmatprep.subr.mxu0 %v1126_v28  ;;  %4298 = vmatprep.mubr.f32.mxu0 %v5343_v48 }
  0x48   : > { %4384 = vmatpush3.msra.mxu0 %v1126_v28  ;;  %4357 = vmatprep.mubr.f32.mxu1 %v729_v29  ;;  %v724_v28 = vsel %vm717_vm6, %v709_v63, %v710_v10  ;;  %v712_v29 = vrot.slane %v5474_v11, 7  ;;  %v723_v30 = vsel %vm717_vm6, %v710_v10, %v711_v17 }
  0x49   : > { %4299 = vmatmul.mubr.f32.gmra.mxu0 %v5361_v56  ;;  %4385 = vmatprep.subr.mxu0 %v1125_v42 }
  0x4a   : > { %4358 = vmatmul.mubr.f32.gmra.mxu1 %v728_v39  ;;  %4386 = vmatpush3.msra.mxu0 %v1125_v42  ;;  %v722_v38 = vsel %vm717_vm6, %v711_v17, %v712_v29  ;;  %v714_v39 = vrot.slane %v5505_v31, 7  ;;  %v1119_v42 = vld [vmem:[%s7327_s5 + $0x120] sm:$0xff]  ;;  %v721_v46 = vsel %vm717_vm6, %v712_v29, %v713_v34  ;;  %v1084_v17 = vrot.slane %v5343_v48, 1 }
  0x4b   : > { %4387 = vmatprep.subr.mxu0 %v1124_v54  ;;  %4301 = vmatprep.mubr.f32.mxu0 %v5380_v7  ;;  %v1088_v29 = vrot.slane %v5421_v36, 1 }
  0x4c   : > { %4360 = vmatprep.mubr.f32.mxu1 %v727_v62  ;;  %4388 = vmatpush3.msra.mxu0 %v1124_v54  ;;  %v720_v53 = vsel %vm717_vm6, %v713_v34, %v714_v39  ;;  %v1117_v54 = vld [vmem:[%s7327_s5 + $0x110] sm:$0xff]  ;;  %v1079_v62 = vrot.slane %v5245_v59, 1  ;;  %v719_v63 = vsel %vm717_vm6, %v714_v39, %v715_v47  ;;  %v718_v59 = vsel %vm717_vm6, %v715_v47, %v716_v12 }
  0x4d   : > { %4302 = vmatmul.mubr.f32.gmra.mxu0 %v5394_v19  ;;  %4389 = vmatprep.subr.mxu0 %v1123_v5  ;;  %v1108_v25 = vsel %vm1096_vm2, %v1083_v13, %v1084_v17  ;;  %v1091_v34 = vrot.slane %v5474_v11, 1  ;;  %v1093_v39 = vrot.slane %v5505_v31, 1 }
  0x4e   : > { %4361 = vmatmul.mubr.f32.gmra.mxu1 %v726_v4  ;;  %4390 = vmatpush3.msra.mxu0 %v1123_v5  ;;  %v1116_v4 = vld [vmem:[%s7327_s5 + $0x108] sm:$0xff]  ;;  %v1081_v5 = vrot.slane %v5286_v16, 1  ;;  %v1113_v8 = vsel %vm1096_vm2, %v1078_v61, %v1079_v62  ;;  %v1112_v12 = vsel %vm1096_vm2, %v1079_v62, %v1080_v1  ;;  %v1082_v16 = vrot.slane %v5305_v26, 1 }
  0x4f   : > { %4391 = vmatprep.subr.mxu0 %v1122_v15  ;;  %4304 = vmatprep.mubr.f32.mxu0 %v5421_v36  ;;  %v1085_v26 = vrot.slane %v5361_v56, 1 }
  0x50   : > { %4363 = vmatprep.mubr.f32.mxu1 %v725_v22  ;;  %4392 = vmatpush3.msra.mxu0 %v1122_v15  ;;  %v1111_v10 = vsel %vm1096_vm2, %v1080_v1, %v1081_v5  ;;  %v1110_v15 = vsel %vm1096_vm2, %v1081_v5, %v1082_v16  ;;  %v1109_v22 = vsel %vm1096_vm2, %v1082_v16, %v1083_v13 }
  0x51   : > { %4305 = vmatmul.mubr.f32.gmra.mxu0 %v5438_v49  ;;  %4393 = vmatprep.subr.mxu0 %v1121_v27  ;;  %v1106_v48 = vsel %vm1096_vm2, %v1085_v26, %v1086_v40 }
  0x52   : > { %4364 = vmatmul.mubr.f32.gmra.mxu1 %v724_v28  ;;  %4394 = vmatpush3.msra.mxu0 %v1121_v27  ;;  %v1107_v27 = vsel %vm1096_vm2, %v1084_v17, %v1085_v26  ;;  %v1087_v28 = vrot.slane %v5394_v19, 1 }
  0x53   : > { %4307 = vmatprep.mubr.f32.mxu0 %v5446_v55  ;;  %4366 = vmatprep.mubr.f32.mxu1 %v723_v30  ;;  %v1089_v30 = vrot.slane %v5438_v49, 1 }
  0x54   : > { %4395 = vmatprep.subr.mxu0 %v1120_v43  ;;  %v1105_v56 = vsel %vm1096_vm2, %v1086_v40, %v1087_v28  ;;  %v1104_v7 = vsel %vm1096_vm2, %v1087_v28, %v1088_v29 }
  0x55   : > { %4308 = vmatmul.mubr.f32.gmra.mxu0 %v5474_v11  ;;  %v1103_v19 = vsel %vm1096_vm2, %v1088_v29, %v1089_v30 }
  0x56   : > { %4367 = vmatmul.mubr.f32.gmra.mxu1 %v722_v38  ;;  %4396 = vmatpush3.msra.mxu0 %v1120_v43  ;;  %v1090_v43 = vrot.slane %v5446_v55, 1  ;;  %v1092_v38 = vrot.slane %v5491_v24, 1 }
  0x57   : > { %4397 = vmatprep.subr.mxu0 %v1119_v42  ;;  %4310 = vmatprep.mubr.f32.mxu0 %v5491_v24 }
  0x58   : > { %4398 = vmatpush3.msra.mxu0 %v1119_v42  ;;  %4369 = vmatprep.mubr.f32.mxu1 %v721_v46  ;;  %v1102_v36 = vsel %vm1096_vm2, %v1089_v30, %v1090_v43  ;;  %v1101_v49 = vsel %vm1096_vm2, %v1090_v43, %v1091_v34  ;;  %v1100_v55 = vsel %vm1096_vm2, %v1091_v34, %v1092_v38  ;;  %v1094_v42 = vrot.slane %v5515_v35, 1  ;;  %v5640_v30 = vld [vmem:[%s7331_s9] ss:$0 sm:$0xff] }
  0x59   : > { %4399 = vmatprep.subr.mxu0 %v1118_v50  ;;  %4311 = vmatmul.mubr.f32.gmra.mxu0 %v5505_v31  ;;  %v1099_v11 = vsel %vm1096_vm2, %v1092_v38, %v1093_v39  ;;  %v1095_v46 = vrot.slane %v5242_v58, 1 }
  0x5a   : > { %4370 = vmatmul.mubr.f32.gmra.mxu1 %v720_v53  ;;  %4400 = vmatpush3.msra.mxu0 %v1118_v50  ;;  %v1098_v24 = vsel %vm1096_vm2, %v1093_v39, %v1094_v42 }
  0x5b   : > { %4401 = vmatprep.subr.mxu0 %v1117_v54  ;;  %4313 = vmatprep.mubr.f32.mxu0 %v5515_v35  ;;  %v1097_v31 = vsel %vm1096_vm2, %v1094_v42, %v1095_v46  ;;  %v1114_v35 = vsel %vm1096_vm2, %v1095_v46, %v1078_v61 }
  0x5c   : > { %4372 = vmatprep.mubr.f32.mxu1 %v719_v63  ;;  %4402 = vmatpush3.msra.mxu0 %v1117_v54 }
  0x5d   : > { %4314 = vmatmul.mubr.f32.gmra.mxu0 %v5242_v58  ;;  %4403 = vmatprep.subr.mxu0 %v1116_v4 }
  0x5e   : > { %4373 = vmatmul.mubr.f32.gmra.mxu1 %v718_v59  ;;  %4404 = vmatpush3.msra.mxu0 %v1116_v4 }
  0x5f   : > { %4405 = vmatprep.subr.mxu0 %v1115_v2  ;;  %4407 = vmatprep.mubr.f32.mxu0 %v1113_v8 }
  0x60   : > { %4406 = vmatpush3.msra.mxu0 %v1115_v2 }
  0x61   : > { %4408 = vmatmul.mubr.f32.vlgmr.msra.gmra.mxu0 %v1112_v12 }
  0x62   : > { %4410 = vmatprep.mubr.f32.mxu0 %v1111_v10 }
  0x65   : > { %4411 = vmatmul.mubr.f32.gmra.mxu0 %v1110_v15 }
  0x66   : > { %4413 = vmatprep.mubr.f32.mxu0 %v1109_v22 }
  0x69   : > { %4414 = vmatmul.mubr.f32.gmra.mxu0 %v1108_v25 }
  0x6a   : > { %4416 = vmatprep.mubr.f32.mxu0 %v1107_v27 }
  0x6d   : > { %4417 = vmatmul.mubr.f32.gmra.mxu0 %v1106_v48 }
  0x6e   : > { %4419 = vmatprep.mubr.f32.mxu0 %v1105_v56 }
  0x71   : > { %4420 = vmatmul.mubr.f32.gmra.mxu0 %v1104_v7 }
  0x72   : > { %4422 = vmatprep.mubr.f32.mxu0 %v1103_v19 }
  0x75   : > { %4423 = vmatmul.mubr.f32.gmra.mxu0 %v1102_v36 }
  0x76   : > { %4425 = vmatprep.mubr.f32.mxu0 %v1101_v49 }
  0x79   : > { %4426 = vmatmul.mubr.f32.gmra.mxu0 %v1100_v55 }
  0x7a   : > { %4428 = vmatprep.mubr.f32.mxu0 %v1099_v11 }
  0x7d   : > { %4429 = vmatmul.mubr.f32.gmra.mxu0 %v1098_v24 }
  0x7e   : > { %4431 = vmatprep.mubr.f32.mxu0 %v1097_v31 }
  0x81   : > { %4432 = vmatmul.mubr.f32.gmra.mxu0 %v1114_v35 }
  0xfd   : > { %v4291_v47 = vpop.f32.mrf.mxu0 }
  0xfe   : > { %v4350_v50 = vpop.f32.mrf.mxu1 }
  0xff   : > { %v834_v53 = vpop.f32.mrf.mxu0  ;;  %v995_v29 = vadd.f32 %v4350_v50, %v4291_v47 }
 0x100   : > { %v989_v58 = vpop.f32.mrf.mxu1 }
 0x101   : > { %v4294_v54 = vpop.f32.mrf.mxu0  ;;  %v990_v7 = vadd.f32 %v989_v58, %v834_v53 }
 0x102   : > { %v4353_v62 = vpop.f32.mrf.mxu1 }
 0x103   : > { %v844_v63 = vpop.f32.mrf.mxu0  ;;  %v1005_v39 = vadd.f32 %v4353_v62, %v4294_v54 }
 0x104   : > { %v999_v4 = vpop.f32.mrf.mxu1 }
 0x105   : > { %v4297_v1 = vpop.f32.mrf.mxu0  ;;  %v1000_v55 = vadd.f32 %v999_v4, %v844_v63 }
 0x106   : > { %v4356_v2 = vpop.f32.mrf.mxu1 }
 0x107   : > { %v854_v59 = vpop.f32.mrf.mxu0 }
 0x108   : > { %v1009_v57 = vpop.f32.mrf.mxu1 }
 0x109   : > { %v5611_v5 = vpop.f32.mrf.mxu0  ;;  %v1010_v63 = vadd.f32 %v1009_v57, %v854_v59 }
 0x10a   : > { %v4359_v10 = vpop.f32.mrf.mxu1 }
 0x10b   : > { %v864_v8 = vpop.f32.mrf.mxu0 }
 0x10c   : > { %v1019_v17 = vpop.f32.mrf.mxu1 }
 0x10d   : > { %v5613_v12 = vpop.f32.mrf.mxu0 }
 0x10e   : > { %v5627_v25 = vpop.f32.mrf.mxu1 }
 0x10f   : > { %v5615_v16 = vpop.f32.mrf.mxu0 }
 0x110   : > { %v5633_v28 = vpop.f32.mrf.mxu1 }
 0x111   : > { %v5617_v61 = vpop.f32.mrf.mxu0 }
 0x112   : > { %v5642_v19 = vpop.f32.mrf.mxu1 }
 0x113   : > { %v5619_v13 = vpop.f32.mrf.mxu0 }
 0x114   : > { %v5648_v46 = vpop.f32.mrf.mxu1 }
 0x115   : > { %v5621_v15 = vpop.f32.mrf.mxu0 }
 0x116   : > { %v5656_v54 = vpop.f32.mrf.mxu1 }
 0x117   : > { %v5623_v22 = vpop.f32.mrf.mxu0 }
 0x119   : > { %v5625_v26 = vpop.f32.mrf.mxu0 }
 0x11b   : > { %v5629_v40 = vpop.f32.mrf.mxu0 }
 0x11d   : > { %v5631_v27 = vpop.f32.mrf.mxu0 }
 0x11f   : > { %v5635_v48 = vpop.f32.mrf.mxu0 }
 0x121   : > { %v4409_v56 = vpop.f32.mrf.mxu0 }
 0x122   : > { %v1287_v43 = vadd.f32 %v4409_v56, %v995_v29 }
 0x123   : > { %v1197_v34 = vpop.f32.mrf.mxu0 }
 0x124   : > { %v1310_v36 = vadd.f32 %v5640_v30, %v1287_v43  ;;  %v1286_v38 = vadd.f32 %v1197_v34, %v990_v7  ;;  %v1015_v7 = vadd.f32 %v4356_v2, %v4297_v1 }
 0x125   : > { %v4412_v49 = vpop.f32.mrf.mxu0 }
 0x126   : > { %v5645_v42 = vmax.f32 %v1310_v36, 0.0  ;;  %v1309_v11 = vadd.f32 %v5640_v30, %v1286_v38  ;;  %v1289_v35 = vadd.f32 %v4412_v49, %v1005_v39  ;;  %v5664_v36 = vpop.f32.mrf.mxu1 }
 0x127   : > { %v1207_v24 = vpop.f32.mrf.mxu0 }
 0x128   : > { %v5650_v31 = vmax.f32 %v1309_v11, 0.0  ;;  %v1288_v47 = vadd.f32 %v1207_v24, %v1000_v55  ;;  %1349 = vadd.xlane.f32.xlu0 %v5645_v42  ;;  %v1402_v50 = vmul.f32 %v5645_v42, %v5645_v42  ;;  %v1312_v4 = vadd.f32 %v5640_v30, %v1289_v35  ;;  %v5673_v2 = vpop.f32.mrf.mxu1 }
 0x129   : > { %v4415_v53 = vpop.f32.mrf.mxu0  ;;  %v1020_v11 = vadd.f32 %v1019_v17, %v864_v8  ;;  %v1728_v8 = vld [vmem:[%s7328_s6 + $0xf8] sm:$0xff] }
 0x12a   : > { %v1311_v58 = vadd.f32 %v5640_v30, %v1288_v47  ;;  %1421 = vadd.xlane.f32.xlu1 %v1402_v50  ;;  %v1401_v29 = vmul.f32 %v5650_v31, %v5650_v31  ;;  %v5666_v49 = vmax.f32 %v1312_v4, 0.0  ;;  %v1291_v39 = vadd.f32 %v4415_v53, %v1015_v7  ;;  %4434 = vmatprep.subr.mxu1 %v1728_v8 }
 0x12b   : > { %v1217_v62 = vpop.f32.mrf.mxu0  ;;  %v1025_v50 = vadd.f32 %v4359_v10, %v5611_v5  ;;  %4435 = vmatpush3.msra.mxu1 %v1728_v8  ;;  %v1727_v5 = vld [vmem:[%s7328_s6 + $0xf0] sm:$0xff]  ;;  %v1724_v8 = vld [vmem:[%s7328_s6 + $0xd8] sm:$0xff] }
 0x12c   : > { %1347 = vadd.xlane.f32.xlu0 %v5650_v31  ;;  %v5662_v43 = vmax.f32 %v1311_v58, 0.0  ;;  %v1290_v34 = vadd.f32 %v1217_v62, %v1010_v63  ;;  %v1314_v24 = vadd.f32 %v5640_v30, %v1291_v39  ;;  %v1404_v35 = vmul.f32 %v5666_v49, %v5666_v49  ;;  %v5683_v62 = vpop.f32.mrf.mxu1  ;;  %4436 = vmatprep.subr.mxu1 %v1727_v5 }
 0x12d   : > { %v4418_v56 = vpop.f32.mrf.mxu0  ;;  %4437 = vmatpush3.msra.mxu1 %v1727_v5  ;;  %v1030_v39 = vadd.f32 %v5633_v28, %v5615_v16 }
 0x12e   : > { %1419 = vadd.xlane.f32.xlu1 %v1401_v29  ;;  %v1313_v57 = vadd.f32 %v5640_v30, %v1290_v34  ;;  %v1403_v1 = vmul.f32 %v5662_v43, %v5662_v43  ;;  %v5688_v17 = vmax.f32 %v1314_v24, 0.0  ;;  %v1293_v4 = vadd.f32 %v4418_v56, %v1025_v50  ;;  %v5700_v34 = vpop.f32.mrf.mxu1  ;;  %v1725_v24 = vld [vmem:[%s7328_s6 + $0xe0] sm:$0xff] }
 0x12f   : > { %v1227_v38 = vpop.f32.mrf.mxu0 }
 0x130   : > { %1351 = vadd.xlane.f32.xlu0 %v5662_v43  ;;  %v5681_v53 = vmax.f32 %v1313_v57, 0.0  ;;  %v1292_v58 = vadd.f32 %v1227_v38, %v1020_v11  ;;  %v1726_v38 = vld [vmem:[%s7328_s6 + $0xe8] sm:$0xff]  ;;  %v1316_v57 = vadd.f32 %v5640_v30, %v1293_v4  ;;  %v1069_v28 = vpop.f32.mrf.mxu1 }
 0x131   : > { %v4421_v59 = vpop.f32.mrf.mxu0  ;;  %4438 = vmatprep.subr.mxu1 %v1726_v38 }
 0x132   : > { %1353 = vadd.xlane.f32.xlu1 %v5666_v49  ;;  %v1315_v10 = vadd.f32 %v5640_v30, %v1292_v58  ;;  %v1405_v7 = vmul.f32 %v5681_v53, %v5681_v53  ;;  %4439 = vmatpush3.msra.mxu1 %v1726_v38  ;;  %v5726_v4 = vmax.f32 %v1316_v57, 0.0 }
 0x133   : > { %v1237_v55 = vpop.f32.mrf.mxu0  ;;  %4440 = vmatprep.subr.mxu1 %v1725_v24 }
 0x134   : > { %1423 = vadd.xlane.f32.xlu0 %v1403_v1  ;;  %v1406_v1 = vmul.f32 %v5688_v17, %v5688_v17  ;;  %v5719_v50 = vmax.f32 %v1315_v10, 0.0  ;;  %v1294_v16 = vadd.f32 %v1237_v55, %v1030_v39  ;;  %4441 = vmatpush3.msra.mxu1 %v1725_v24  ;;  %v1070_v55 = vadd.f32 %v1069_v28, %v5635_v48  ;;  %v1722_v39 = vld [vmem:[%s7328_s6 + $0xc8] sm:$0xff]  ;;  %v1721_v24 = vld [vmem:[%s7328_s6 + $0xc0] sm:$0xff]  ;;  %v1720_v28 = vld [vmem:[%s7328_s6 + $0xb8] sm:$0xff] }
 0x135   : > { %v5678_v47 = vpop.f32.mrf.mxu0  ;;  %4442 = vmatprep.subr.mxu1 %v1724_v8 }
 0x136   : > { %1425 = vadd.xlane.f32.xlu1 %v1404_v35  ;;  %v1035_v35 = vadd.f32 %v5627_v25, %v5613_v12  ;;  %4443 = vmatpush3.msra.mxu1 %v1724_v8  ;;  %v1723_v25 = vld [vmem:[%s7328_s6 + $0xd0] sm:$0xff]  ;;  %v1317_v10 = vadd.f32 %v5640_v30, %v1294_v16 }
 0x137   : > { %v1247_v63 = vpop.f32.mrf.mxu0  ;;  %4444 = vmatprep.subr.mxu1 %v1723_v25 }
 0x138   : > { %1355 = vadd.xlane.f32.xlu0 %v5681_v53  ;;  %v1295_v5 = vadd.f32 %v4421_v59, %v1035_v35  ;;  %v1040_v59 = vadd.f32 %v5648_v46, %v5619_v13  ;;  %4445 = vmatpush3.msra.mxu1 %v1723_v25  ;;  %v1045_v13 = vadd.f32 %v5642_v19, %v5617_v61  ;;  %v5752_v46 = vmax.f32 %v1317_v10, 0.0  ;;  %v1719_v61 = vld [vmem:[%s7328_s6 + $0xb0] sm:$0xff] }
 0x139   : > { %v5691_v29 = vpop.f32.mrf.mxu0  ;;  %4446 = vmatprep.subr.mxu1 %v1722_v39  ;;  %v1050_v25 = vadd.f32 %v5664_v36, %v5623_v22  ;;  %v1716_v22 = vld [vmem:[%s7328_s6 + $0x98] sm:$0xff] }
 0x13a   : > { %1357 = vadd.xlane.f32.xlu1 %v5688_v17  ;;  %v1318_v57 = vadd.f32 %v5640_v30, %v1295_v5  ;;  %4447 = vmatpush3.msra.mxu1 %v1722_v39  ;;  %v1296_v35 = vadd.f32 %v1247_v63, %v1040_v59  ;;  %v1297_v5 = vadd.f32 %v5678_v47, %v1045_v13  ;;  %v1718_v47 = vld [vmem:[%s7328_s6 + $0xa8] sm:$0xff] }
 0x13b   : > { %v5702_v56 = vpop.f32.mrf.mxu0  ;;  %4448 = vmatprep.subr.mxu1 %v1721_v24  ;;  %v1409_v63 = vmul.f32 %v5752_v46, %v5752_v46  ;;  %v1055_v59 = vadd.f32 %v5656_v54, %v5621_v15  ;;  %v1715_v15 = vld [vmem:[%s7328_s6 + $0x90] sm:$0xff] }
 0x13c   : > { %1427 = vadd.xlane.f32.xlu0 %v1405_v7  ;;  %v1407_v7 = vmul.f32 %v5719_v50, %v5719_v50  ;;  %4449 = vmatpush3.msra.mxu1 %v1721_v24  ;;  %v5760_v8 = vmax.f32 %v1318_v57, 0.0  ;;  %v1319_v19 = vadd.f32 %v5640_v30, %v1296_v35  ;;  %v1298_v39 = vadd.f32 %v5702_v56, %v1050_v25 }
 0x13d   : > { %v5712_v11 = vpop.f32.mrf.mxu0  ;;  %4450 = vmatprep.subr.mxu1 %v1720_v28  ;;  %v1299_v57 = vadd.f32 %v5691_v29, %v1055_v59  ;;  %v1714_v29 = vld [vmem:[%s7328_s6 + $0x88] sm:$0xff]  ;;  %v5862_v59 = vld [vmem:[%s7328_s6 + $0x178] sm:$0xff] }
 0x13e   : > { %1429 = vadd.xlane.f32.xlu1 %v1406_v1  ;;  %v1408_v1 = vmul.f32 %v5726_v4, %v5726_v4  ;;  %4451 = vmatpush3.msra.mxu1 %v1720_v28  ;;  %v1410_v10 = vmul.f32 %v5760_v8, %v5760_v8  ;;  %v1321_v54 = vadd.f32 %v5640_v30, %v1298_v39  ;;  %v1710_v39 = vld [vmem:[%s7328_s6 + $0x68] sm:$0xff] }
 0x13f   : > { %v5721_v58 = vpop.f32.mrf.mxu0  ;;  %4452 = vmatprep.subr.mxu1 %v1719_v61  ;;  %v1322_v24 = vadd.f32 %v5640_v30, %v1299_v57  ;;  %v1708_v57 = vld [vmem:[%s7328_s6 + $0x58] sm:$0xff] }
 0x140   : > { %1359 = vadd.xlane.f32.xlu0 %v5719_v50  ;;  %4453 = vmatpush3.msra.mxu1 %v1719_v61 }
 0x141   : > { %v5729_v12 = vpop.f32.mrf.mxu0  ;;  %4454 = vmatprep.subr.mxu1 %v1718_v47 }
 0x142   : > { %1361 = vadd.xlane.f32.xlu1 %v5726_v4  ;;  %4455 = vmatpush3.msra.mxu1 %v1718_v47 }
 0x143   : > { %v1277_v38 = vpop.f32.mrf.mxu0 }
 0x144   : > { %v1302_v48 = vadd.f32 %v1277_v38, %v1070_v55  ;;  %1431 = vadd.xlane.f32.xlu0 %v1407_v7  ;;  %v1320_v55 = vadd.f32 %v5640_v30, %v1297_v5  ;;  %v1717_v7 = vld [vmem:[%s7328_s6 + $0xa0] sm:$0xff]  ;;  %v5784_v38 = vmax.f32 %v1319_v19, 0.0 }
 0x145   : > { %4456 = vmatprep.subr.mxu1 %v1717_v7 }
 0x146   : > { %v5755_v16 = vadd.f32 %v5640_v30, %v1302_v48  ;;  %1433 = vadd.xlane.f32.xlu1 %v1408_v1  ;;  %4457 = vmatpush3.msra.mxu1 %v1717_v7  ;;  %v5790_v36 = vmax.f32 %v1320_v55, 0.0  ;;  %v1411_v56 = vmul.f32 %v5784_v38, %v5784_v38  ;;  %v1065_v48 = vadd.f32 %v5673_v2, %v5625_v26  ;;  %v1713_v26 = vld [vmem:[%s7328_s6 + $0x80] sm:$0xff]  ;;  %v1712_v7 = vld [vmem:[%s7328_s6 + $0x78] sm:$0xff] }
 0x147   : > { %4458 = vmatprep.subr.mxu1 %v1716_v22  ;;  %v1060_v1 = vadd.f32 %v5683_v62, %v5629_v40  ;;  %v5814_v2 = vmax.f32 %v1321_v54, 0.0  ;;  %v5818_v40 = vmax.f32 %v1322_v24, 0.0  ;;  %v1075_v62 = vadd.f32 %v5700_v34, %v5631_v27  ;;  %4493 = vmatprep.subr.mxu0 %v1712_v7  ;;  %v1706_v54 = vld [vmem:[%s7328_s6 + $0x48] sm:$0xff]  ;;  %v1701_v24 = vld [vmem:[%s7328_s6 + $0x20] sm:$0xff] }
 0x148   : > { %1363 = vadd.xlane.f32.xlu0 %v5752_v46  ;;  %4459 = vmatpush3.msra.mxu1 %v1716_v22  ;;  %v1412_v13 = vmul.f32 %v5790_v36, %v5790_v36  ;;  %v1301_v35 = vadd.f32 %v5712_v11, %v1065_v48  ;;  %v5846_v55 = vmax.f32 %v5755_v16, 0.0  ;;  %v1711_v16 = vld [vmem:[%s7328_s6 + $0x70] sm:$0xff]  ;;  %v1709_v22 = vld [vmem:[%s7328_s6 + $0x60] sm:$0xff]  ;;  %v1704_v48 = vld [vmem:[%s7328_s6 + $0x38] sm:$0xff] }
 0x149   : > { %4460 = vmatprep.subr.mxu1 %v1715_v15  ;;  %v1300_v28 = vadd.f32 %v5721_v58, %v1060_v1  ;;  %v1413_v11 = vmul.f32 %v5814_v2, %v5814_v2  ;;  %v1303_v58 = vadd.f32 %v5729_v12, %v1075_v62  ;;  %v1414_v19 = vmul.f32 %v5818_v40, %v5818_v40  ;;  %v1702_v1 = vld [vmem:[%s7328_s6 + $0x28] sm:$0xff] }
 0x14a   : > { %1365 = vadd.xlane.f32.xlu1 %v5760_v8  ;;  %4461 = vmatpush3.msra.mxu1 %v1715_v15  ;;  %v1324_v5 = vadd.f32 %v5640_v30, %v1301_v35  ;;  %v1707_v15 = vld [vmem:[%s7328_s6 + $0x50] sm:$0xff]  ;;  %v1698_v35 = vld [vmem:[%s7328_s6 + $0x8] sm:$0xff] }
 0x14b   : > { %4462 = vmatprep.subr.mxu1 %v1714_v29  ;;  %v1323_v61 = vadd.f32 %v5640_v30, %v1300_v28  ;;  %v1326_v27 = vadd.f32 %v5640_v30, %v1303_v58  ;;  %4494 = vmatpush3.msra.mxu0 %v1712_v7  ;;  %v1697_v28 = vld [vmem:[%s7328_s6] sm:$0xff] }
 0x14c   : > { %1435 = vadd.xlane.f32.xlu0 %v1409_v63  ;;  %4463 = vmatpush3.msra.mxu1 %v1714_v29  ;;  %v5831_v63 = vmax.f32 %v1324_v5, 0.0  ;;  %v1703_v29 = vld [vmem:[%s7328_s6 + $0x30] sm:$0xff] }
 0x14d   : > { %4464 = vmatprep.subr.mxu1 %v1713_v26  ;;  %v5833_v47 = vmax.f32 %v1323_v61, 0.0  ;;  %v5840_v25 = vmax.f32 %v1326_v27, 0.0  ;;  %4495 = vmatprep.subr.mxu0 %v1711_v16 }
 0x14e   : > { %1437 = vadd.xlane.f32.xlu1 %v1410_v10  ;;  %4465 = vmatpush3.msra.mxu1 %v1713_v26  ;;  %v1416_v34 = vmul.f32 %v5831_v63, %v5831_v63  ;;  %v1417_v10 = vmul.f32 %v5846_v55, %v5846_v55  ;;  %v1699_v26 = vld [vmem:[%s7328_s6 + $0x10] sm:$0xff] }
 0x14f   : > { %v1415_v12 = vmul.f32 %v5833_v47, %v5833_v47  ;;  %v1418_v30 = vmul.f32 %v5840_v25, %v5840_v25  ;;  %4552 = vmatprep.subr.mxu1 %v5862_v59  ;;  %4496 = vmatpush3.msra.mxu0 %v1711_v16 }
 0x150   : > { %1367 = vadd.xlane.f32.xlu0 %v5784_v38  ;;  %4497 = vmatprep.subr.mxu0 %v1710_v39 }
 0x151   : > { %4498 = vmatpush3.msra.mxu0 %v1710_v39 }
 0x152   : > { %1369 = vadd.xlane.f32.xlu1 %v5790_v36  ;;  %4499 = vmatprep.subr.mxu0 %v1709_v22 }
 0x153   : > { %4500 = vmatpush3.msra.mxu0 %v1709_v22 }
 0x154   : > { %1439 = vadd.xlane.f32.xlu0 %v1411_v56  ;;  %4501 = vmatprep.subr.mxu0 %v1708_v57  ;;  %v1705_v56 = vld [vmem:[%s7328_s6 + $0x40] sm:$0xff] }
 0x155   : > { %4502 = vmatpush3.msra.mxu0 %v1708_v57 }
 0x156   : > { %1441 = vadd.xlane.f32.xlu1 %v1412_v13  ;;  %4503 = vmatprep.subr.mxu0 %v1707_v15  ;;  %v1700_v13 = vld [vmem:[%s7328_s6 + $0x18] sm:$0xff] }
 0x157   : > { %4504 = vmatpush3.msra.mxu0 %v1707_v15 }
 0x158   : > { %1371 = vadd.xlane.f32.xlu0 %v5814_v2  ;;  %4505 = vmatprep.subr.mxu0 %v1706_v54 }
 0x159   : > { %4506 = vmatpush3.msra.mxu0 %v1706_v54 }
 0x15a   : > { %1373 = vadd.xlane.f32.xlu1 %v5818_v40  ;;  %4507 = vmatprep.subr.mxu0 %v1705_v56 }
 0x15b   : > { %4508 = vmatpush3.msra.mxu0 %v1705_v56 }
 0x15c   : > { %1443 = vadd.xlane.f32.xlu0 %v1413_v11  ;;  %4509 = vmatprep.subr.mxu0 %v1704_v48 }
 0x15d   : > { %4510 = vmatpush3.msra.mxu0 %v1704_v48 }
 0x15e   : > { %1445 = vadd.xlane.f32.xlu1 %v1414_v19  ;;  %4511 = vmatprep.subr.mxu0 %v1703_v29 }
 0x15f   : > { %4512 = vmatpush3.msra.mxu0 %v1703_v29 }
 0x160   : > { %1375 = vadd.xlane.f32.xlu0 %v5833_v47  ;;  %4513 = vmatprep.subr.mxu0 %v1702_v1 }
 0x161   : > { %4514 = vmatpush3.msra.mxu0 %v1702_v1 }
 0x162   : > { %1377 = vadd.xlane.f32.xlu1 %v5831_v63  ;;  %4515 = vmatprep.subr.mxu0 %v1701_v24 }
 0x163   : > { %4516 = vmatpush3.msra.mxu0 %v1701_v24 }
 0x164   : > { %1449 = vadd.xlane.f32.xlu0 %v1416_v34  ;;  %4517 = vmatprep.subr.mxu0 %v1700_v13 }
 0x165   : > { %4518 = vmatpush3.msra.mxu0 %v1700_v13 }
 0x166   : > { %1381 = vadd.xlane.f32.xlu1 %v5840_v25  ;;  %4519 = vmatprep.subr.mxu0 %v1699_v26 }
 0x167   : > { %4520 = vmatpush3.msra.mxu0 %v1699_v26 }
 0x168   : > { %1447 = vadd.xlane.f32.xlu0 %v1415_v12  ;;  %4521 = vmatprep.subr.mxu0 %v1698_v35 }
 0x169   : > { %4522 = vmatpush3.msra.mxu0 %v1698_v35 }
 0x16a   : > { %1379 = vadd.xlane.f32.xlu1 %v5846_v55  ;;  %4523 = vmatprep.subr.mxu0 %v1697_v28 }
 0x16b   : > { %4524 = vmatpush3.msra.mxu0 %v1697_v28 }
 0x16c   : > { %1453 = vadd.xlane.f32.xlu0 %v1418_v30 }
 0x16e   : > { %1451 = vadd.xlane.f32.xlu1 %v1417_v10 }
 0x1b1   : > { %v1350_v62 = vpop.xlane.xlu0 %1349 }
 0x1b2   : > { %v1384_v5 = vmul.f32 0.0625, %v1350_v62 }
 0x1b3   : > { %v1422_v61 = vpop.xlane.xlu1 %1421 }
 0x1b4   : > { %v1474_v11 = vmul.f32 %v1384_v5, %v1384_v5  ;;  %v1456_v58 = vmul.f32 0.0625, %v1422_v61 }
 0x1b5   : > { %v1348_v19 = vpop.xlane.xlu0 %1347 }
 0x1b6   : > { %v1492_v27 = vsub.f32 %v1456_v58, %v1474_v11  ;;  %v1383_v34 = vmul.f32 0.0625, %v1348_v19 }
 0x1b7   : > { %v1420_v12 = vpop.xlane.xlu1 %1419 }
 0x1b8   : > { %v1510_v30 = vmax.f32 %v1492_v27, 0.0  ;;  %v1473_v10 = vmul.f32 %v1383_v34, %v1383_v34  ;;  %v1455_v7 = vmul.f32 0.0625, %v1420_v12 }
 0x1b9   : > { %v1352_v16 = vpop.xlane.xlu0 %1351 }
 0x1ba   : > { %v1546_v39 = vadd.f32 1e-05, %v1510_v30  ;;  %v1491_v22 = vsub.f32 %v1455_v7, %v1473_v10  ;;  %v5907_v57 = vmul.f32 0.0625, %v1352_v16 }
 0x1bb   : > { %v1354_v15 = vpop.xlane.xlu1 %1353 }
 0x1bc   : > { %4870 = vrsqrt.f32 %v1546_v39  ;;  %v1509_v54 = vmax.f32 %v1491_v22, 0.0  ;;  %v5909_v56 = vmul.f32 0.0625, %v1354_v15  ;;  %v1475_v1 = vmul.f32 %v5907_v57, %v5907_v57 }
 0x1bd   : > { %v1424_v48 = vpop.xlane.xlu0 %1423  ;;  %v1528_v22 = vsub.f32 %v5645_v42, %v1384_v5  ;;  %v1527_v5 = vsub.f32 %v5650_v31, %v1383_v34 }
 0x1be   : > { %v1545_v29 = vadd.f32 1e-05, %v1509_v54  ;;  %v1457_v24 = vmul.f32 0.0625, %v1424_v48  ;;  %v1476_v26 = vmul.f32 %v5909_v56, %v5909_v56 }
 0x1bf   : > { %v1426_v13 = vpop.xlane.xlu1 %1425 }
 0x1c0   : > { %4872 = vrsqrt.f32 %v1545_v29  ;;  %v1493_v35 = vsub.f32 %v1457_v24, %v1475_v1  ;;  %v1458_v28 = vmul.f32 0.0625, %v1426_v13 }
 0x1c1   : > { %v1356_v62 = vpop.xlane.xlu0 %1355 }
 0x1c2   : > { %v1511_v61 = vmax.f32 %v1493_v35, 0.0  ;;  %v1494_v11 = vsub.f32 %v1458_v28, %v1476_v26  ;;  %v5915_v58 = vmul.f32 0.0625, %v1356_v62  ;;  %v5929_v28 = vld [vmem:[%s7331_s9 + $0x1] ss:$0 sm:$0xff] }
 0x1c3   : > { %v1358_v19 = vpop.xlane.xlu1 %1357 }
 0x1c4   : > { %v1547_v27 = vadd.f32 1e-05, %v1511_v61  ;;  %v1512_v12 = vmax.f32 %v1494_v11, 0.0  ;;  %v5917_v30 = vmul.f32 0.0625, %v1358_v19  ;;  %v1477_v16 = vmul.f32 %v5915_v58, %v5915_v58  ;;  %v5935_v19 = vld [vmem:[%s7331_s9 + $0x2] ss:$0 sm:$0xff] }
 0x1c5   : > { %v1428_v10 = vpop.xlane.xlu0 %1427 }
 0x1c6   : > { %4874 = vrsqrt.f32 %v1547_v27  ;;  %v1548_v7 = vadd.f32 1e-05, %v1512_v12  ;;  %v1459_v39 = vmul.f32 0.0625, %v1428_v10  ;;  %v1478_v54 = vmul.f32 %v5917_v30, %v5917_v30 }
 0x1c7   : > { %v1430_v15 = vpop.xlane.xlu1 %1429 }
 0x1c8   : > { %4876 = vrsqrt.f32 %v1548_v7  ;;  %v1495_v48 = vsub.f32 %v1459_v39, %v1477_v16  ;;  %v1460_v29 = vmul.f32 0.0625, %v1430_v15 }
 0x1c9   : > { %v4871_v1 = vpop.eup %4870  ;;  %v1360_v24 = vpop.xlane.xlu0 %1359 }
 0x1ca   : > { %v1513_v13 = vmax.f32 %v1495_v48, 0.0  ;;  %v1496_v26 = vsub.f32 %v1460_v29, %v1478_v54  ;;  %v5924_v35 = vmul.f32 0.0625, %v1360_v24  ;;  %v1582_v62 = vmul.f32 %v4871_v1, %v1528_v22 }
 0x1cb   : > { %v1362_v42 = vpop.xlane.xlu1 %1361 }
 0x1cc   : > { %v1549_v61 = vadd.f32 1e-05, %v1513_v13  ;;  %v1514_v11 = vmax.f32 %v1496_v26, 0.0  ;;  %v1479_v12 = vmul.f32 %v5924_v35, %v5924_v35  ;;  %v5939_v10 = vmul.f32 0.0625, %v1362_v42 }
 0x1cd   : > { %v4873_v27 = vpop.eup %4872  ;;  %v1432_v7 = vpop.xlane.xlu0 %1431  ;;  %v1604_v16 = vmul.f32 %v5929_v28, %v1582_v62 }
 0x1ce   : > { %4878 = vrsqrt.f32 %v1549_v61  ;;  %v1550_v39 = vadd.f32 1e-05, %v1514_v11  ;;  %v1461_v22 = vmul.f32 0.0625, %v1432_v7  ;;  %v1581_v31 = vmul.f32 %v4873_v27, %v1527_v5 }
 0x1cf   : > { %v1480_v34 = vmul.f32 %v5939_v10, %v5939_v10  ;;  %v1434_v15 = vpop.xlane.xlu1 %1433  ;;  %v1626_v54 = vadd.f32 %v5935_v19, %v1604_v16  ;;  %v1529_v5 = vsub.f32 %v5662_v43, %v5907_v57  ;;  %v1530_v27 = vsub.f32 %v5666_v49, %v5909_v56 }
 0x1d0   : > { %4880 = vrsqrt.f32 %v1550_v39  ;;  %v1497_v48 = vsub.f32 %v1461_v22, %v1479_v12  ;;  %v1462_v29 = vmul.f32 0.0625, %v1434_v15  ;;  %v1603_v1 = vmul.f32 %v5929_v28, %v1581_v31 }
 0x1d1   : > { %v1364_v24 = vpop.xlane.xlu0 %1363  ;;  %v5954_v16 = vmul.f32 %v5215_v45, %v1626_v54 }
 0x1d2   : > { %v1515_v13 = vmax.f32 %v1497_v48, 0.0  ;;  %v1498_v26 = vsub.f32 %v1462_v29, %v1480_v34  ;;  %v5946_v42 = vmul.f32 0.0625, %v1364_v24  ;;  %v1625_v62 = vadd.f32 %v5935_v19, %v1603_v1  ;;  %v2089_v1 = vld [vmem:[%s7328_s6 + $0x170] sm:$0xff] }
 0x1d3   : > { %v4875_v61 = vpop.eup %4874  ;;  %v1366_v11 = vpop.xlane.xlu1 %1365 }
 0x1d4   : > { %v1551_v7 = vadd.f32 1e-05, %v1515_v13  ;;  %v1516_v12 = vmax.f32 %v1498_v26, 0.0  ;;  %v1481_v22 = vmul.f32 %v5946_v42, %v5946_v42  ;;  %v5958_v31 = vmul.f32 0.0625, %v1366_v11 }
 0x1d5   : > { %v4877_v39 = vpop.eup %4876  ;;  %v1436_v34 = vpop.xlane.xlu0 %1435  ;;  %v5960_v15 = vmul.f32 0.0, %v1625_v62  ;;  %v1583_v48 = vmul.f32 %v4875_v61, %v1529_v5  ;;  %v2088_v5 = vld [vmem:[%s7328_s6 + $0x168] sm:$0xff] }
 0x1d6   : > { %4882 = vrsqrt.f32 %v1551_v7  ;;  %v1552_v43 = vadd.f32 1e-05, %v1516_v12  ;;  %v1463_v57 = vmul.f32 0.0625, %v1436_v34  ;;  %v1584_v29 = vmul.f32 %v4877_v39, %v1530_v27 }
 0x1d7   : > { %v1482_v49 = vmul.f32 %v5958_v31, %v5958_v31  ;;  %4466 = vmatprep.mubr.f32.mxu1 %v5960_v15  ;;  %v1438_v56 = vpop.xlane.xlu1 %1437  ;;  %v1605_v54 = vmul.f32 %v5929_v28, %v1583_v48 }
 0x1d8   : > { %4884 = vrsqrt.f32 %v1552_v43  ;;  %v1499_v24 = vsub.f32 %v1463_v57, %v1481_v22  ;;  %4467 = vmatmul.mubr.f32.vlgmr.msra.gmra.mxu1 %v5954_v16  ;;  %v1464_v13 = vmul.f32 0.0625, %v1438_v56  ;;  %v1606_v26 = vmul.f32 %v5929_v28, %v1584_v29 }
 0x1d9   : > { %v1368_v62 = vpop.xlane.xlu0 %1367  ;;  %v1627_v61 = vadd.f32 %v5935_v19, %v1605_v54  ;;  %4553 = vmatpush3.msra.mxu1 %v5862_v59  ;;  %v1531_v22 = vsub.f32 %v5681_v53, %v5915_v58  ;;  %v2087_v59 = vld [vmem:[%s7328_s6 + $0x160] sm:$0xff]  ;;  %v1532_v43 = vsub.f32 %v5688_v17, %v5917_v30 }
 0x1da   : > { %v1517_v11 = vmax.f32 %v1499_v24, 0.0  ;;  %v1500_v27 = vsub.f32 %v1464_v13, %v1482_v49  ;;  %v5976_v7 = vmul.f32 0.0625, %v1368_v62  ;;  %v1628_v12 = vadd.f32 %v5935_v19, %v1606_v26  ;;  %4554 = vmatprep.subr.mxu1 %v2089_v1  ;;  %v2086_v13 = vld [vmem:[%s7328_s6 + $0x158] sm:$0xff] }
 0x1db   : > { %v4879_v39 = vpop.eup %4878  ;;  %v1370_v34 = vpop.xlane.xlu1 %1369  ;;  %v5982_v48 = vmul.f32 %v5229_v52, %v1627_v61  ;;  %4555 = vmatpush3.msra.mxu1 %v2089_v1 }
 0x1dc   : > { %v1553_v57 = vadd.f32 1e-05, %v1517_v11  ;;  %v1518_v29 = vmax.f32 %v1500_v27, 0.0  ;;  %4556 = vmatprep.subr.mxu1 %v2088_v5  ;;  %v1483_v56 = vmul.f32 %v5976_v7, %v5976_v7  ;;  %v5991_v53 = vmul.f32 0.0625, %v1370_v34 }
 0x1dd   : > { %v4881_v49 = vpop.eup %4880  ;;  %4469 = vmatprep.mubr.f32.mxu1 %v5982_v48  ;;  %v1440_v58 = vpop.xlane.xlu0 %1439  ;;  %v5995_v54 = vmul.f32 %v5263_v3, %v1628_v12  ;;  %v1585_v1 = vmul.f32 %v4879_v39, %v1531_v22  ;;  %4557 = vmatpush3.msra.mxu1 %v2088_v5  ;;  %v2085_v12 = vld [vmem:[%s7328_s6 + $0x150] sm:$0xff] }
 0x1de   : > { %4886 = vrsqrt.f32 %v1553_v57  ;;  %v1554_v24 = vadd.f32 1e-05, %v1518_v29  ;;  %v1465_v17 = vmul.f32 0.0625, %v1440_v58  ;;  %v1586_v30 = vmul.f32 %v4881_v49, %v1532_v43  ;;  %4558 = vmatprep.subr.mxu1 %v2087_v59  ;;  %v2084_v49 = vld [vmem:[%s7328_s6 + $0x148] sm:$0xff] }
 0x1df   : > { %v1484_v26 = vmul.f32 %v5991_v53, %v5991_v53  ;;  %4470 = vmatmul.mubr.f32.gmra.mxu1 %v5995_v54  ;;  %v1442_v62 = vpop.xlane.xlu1 %1441  ;;  %v1607_v61 = vmul.f32 %v5929_v28, %v1585_v1 }
 0x1e0   : > { %4888 = vrsqrt.f32 %v1554_v24  ;;  %v1501_v11 = vsub.f32 %v1465_v17, %v1483_v56  ;;  %v1466_v5 = vmul.f32 0.0625, %v1442_v62  ;;  %v1608_v27 = vmul.f32 %v5929_v28, %v1586_v30  ;;  %4559 = vmatpush3.msra.mxu1 %v2087_v59 }
 0x1e1   : > { %v1372_v39 = vpop.xlane.xlu0 %1371  ;;  %v1629_v22 = vadd.f32 %v5935_v19, %v1607_v61  ;;  %4560 = vmatprep.subr.mxu1 %v2086_v13  ;;  %v1533_v56 = vsub.f32 %v5719_v50, %v5924_v35  ;;  %v1534_v24 = vsub.f32 %v5726_v4, %v5939_v10 }
 0x1e2   : > { %v1519_v34 = vmax.f32 %v1501_v11, 0.0  ;;  %v1502_v43 = vsub.f32 %v1466_v5, %v1484_v26  ;;  %v6009_v57 = vmul.f32 0.0625, %v1372_v39  ;;  %v1630_v29 = vadd.f32 %v5935_v19, %v1608_v27  ;;  %4561 = vmatpush3.msra.mxu1 %v2086_v13  ;;  %v2083_v13 = vld [vmem:[%s7328_s6 + $0x140] sm:$0xff]  ;;  %v2082_v27 = vld [vmem:[%s7328_s6 + $0x138] sm:$0xff] }
 0x1e3   : > { %v4883_v59 = vpop.eup %4882  ;;  %v1374_v58 = vpop.xlane.xlu1 %1373  ;;  %v6018_v1 = vmul.f32 %v5281_v14, %v1629_v22  ;;  %4562 = vmatprep.subr.mxu1 %v2085_v12 }
 0x1e4   : > { %v1555_v17 = vadd.f32 1e-05, %v1519_v34  ;;  %v1520_v30 = vmax.f32 %v1502_v43, 0.0  ;;  %4563 = vmatpush3.msra.mxu1 %v2085_v12  ;;  %v1485_v62 = vmul.f32 %v6009_v57, %v6009_v57  ;;  %v6027_v50 = vmul.f32 0.0625, %v1374_v58 }
 0x1e5   : > { %v4885_v26 = vpop.eup %4884  ;;  %4472 = vmatprep.mubr.f32.mxu1 %v6018_v1  ;;  %v1444_v35 = vpop.xlane.xlu0 %1443  ;;  %v6031_v61 = vmul.f32 %v5299_v21, %v1630_v29  ;;  %v1587_v4 = vmul.f32 %v4883_v59, %v1533_v56  ;;  %4564 = vmatprep.subr.mxu1 %v2084_v49 }
 0x1e6   : > { %4890 = vrsqrt.f32 %v1555_v17  ;;  %v1556_v10 = vadd.f32 1e-05, %v1520_v30  ;;  %v1467_v11 = vmul.f32 0.0625, %v1444_v35  ;;  %v1588_v5 = vmul.f32 %v4885_v26, %v1534_v24  ;;  %4565 = vmatpush3.msra.mxu1 %v2084_v49  ;;  %v2081_v49 = vld [vmem:[%s7328_s6 + $0x130] sm:$0xff]  ;;  %v2080_v30 = vld [vmem:[%s7328_s6 + $0x128] sm:$0xff] }
 0x1e7   : > { %v1486_v12 = vmul.f32 %v6027_v50, %v6027_v50  ;;  %4473 = vmatmul.mubr.f32.gmra.mxu1 %v6031_v61  ;;  %v1446_v39 = vpop.xlane.xlu1 %1445  ;;  %v1609_v22 = vmul.f32 %v5929_v28, %v1587_v4  ;;  %4566 = vmatprep.subr.mxu1 %v2083_v13  ;;  %v1536_v4 = vsub.f32 %v5760_v8, %v5958_v31 }
 0x1e8   : > { %4892 = vrsqrt.f32 %v1556_v10  ;;  %v1503_v34 = vsub.f32 %v1467_v11, %v1485_v62  ;;  %v1468_v43 = vmul.f32 0.0625, %v1446_v39  ;;  %v1610_v29 = vmul.f32 %v5929_v28, %v1588_v5  ;;  %4567 = vmatpush3.msra.mxu1 %v2083_v13  ;;  %v2079_v5 = vld [vmem:[%s7328_s6 + $0x120] sm:$0xff] }
 0x1e9   : > { %v1376_v59 = vpop.xlane.xlu0 %1375  ;;  %v1631_v56 = vadd.f32 %v5935_v19, %v1609_v22  ;;  %4568 = vmatprep.subr.mxu1 %v2082_v27  ;;  %v1535_v13 = vsub.f32 %v5752_v46, %v5946_v42 }
 0x1ea   : > { %v1521_v58 = vmax.f32 %v1503_v34, 0.0  ;;  %v1504_v24 = vsub.f32 %v1468_v43, %v1486_v12  ;;  %v1632_v17 = vadd.f32 %v5935_v19, %v1610_v29  ;;  %4569 = vmatpush3.msra.mxu1 %v2082_v27  ;;  %v6059_v12 = vmul.f32 0.0625, %v1376_v59  ;;  %v2078_v43 = vld [vmem:[%s7328_s6 + $0x118] sm:$0xff] }
 0x1eb   : > { %v4887_v26 = vpop.eup %4886  ;;  %v1378_v62 = vpop.xlane.xlu1 %1377  ;;  %v6052_v35 = vmul.f32 %v5318_v32, %v1631_v56  ;;  %4570 = vmatprep.subr.mxu1 %v2081_v49 }
 0x1ec   : > { %v1557_v10 = vadd.f32 1e-05, %v1521_v58  ;;  %v1522_v11 = vmax.f32 %v1504_v24, 0.0  ;;  %4571 = vmatpush3.msra.mxu1 %v2081_v49  ;;  %v6061_v39 = vmul.f32 0.0625, %v1378_v62  ;;  %v6065_v42 = vmul.f32 %v5338_v41, %v1632_v17  ;;  %v2077_v58 = vld [vmem:[%s7328_s6 + $0x110] sm:$0xff] }
 0x1ed   : > { %v4889_v27 = vpop.eup %4888  ;;  %4475 = vmatprep.mubr.f32.mxu1 %v6052_v35  ;;  %v1450_v46 = vpop.xlane.xlu0 %1449  ;;  %v1589_v22 = vmul.f32 %v4887_v26, %v1535_v13  ;;  %4572 = vmatprep.subr.mxu1 %v2080_v30  ;;  %v1537_v24 = vsub.f32 %v5784_v38, %v5976_v7  ;;  %v1487_v13 = vmul.f32 %v6059_v12, %v6059_v12 }
 0x1ee   : > { %4894 = vrsqrt.f32 %v1557_v10  ;;  %v1558_v8 = vadd.f32 1e-05, %v1522_v11  ;;  %v1470_v31 = vmul.f32 0.0625, %v1450_v46  ;;  %v1590_v34 = vmul.f32 %v4889_v27, %v1536_v4  ;;  %4573 = vmatpush3.msra.mxu1 %v2080_v30  ;;  %v2076_v11 = vld [vmem:[%s7328_s6 + $0x108] sm:$0xff] }
 0x1ef   : > { %v1488_v29 = vmul.f32 %v6061_v39, %v6061_v39  ;;  %4476 = vmatmul.mubr.f32.gmra.mxu1 %v6065_v42  ;;  %v1382_v49 = vpop.xlane.xlu1 %1381  ;;  %v1611_v59 = vmul.f32 %v5929_v28, %v1589_v22  ;;  %4574 = vmatprep.subr.mxu1 %v2079_v5 }
 0x1f0   : > { %4896 = vrsqrt.f32 %v1558_v8  ;;  %v1612_v56 = vmul.f32 %v5929_v28, %v1590_v34  ;;  %4575 = vmatpush3.msra.mxu1 %v2079_v5  ;;  %v6083_v62 = vmul.f32 0.0625, %v1382_v49 }
 0x1f1   : > { %v1506_v17 = vsub.f32 %v1470_v31, %v1488_v29  ;;  %v1448_v30 = vpop.xlane.xlu0 %1447  ;;  %v1633_v26 = vadd.f32 %v5935_v19, %v1611_v59  ;;  %4576 = vmatprep.subr.mxu1 %v2078_v43  ;;  %v2075_v59 = vld [vmem:[%s7328_s6 + $0x100] sm:$0xff] }
 0x1f2   : > { %v1469_v4 = vmul.f32 0.0625, %v1448_v30  ;;  %v1634_v10 = vadd.f32 %v5935_v19, %v1612_v56  ;;  %4577 = vmatpush3.msra.mxu1 %v2078_v43  ;;  %v1538_v43 = vsub.f32 %v5790_v36, %v5991_v53  ;;  %v1490_v56 = vmul.f32 %v6083_v62, %v6083_v62 }
 0x1f3   : > { %v4891_v5 = vpop.eup %4890  ;;  %v1524_v38 = vmax.f32 %v1506_v17, 0.0  ;;  %v1380_v7 = vpop.xlane.xlu1 %1379  ;;  %v6090_v27 = vmul.f32 %v5354_v51, %v1633_v26  ;;  %4578 = vmatprep.subr.mxu1 %v2077_v58 }
 0x1f4   : > { %v1505_v46 = vsub.f32 %v1469_v4, %v1487_v13  ;;  %v6092_v22 = vmul.f32 0.0625, %v1380_v7  ;;  %v6095_v8 = vmul.f32 %v5369_v0, %v1634_v10  ;;  %v1591_v31 = vmul.f32 %v4891_v5, %v1537_v24  ;;  %4579 = vmatpush3.msra.mxu1 %v2077_v58 }
 0x1f5   : > { %v4893_v34 = vpop.eup %4892  ;;  %v1560_v29 = vadd.f32 1e-05, %v1524_v38  ;;  %4478 = vmatprep.mubr.f32.mxu1 %v6090_v27  ;;  %v1454_v49 = vpop.xlane.xlu0 %1453  ;;  %4580 = vmatprep.subr.mxu1 %v2076_v11  ;;  %v1539_v38 = vsub.f32 %v5814_v2, %v6009_v57 }
 0x1f6   : > { %v1523_v17 = vmax.f32 %v1505_v46, 0.0  ;;  %v1472_v30 = vmul.f32 0.0625, %v1454_v49  ;;  %4479 = vmatmul.mubr.f32.gmra.mxu1 %v6095_v8  ;;  %v1613_v36 = vmul.f32 %v5929_v28, %v1591_v31  ;;  %v1592_v53 = vmul.f32 %v4893_v34, %v1538_v43 }
 0x1f7   : > { %4898 = vrsqrt.f32 %v1560_v29  ;;  %v1452_v58 = vpop.xlane.xlu1 %1451  ;;  %4581 = vmatpush3.msra.mxu1 %v2076_v11  ;;  %v1489_v26 = vmul.f32 %v6092_v22, %v6092_v22  ;;  %v1540_v43 = vsub.f32 %v5818_v40, %v6027_v50 }
 0x1f8   : > { %v1559_v24 = vadd.f32 1e-05, %v1523_v17  ;;  %v1508_v13 = vsub.f32 %v1472_v30, %v1490_v56  ;;  %v1471_v4 = vmul.f32 0.0625, %v1452_v58  ;;  %4582 = vmatprep.subr.mxu1 %v2075_v59  ;;  %v1635_v10 = vadd.f32 %v5935_v19, %v1613_v36 }
 0x1f9   : > { %v1614_v5 = vmul.f32 %v5929_v28, %v1592_v53  ;;  %4583 = vmatpush3.msra.mxu1 %v2075_v59  ;;  %v1542_v53 = vsub.f32 %v5831_v63, %v6061_v39 }
 0x1fa   : > { %4900 = vrsqrt.f32 %v1559_v24  ;;  %v1526_v7 = vmax.f32 %v1508_v13, 0.0  ;;  %v1507_v46 = vsub.f32 %v1471_v4, %v1489_v26  ;;  %v6114_v11 = vmul.f32 %v5399_v20, %v1635_v10 }
 0x1fb   : > { %v4895_v31 = vpop.eup %4894  ;;  %v1636_v34 = vadd.f32 %v5935_v19, %v1614_v5  ;;  %v1541_v4 = vsub.f32 %v5833_v47, %v6059_v12 }
 0x1fc   : > { %v1562_v29 = vadd.f32 1e-05, %v1526_v7  ;;  %v1525_v49 = vmax.f32 %v1507_v46, 0.0  ;;  %v1593_v56 = vmul.f32 %v4895_v31, %v1539_v38  ;;  %4481 = vmatprep.mubr.f32.mxu1 %v6114_v11  ;;  %v1544_v7 = vsub.f32 %v5840_v25, %v6083_v62 }
 0x1fd   : > { %v4897_v17 = vpop.eup %4896  ;;  %v6121_v2 = vmul.f32 %v5415_v33, %v1636_v34  ;;  %v1543_v31 = vsub.f32 %v5846_v55, %v6092_v22 }
 0x1fe   : > { %4902 = vrsqrt.f32 %v1562_v29  ;;  %v1561_v57 = vadd.f32 1e-05, %v1525_v49  ;;  %v1615_v59 = vmul.f32 %v5929_v28, %v1593_v56  ;;  %v1594_v30 = vmul.f32 %v4897_v17, %v1540_v43 }
 0x1ff   : > { %4482 = vmatmul.mubr.f32.gmra.mxu1 %v6121_v2  ;;  %v1661_v17 = vrot.slane %v5960_v15, 7 }
 0x200   : > { %4904 = vrsqrt.f32 %v1561_v57  ;;  %v1637_v58 = vadd.f32 %v5935_v19, %v1615_v59  ;;  %v1616_v40 = vmul.f32 %v5929_v28, %v1594_v30  ;;  %v2039_v57 = vrot.slane %v5960_v15, 1 }
 0x202   : > { %v6128_v50 = vmul.f32 %v5426_v37, %v1637_v58  ;;  %v1638_v36 = vadd.f32 %v5935_v19, %v1616_v40  ;;  %v1662_v58 = vrot.slane %v5954_v16, 7  ;;  %v2040_v40 = vrot.slane %v5954_v16, 1 }
 0x204   : > { %v4899_v24 = vpop.eup %4898  ;;  %4484 = vmatprep.mubr.f32.mxu1 %v6128_v50  ;;  %v6135_v26 = vmul.f32 %v5451_v60, %v1638_v36  ;;  %v2073_v16 = vsel %vm1096_vm2, %v2039_v57, %v2040_v40 }
 0x205   : > { %v1596_v13 = vmul.f32 %v4899_v24, %v1542_v53  ;;  %v1695_v53 = vsel %vm717_vm6, %v1661_v17, %v1662_v58  ;;  %v2042_v24 = vrot.slane %v5995_v54, 1 }
 0x206   : > { %4485 = vmatmul.mubr.f32.gmra.mxu1 %v6135_v26 }
 0x207   : > { %v4901_v10 = vpop.eup %4900  ;;  %v1618_v5 = vmul.f32 %v5929_v28, %v1596_v13 }
 0x208   : > { %v1595_v38 = vmul.f32 %v4901_v10, %v1541_v4  ;;  %v1665_v4 = vrot.slane %v6018_v1, 7 }
 0x209   : > { %v1640_v46 = vadd.f32 %v5935_v19, %v1618_v5  ;;  %v2043_v5 = vrot.slane %v6018_v1, 1 }
 0x20a   : > { %v1617_v63 = vmul.f32 %v5929_v28, %v1595_v38 }
 0x20b   : > { %v4903_v39 = vpop.eup %4902  ;;  %v6153_v25 = vmul.f32 %v5485_v18, %v1640_v46  ;;  %v1667_v46 = vrot.slane %v6052_v35, 7  ;;  %v2070_v1 = vsel %vm1096_vm2, %v2042_v24, %v2043_v5 }
 0x20c   : > { %v1639_v34 = vadd.f32 %v5935_v19, %v1617_v63  ;;  %v1598_v47 = vmul.f32 %v4903_v39, %v1544_v7  ;;  %v1666_v7 = vrot.slane %v6031_v61, 7  ;;  %v2044_v63 = vrot.slane %v6031_v61, 1 }
 0x20d   : > { %v4905_v12 = vpop.eup %4904 }
 0x20e   : > { %v6149_v43 = vmul.f32 %v5468_v6, %v1639_v34  ;;  %v1597_v29 = vmul.f32 %v4905_v12, %v1543_v31  ;;  %v1620_v49 = vmul.f32 %v5929_v28, %v1598_v47  ;;  %v2045_v31 = vrot.slane %v6052_v35, 1 }
 0x20f   : > { %v1691_v34 = vsel %vm717_vm6, %v1665_v4, %v1666_v7  ;;  %v2069_v61 = vsel %vm1096_vm2, %v2043_v5, %v2044_v63  ;;  %v1668_v47 = vrot.slane %v6065_v42, 7  ;;  %v2046_v12 = vrot.slane %v6065_v42, 1 }
 0x210   : > { %4487 = vmatprep.mubr.f32.mxu1 %v6149_v43  ;;  %v1619_v62 = vmul.f32 %v5929_v28, %v1597_v29  ;;  %v1642_v56 = vadd.f32 %v5935_v19, %v1620_v49  ;;  %v1663_v28 = vrot.slane %v5982_v48, 7  ;;  %v1690_v29 = vsel %vm717_vm6, %v1666_v7, %v1667_v46 }
 0x211   : > { %4488 = vmatmul.mubr.f32.gmra.mxu1 %v6153_v25  ;;  %v1669_v49 = vrot.slane %v6090_v27, 7  ;;  %v2068_v35 = vsel %vm1096_vm2, %v2044_v63, %v2045_v31  ;;  %v2067_v42 = vsel %vm1096_vm2, %v2045_v31, %v2046_v12 }
 0x212   : > { %v1641_v55 = vadd.f32 %v5935_v19, %v1619_v62  ;;  %v6161_v22 = vmul.f32 %v5210_v44, %v1642_v56  ;;  %v2041_v19 = vrot.slane %v5982_v48, 1  ;;  %v1664_v48 = vrot.slane %v5995_v54, 7 }
 0x213   : > { %v1694_v13 = vsel %vm717_vm6, %v1662_v58, %v1663_v28  ;;  %v2047_v62 = vrot.slane %v6090_v27, 1  ;;  %v1689_v56 = vsel %vm717_vm6, %v1667_v46, %v1668_v47  ;;  %v1671_v58 = vrot.slane %v6114_v11, 7 }
 0x214   : > { %v6166_v59 = vmul.f32 %v5498_v23, %v1641_v55  ;;  %v1678_v30 = vrot.slane %v6161_v22, 7  ;;  %v2072_v10 = vsel %vm1096_vm2, %v2040_v40, %v2041_v19  ;;  %v1693_v38 = vsel %vm717_vm6, %v1663_v28, %v1664_v48 }
 0x215   : > { %v2071_v54 = vsel %vm1096_vm2, %v2041_v19, %v2042_v24  ;;  %v1692_v39 = vsel %vm717_vm6, %v1664_v48, %v1665_v4  ;;  %v1670_v55 = vrot.slane %v6095_v8, 7  ;;  %v1688_v28 = vsel %vm717_vm6, %v1668_v47, %v1669_v49 }
 0x216   : > { %4490 = vmatprep.mubr.f32.mxu1 %v6166_v59  ;;  %v1696_v36 = vsel %vm717_vm6, %v1678_v30, %v1661_v17  ;;  %v2048_v17 = vrot.slane %v6095_v8, 1  ;;  %v2066_v27 = vsel %vm1096_vm2, %v2046_v12, %v2047_v62  ;;  %v2049_v40 = vrot.slane %v6114_v11, 1 }
 0x217   : > { %4491 = vmatmul.mubr.f32.gmra.mxu1 %v6161_v22  ;;  %4525 = vmatprep.mubr.f32.mxu0 %v1696_v36  ;;  %v1687_v19 = vsel %vm717_vm6, %v1669_v49, %v1670_v55  ;;  %v1672_v36 = vrot.slane %v6121_v2, 7  ;;  %v1673_v48 = vrot.slane %v6128_v50, 7  ;;  %v2051_v24 = vrot.slane %v6128_v50, 1 }
 0x218   : > { %4526 = vmatmul.mubr.f32.vlgmr.msra.gmra.mxu0 %v1695_v53  ;;  %4584 = vmatprep.mubr.f32.mxu1 %v2073_v16  ;;  %v2065_v8 = vsel %vm1096_vm2, %v2047_v62, %v2048_v17  ;;  %v2050_v53 = vrot.slane %v6121_v2, 1  ;;  %v1686_v16 = vsel %vm717_vm6, %v1670_v55, %v1671_v58  ;;  %v2064_v11 = vsel %vm1096_vm2, %v2048_v17, %v2049_v40 }
 0x219   : > { %4528 = vmatprep.mubr.f32.mxu0 %v1694_v13  ;;  %v1685_v13 = vsel %vm717_vm6, %v1671_v58, %v1672_v36  ;;  %v1674_v4 = vrot.slane %v6135_v26, 7  ;;  %v1684_v5 = vsel %vm717_vm6, %v1672_v36, %v1673_v48  ;;  %v1676_v46 = vrot.slane %v6153_v25, 7 }
 0x21a   : > { %v2063_v2 = vsel %vm1096_vm2, %v2049_v40, %v2050_v53  ;;  %v2062_v50 = vsel %vm1096_vm2, %v2050_v53, %v2051_v24  ;;  %v2055_v31 = vrot.slane %v6166_v59, 1 }
 0x21b   : > { %4585 = vmatmul.mubr.f32.vlgmr.msra.gmra.mxu1 %v2072_v10  ;;  %v2052_v10 = vrot.slane %v6135_v26, 1  ;;  %v1683_v7 = vsel %vm717_vm6, %v1673_v48, %v1674_v4 }
 0x21c   : > { %4529 = vmatmul.mubr.f32.gmra.mxu0 %v1693_v38  ;;  %4587 = vmatprep.mubr.f32.mxu1 %v2071_v54  ;;  %v1675_v38 = vrot.slane %v6149_v43, 7  ;;  %v2053_v54 = vrot.slane %v6149_v43, 1 }
 0x21d   : > { %4531 = vmatprep.mubr.f32.mxu0 %v1692_v39  ;;  %v2061_v26 = vsel %vm1096_vm2, %v2051_v24, %v2052_v10  ;;  %v1677_v39 = vrot.slane %v6166_v59, 7 }
 0x21e   : > { %v1682_v63 = vsel %vm717_vm6, %v1674_v4, %v1675_v38  ;;  %v2060_v43 = vsel %vm1096_vm2, %v2052_v10, %v2053_v54 }
 0x21f   : > { %4588 = vmatmul.mubr.f32.gmra.mxu1 %v2070_v1  ;;  %v2054_v1 = vrot.slane %v6153_v25, 1  ;;  %v1680_v47 = vsel %vm717_vm6, %v1676_v46, %v1677_v39  ;;  %v2056_v25 = vrot.slane %v6161_v22, 1  ;;  %v1679_v59 = vsel %vm717_vm6, %v1677_v39, %v1678_v30 }
 0x220   : > { %4532 = vmatmul.mubr.f32.gmra.mxu0 %v1691_v34  ;;  %4590 = vmatprep.mubr.f32.mxu1 %v2069_v61  ;;  %v1681_v34 = vsel %vm717_vm6, %v1675_v38, %v1676_v46 }
 0x221   : > { %4534 = vmatprep.mubr.f32.mxu0 %v1690_v29  ;;  %v2059_v61 = vsel %vm1096_vm2, %v2053_v54, %v2054_v1  ;;  %v2058_v12 = vsel %vm1096_vm2, %v2054_v1, %v2055_v31  ;;  %v2057_v29 = vsel %vm1096_vm2, %v2055_v31, %v2056_v25  ;;  %v2074_v49 = vsel %vm1096_vm2, %v2056_v25, %v2039_v57 }
 0x223   : > { %4591 = vmatmul.mubr.f32.gmra.mxu1 %v2068_v35 }
 0x224   : > { %4535 = vmatmul.mubr.f32.gmra.mxu0 %v1689_v56  ;;  %4593 = vmatprep.mubr.f32.mxu1 %v2067_v42 }
 0x225   : > { %4537 = vmatprep.mubr.f32.mxu0 %v1688_v28 }
 0x227   : > { %4594 = vmatmul.mubr.f32.gmra.mxu1 %v2066_v27 }
 0x228   : > { %4538 = vmatmul.mubr.f32.gmra.mxu0 %v1687_v19  ;;  %4596 = vmatprep.mubr.f32.mxu1 %v2065_v8 }
 0x229   : > { %4540 = vmatprep.mubr.f32.mxu0 %v1686_v16 }
 0x22b   : > { %4597 = vmatmul.mubr.f32.gmra.mxu1 %v2064_v11 }
 0x22c   : > { %4541 = vmatmul.mubr.f32.gmra.mxu0 %v1685_v13  ;;  %4599 = vmatprep.mubr.f32.mxu1 %v2063_v2  ;;  %v6309_v2 = vld [vmem:[%s7331_s9 + $0x3] ss:$0 sm:$0xff] }
 0x22d   : > { %4543 = vmatprep.mubr.f32.mxu0 %v1684_v5 }
 0x22f   : > { %4600 = vmatmul.mubr.f32.gmra.mxu1 %v2062_v50 }
 0x230   : > { %4544 = vmatmul.mubr.f32.gmra.mxu0 %v1683_v7  ;;  %4602 = vmatprep.mubr.f32.mxu1 %v2061_v26 }
 0x231   : > { %4546 = vmatprep.mubr.f32.mxu0 %v1682_v63 }
 0x233   : > { %4603 = vmatmul.mubr.f32.gmra.mxu1 %v2060_v43 }
 0x234   : > { %4547 = vmatmul.mubr.f32.gmra.mxu0 %v1681_v34  ;;  %4605 = vmatprep.mubr.f32.mxu1 %v2059_v61 }
 0x235   : > { %4549 = vmatprep.mubr.f32.mxu0 %v1680_v47 }
 0x237   : > { %4606 = vmatmul.mubr.f32.gmra.mxu1 %v2058_v12 }
 0x238   : > { %4550 = vmatmul.mubr.f32.gmra.mxu0 %v1679_v59  ;;  %4608 = vmatprep.mubr.f32.mxu1 %v2057_v29 }
 0x23b   : > { %4609 = vmatmul.mubr.f32.gmra.mxu1 %v2074_v49 }
 0x298   : > { %v4468_v35 = vpop.f32.mrf.mxu1 }
 0x29a   : > { %v1795_v62 = vpop.f32.mrf.mxu1 }
 0x29f   : > { %v4471_v56 = vpop.f32.mrf.mxu1 }
 0x2a1   : > { %v1805_v42 = vpop.f32.mrf.mxu1 }
 0x2a7   : > { %v4474_v55 = vpop.f32.mrf.mxu1 }
 0x2a9   : > { %v1815_v22 = vpop.f32.mrf.mxu1 }
 0x2af   : > { %v4477_v17 = vpop.f32.mrf.mxu1 }
 0x2b1   : > { %v6284_v28 = vpop.f32.mrf.mxu1 }
 0x2b6   : > { %v6286_v30 = vpop.f32.mrf.mxu1 }
 0x2b8   : > { %v6288_v58 = vpop.f32.mrf.mxu1 }
 0x2bf   : > { %v6290_v27 = vpop.f32.mrf.mxu1 }
 0x2c1   : > { %v6292_v15 = vpop.f32.mrf.mxu1 }
 0x2c6   : > { %v6294_v40 = vpop.f32.mrf.mxu1 }
 0x2c8   : > { %v6296_v57 = vpop.f32.mrf.mxu1 }
 0x2d1   : > { %v6298_v19 = vpop.f32.mrf.mxu1 }
 0x2d3   : > { %v6300_v8 = vpop.f32.mrf.mxu1 }
 0x2d7   : > { %v6302_v36 = vpop.f32.mrf.mxu1 }
 0x2d8   : > { %v4527_v53 = vpop.f32.mrf.mxu0 }
 0x2d9   : > { %v1956_v16 = vadd.f32 %v4527_v53, %v4468_v35  ;;  %v6304_v48 = vpop.f32.mrf.mxu1 }
 0x2da   : > { %v1950_v11 = vpop.f32.mrf.mxu0 }
 0x2db   : > { %v1951_v24 = vadd.f32 %v1950_v11, %v1795_v62  ;;  %v4586_v13 = vpop.f32.mrf.mxu1 }
 0x2dc   : > { %v2247_v4 = vadd.f32 %v4586_v13, %v1956_v16  ;;  %v4530_v10 = vpop.f32.mrf.mxu0 }
 0x2dd   : > { %v1966_v5 = vadd.f32 %v4530_v10, %v4471_v56  ;;  %v2157_v38 = vpop.f32.mrf.mxu1 }
 0x2de   : > { %v2270_v50 = vadd.f32 %v6309_v2, %v2247_v4  ;;  %v2246_v54 = vadd.f32 %v2157_v38, %v1951_v24  ;;  %v1960_v7 = vpop.f32.mrf.mxu0 }
 0x2df   : > { %v1961_v26 = vadd.f32 %v1960_v7, %v1805_v42  ;;  %v4589_v63 = vpop.f32.mrf.mxu1 }
 0x2e0   : > { %v6312_v39 = vmax.f32 %v2270_v50, 0.0  ;;  %v2269_v46 = vadd.f32 %v6309_v2, %v2246_v54  ;;  %v2249_v1 = vadd.f32 %v4589_v63, %v1966_v5  ;;  %v4533_v43 = vpop.f32.mrf.mxu0 }
 0x2e1   : > { %v2167_v31 = vpop.f32.mrf.mxu1  ;;  %v1976_v59 = vadd.f32 %v4533_v43, %v4474_v55 }
 0x2e2   : > { %v6315_v34 = vmax.f32 %v2269_v46, 0.0  ;;  %v2248_v61 = vadd.f32 %v2167_v31, %v1961_v26  ;;  %v1970_v47 = vpop.f32.mrf.mxu0  ;;  %2309 = vadd.xlane.f32.xlu1 %v6312_v39  ;;  %v2272_v12 = vadd.f32 %v6309_v2, %v2249_v1  ;;  %v2362_v49 = vmul.f32 %v6312_v39, %v6312_v39 }
 0x2e3   : > { %v4592_v25 = vpop.f32.mrf.mxu1  ;;  %v1971_v56 = vadd.f32 %v1970_v47, %v1815_v22 }
 0x2e4   : > { %v4536_v29 = vpop.f32.mrf.mxu0  ;;  %2307 = vadd.xlane.f32.xlu0 %v6315_v34  ;;  %v2271_v62 = vadd.f32 %v6309_v2, %v2248_v61  ;;  %v2361_v53 = vmul.f32 %v6315_v34, %v6315_v34  ;;  %v6325_v11 = vmax.f32 %v2272_v12, 0.0  ;;  %v2251_v24 = vadd.f32 %v4592_v25, %v1976_v59 }
 0x2e5   : > { %v2177_v35 = vpop.f32.mrf.mxu1  ;;  %v1986_v50 = vadd.f32 %v4536_v29, %v4477_v17 }
 0x2e6   : > { %v1980_v42 = vpop.f32.mrf.mxu0  ;;  %2381 = vadd.xlane.f32.xlu1 %v2362_v49  ;;  %v6327_v4 = vmax.f32 %v2271_v62, 0.0  ;;  %v2250_v10 = vadd.f32 %v2177_v35, %v1971_v56  ;;  %v2274_v22 = vadd.f32 %v6309_v2, %v2251_v24  ;;  %v2364_v7 = vmul.f32 %v6325_v11, %v6325_v11 }
 0x2e7   : > { %v4595_v16 = vpop.f32.mrf.mxu1  ;;  %v1981_v46 = vadd.f32 %v1980_v42, %v6284_v28 }
 0x2e8   : > { %v4539_v55 = vpop.f32.mrf.mxu0  ;;  %2379 = vadd.xlane.f32.xlu0 %v2361_v53  ;;  %v2273_v63 = vadd.f32 %v6309_v2, %v2250_v10  ;;  %v2363_v43 = vmul.f32 %v6327_v4, %v6327_v4  ;;  %v6338_v61 = vmax.f32 %v2274_v22, 0.0  ;;  %v2253_v17 = vadd.f32 %v4595_v16, %v1986_v50 }
 0x2e9   : > { %v2187_v13 = vpop.f32.mrf.mxu1  ;;  %v1996_v35 = vadd.f32 %v4539_v55, %v6286_v30  ;;  %v2688_v55 = vld [vmem:[%s7329_s7 + $0xf8] sm:$0xff] }
 0x2ea   : > { %v1990_v5 = vpop.f32.mrf.mxu0  ;;  %2313 = vadd.xlane.f32.xlu1 %v6325_v11  ;;  %v6342_v12 = vmax.f32 %v2273_v63, 0.0  ;;  %v2252_v59 = vadd.f32 %v2187_v13, %v1981_v46  ;;  %v2276_v49 = vadd.f32 %v6309_v2, %v2253_v17  ;;  %v2366_v56 = vmul.f32 %v6338_v61, %v6338_v61  ;;  %4611 = vmatprep.subr.mxu0 %v2688_v55 }
 0x2eb   : > { %v4598_v38 = vpop.f32.mrf.mxu1  ;;  %v1991_v16 = vadd.f32 %v1990_v5, %v6288_v58  ;;  %4612 = vmatpush3.msra.mxu0 %v2688_v55  ;;  %v2687_v5 = vld [vmem:[%s7329_s7 + $0xf0] sm:$0xff] }
 0x2ec   : > { %v4542_v54 = vpop.f32.mrf.mxu0  ;;  %2311 = vadd.xlane.f32.xlu0 %v6327_v4  ;;  %v2275_v53 = vadd.f32 %v6309_v2, %v2252_v59  ;;  %v2365_v13 = vmul.f32 %v6342_v12, %v6342_v12  ;;  %v6369_v10 = vmax.f32 %v2276_v49, 0.0  ;;  %v2255_v22 = vadd.f32 %v4598_v38, %v1996_v35  ;;  %4613 = vmatprep.subr.mxu0 %v2687_v5  ;;  %v2686_v38 = vld [vmem:[%s7329_s7 + $0xe8] sm:$0xff]  ;;  %v2685_v59 = vld [vmem:[%s7329_s7 + $0xe0] sm:$0xff] }
 0x2ed   : > { %v2197_v26 = vpop.f32.mrf.mxu1  ;;  %4614 = vmatpush3.msra.mxu0 %v2687_v5 }
 0x2ee   : > { %v2000_v1 = vpop.f32.mrf.mxu0  ;;  %2385 = vadd.xlane.f32.xlu1 %v2364_v7  ;;  %v6378_v7 = vmax.f32 %v2275_v53, 0.0  ;;  %v2254_v63 = vadd.f32 %v2197_v26, %v1991_v16  ;;  %v2278_v49 = vadd.f32 %v6309_v2, %v2255_v22  ;;  %v2006_v26 = vadd.f32 %v4542_v54, %v6290_v27  ;;  %4615 = vmatprep.subr.mxu0 %v2686_v38  ;;  %v2684_v27 = vld [vmem:[%s7329_s7 + $0xd8] sm:$0xff] }
 0x2ef   : > { %v4601_v31 = vpop.f32.mrf.mxu1  ;;  %v2368_v35 = vmul.f32 %v6369_v10, %v6369_v10  ;;  %4616 = vmatpush3.msra.mxu0 %v2686_v38 }
 0x2f0   : > { %v6340_v47 = vpop.f32.mrf.mxu0  ;;  %2383 = vadd.xlane.f32.xlu0 %v2363_v43  ;;  %v2277_v53 = vadd.f32 %v6309_v2, %v2254_v63  ;;  %4617 = vmatprep.subr.mxu0 %v2685_v59  ;;  %v6402_v54 = vmax.f32 %v2278_v49, 0.0  ;;  %v2257_v55 = vadd.f32 %v4601_v31, %v2006_v26  ;;  %v2682_v31 = vld [vmem:[%s7329_s7 + $0xc8] sm:$0xff]  ;;  %v2681_v63 = vld [vmem:[%s7329_s7 + $0xc0] sm:$0xff] }
 0x2f1   : > { %v2207_v25 = vpop.f32.mrf.mxu1  ;;  %4618 = vmatpush3.msra.mxu0 %v2685_v59  ;;  %v2016_v38 = vadd.f32 %v6340_v47, %v6294_v40  ;;  %v2680_v40 = vld [vmem:[%s7329_s7 + $0xb8] sm:$0xff] }
 0x2f2   : > { %v6344_v29 = vpop.f32.mrf.mxu0  ;;  %2317 = vadd.xlane.f32.xlu1 %v6338_v61  ;;  %4619 = vmatprep.subr.mxu0 %v2684_v27  ;;  %v6410_v22 = vmax.f32 %v2277_v53, 0.0 }
 0x2f3   : > { %v6347_v28 = vpop.f32.mrf.mxu1  ;;  %4620 = vmatpush3.msra.mxu0 %v2684_v27  ;;  %v2011_v59 = vadd.f32 %v6344_v29, %v6296_v57  ;;  %v2679_v57 = vld [vmem:[%s7329_s7 + $0xb0] sm:$0xff] }
 0x2f4   : > { %v6351_v62 = vpop.f32.mrf.mxu0  ;;  %2315 = vadd.xlane.f32.xlu0 %v6342_v12  ;;  %v2369_v49 = vmul.f32 %v6410_v22, %v6410_v22  ;;  %v2259_v26 = vadd.f32 %v6347_v28, %v2016_v38  ;;  %v2677_v28 = vld [vmem:[%s7329_s7 + $0xa0] sm:$0xff] }
 0x2f5   : > { %v6356_v42 = vpop.f32.mrf.mxu1  ;;  %v2026_v53 = vadd.f32 %v6351_v62, %v6298_v19  ;;  %v2676_v19 = vld [vmem:[%s7329_s7 + $0x98] sm:$0xff] }
 0x2f6   : > { %v6360_v24 = vpop.f32.mrf.mxu0  ;;  %2389 = vadd.xlane.f32.xlu1 %v2366_v56  ;;  %v2001_v56 = vadd.f32 %v2000_v1, %v6292_v15  ;;  %v2683_v1 = vld [vmem:[%s7329_s7 + $0xd0] sm:$0xff] }
 0x2f7   : > { %v6364_v30 = vpop.f32.mrf.mxu1  ;;  %4621 = vmatprep.subr.mxu0 %v2683_v1 }
 0x2f8   : > { %2387 = vadd.xlane.f32.xlu0 %v2365_v13  ;;  %v6371_v50 = vpop.f32.mrf.mxu0  ;;  %v2367_v13 = vmul.f32 %v6378_v7, %v6378_v7  ;;  %v2256_v5 = vadd.f32 %v2207_v25, %v2001_v56  ;;  %4622 = vmatpush3.msra.mxu0 %v2683_v1  ;;  %v2370_v25 = vmul.f32 %v6402_v54, %v6402_v54  ;;  %v2678_v56 = vld [vmem:[%s7329_s7 + $0xa8] sm:$0xff] }
 0x2f9   : > { %v6373_v58 = vpop.f32.mrf.mxu1  ;;  %4623 = vmatprep.subr.mxu0 %v2682_v31  ;;  %v2036_v1 = vadd.f32 %v6371_v50, %v6302_v36  ;;  %v2673_v36 = vld [vmem:[%s7329_s7 + $0x80] sm:$0xff] }
 0x2fa   : > { %2321 = vadd.xlane.f32.xlu1 %v6369_v10  ;;  %v2030_v46 = vpop.f32.mrf.mxu0  ;;  %4624 = vmatpush3.msra.mxu0 %v2682_v31 }
 0x2fb   : > { %v2031_v43 = vadd.f32 %v2030_v46, %v6304_v48  ;;  %v6385_v17 = vpop.f32.mrf.mxu1  ;;  %v2280_v46 = vadd.f32 %v6309_v2, %v2257_v55  ;;  %4625 = vmatprep.subr.mxu0 %v2681_v63  ;;  %v2261_v55 = vadd.f32 %v6364_v30, %v2026_v53  ;;  %v2674_v30 = vld [vmem:[%s7329_s7 + $0x88] sm:$0xff]  ;;  %v2667_v53 = vld [vmem:[%s7329_s7 + $0x50] sm:$0xff] }
 0x2fc   : > { %2319 = vadd.xlane.f32.xlu0 %v6378_v7  ;;  %4626 = vmatpush3.msra.mxu0 %v2681_v63  ;;  %v2263_v31 = vadd.f32 %v6385_v17, %v2036_v1  ;;  %v2660_v1 = vld [vmem:[%s7329_s7 + $0x18] sm:$0xff] }
 0x2fd   : > { %v2237_v48 = vpop.f32.mrf.mxu1  ;;  %v6433_v47 = vmax.f32 %v2280_v46, 0.0  ;;  %4627 = vmatprep.subr.mxu0 %v2680_v40  ;;  %v2284_v50 = vadd.f32 %v6309_v2, %v2261_v55  ;;  %v2661_v55 = vld [vmem:[%s7329_s7 + $0x20] sm:$0xff] }
 0x2fe   : > { %v2262_v16 = vadd.f32 %v2237_v48, %v2031_v43  ;;  %2393 = vadd.xlane.f32.xlu1 %v2368_v35  ;;  %v2279_v43 = vadd.f32 %v6309_v2, %v2256_v5  ;;  %4628 = vmatpush3.msra.mxu0 %v2680_v40  ;;  %v2258_v35 = vadd.f32 %v6356_v42, %v2011_v59 }
 0x2ff   : > { %4629 = vmatprep.subr.mxu0 %v2679_v57  ;;  %v2282_v48 = vadd.f32 %v6309_v2, %v2259_v26  ;;  %v2372_v42 = vmul.f32 %v6433_v47, %v6433_v47  ;;  %v6489_v38 = vmax.f32 %v2284_v50, 0.0 }
 0x300   : > { %v6405_v15 = vadd.f32 %v6309_v2, %v2262_v16  ;;  %2391 = vadd.xlane.f32.xlu0 %v2367_v13  ;;  %v6439_v29 = vmax.f32 %v2279_v43, 0.0  ;;  %4630 = vmatpush3.msra.mxu0 %v2679_v57  ;;  %v2281_v16 = vadd.f32 %v6309_v2, %v2258_v35  ;;  %v2021_v13 = vadd.f32 %v6360_v24, %v6300_v8  ;;  %v2675_v8 = vld [vmem:[%s7329_s7 + $0x90] sm:$0xff]  ;;  %v6517_v57 = vld [vmem:[%s7329_s7 + $0x178] sm:$0xff] }
 0x301   : > { %4631 = vmatprep.subr.mxu0 %v2678_v56  ;;  %v6463_v62 = vmax.f32 %v2282_v48, 0.0  ;;  %v2376_v59 = vmul.f32 %v6489_v38, %v6489_v38  ;;  %v2671_v35 = vld [vmem:[%s7329_s7 + $0x70] sm:$0xff]  ;;  %v2668_v48 = vld [vmem:[%s7329_s7 + $0x58] sm:$0xff] }
 0x302   : > { %2325 = vadd.xlane.f32.xlu1 %v6402_v54  ;;  %4632 = vmatpush3.msra.mxu0 %v2678_v56  ;;  %v2371_v27 = vmul.f32 %v6439_v29, %v6439_v29  ;;  %v6471_v24 = vmax.f32 %v2281_v16, 0.0  ;;  %v2260_v5 = vadd.f32 %v6373_v58, %v2021_v13  ;;  %v2670_v56 = vld [vmem:[%s7329_s7 + $0x68] sm:$0xff]  ;;  %v2665_v16 = vld [vmem:[%s7329_s7 + $0x40] sm:$0xff]  ;;  %v2664_v13 = vld [vmem:[%s7329_s7 + $0x38] sm:$0xff] }
 0x303   : > { %4633 = vmatprep.subr.mxu0 %v2677_v28  ;;  %v2374_v58 = vmul.f32 %v6463_v62, %v6463_v62 }
 0x304   : > { %2323 = vadd.xlane.f32.xlu0 %v6410_v22  ;;  %4634 = vmatpush3.msra.mxu0 %v2677_v28  ;;  %v2283_v63 = vadd.f32 %v6309_v2, %v2260_v5  ;;  %v2373_v46 = vmul.f32 %v6471_v24, %v6471_v24  ;;  %v2669_v28 = vld [vmem:[%s7329_s7 + $0x60] sm:$0xff]  ;;  %v2658_v5 = vld [vmem:[%s7329_s7 + $0x8] sm:$0xff] }
 0x305   : > { %4635 = vmatprep.subr.mxu0 %v2676_v19 }
 0x306   : > { %2397 = vadd.xlane.f32.xlu1 %v2370_v25  ;;  %4636 = vmatpush3.msra.mxu0 %v2676_v19  ;;  %v2286_v25 = vadd.f32 %v6309_v2, %v2263_v31  ;;  %v6492_v17 = vmax.f32 %v2283_v63, 0.0  ;;  %v2662_v19 = vld [vmem:[%s7329_s7 + $0x28] sm:$0xff] }
 0x307   : > { %4637 = vmatprep.subr.mxu0 %v2675_v8 }
 0x308   : > { %2395 = vadd.xlane.f32.xlu0 %v2369_v49  ;;  %4638 = vmatpush3.msra.mxu0 %v2675_v8  ;;  %v6495_v43 = vmax.f32 %v2286_v25, 0.0  ;;  %v6502_v49 = vmax.f32 %v6405_v15, 0.0  ;;  %v2375_v2 = vmul.f32 %v6492_v17, %v6492_v17  ;;  %v2672_v15 = vld [vmem:[%s7329_s7 + $0x78] sm:$0xff]  ;;  %v2659_v8 = vld [vmem:[%s7329_s7 + $0x10] sm:$0xff] }
 0x309   : > { %4639 = vmatprep.subr.mxu0 %v2674_v30  ;;  %4670 = vmatprep.subr.mxu1 %v2672_v15 }
 0x30a   : > { %2329 = vadd.xlane.f32.xlu1 %v6433_v47  ;;  %4640 = vmatpush3.msra.mxu0 %v2674_v30  ;;  %v2377_v40 = vmul.f32 %v6502_v49, %v6502_v49  ;;  %v2378_v26 = vmul.f32 %v6495_v43, %v6495_v43  ;;  %v2657_v30 = vld [vmem:[%s7329_s7] sm:$0xff] }
 0x30b   : > { %4641 = vmatprep.subr.mxu0 %v2673_v36  ;;  %4671 = vmatpush3.msra.mxu1 %v2672_v15 }
 0x30c   : > { %2327 = vadd.xlane.f32.xlu0 %v6439_v29  ;;  %4642 = vmatpush3.msra.mxu0 %v2673_v36 }
 0x30d   : > { %4729 = vmatprep.subr.mxu0 %v6517_v57  ;;  %4672 = vmatprep.subr.mxu1 %v2671_v35 }
 0x30e   : > { %2401 = vadd.xlane.f32.xlu1 %v2372_v42  ;;  %4673 = vmatpush3.msra.mxu1 %v2671_v35  ;;  %v2666_v42 = vld [vmem:[%s7329_s7 + $0x48] sm:$0xff] }
 0x30f   : > { %4674 = vmatprep.subr.mxu1 %v2670_v56 }
 0x310   : > { %2399 = vadd.xlane.f32.xlu0 %v2371_v27  ;;  %4675 = vmatpush3.msra.mxu1 %v2670_v56  ;;  %v2663_v27 = vld [vmem:[%s7329_s7 + $0x30] sm:$0xff] }
 0x311   : > { %4676 = vmatprep.subr.mxu1 %v2669_v28 }
 0x312   : > { %2333 = vadd.xlane.f32.xlu1 %v6463_v62  ;;  %4677 = vmatpush3.msra.mxu1 %v2669_v28 }
 0x313   : > { %4678 = vmatprep.subr.mxu1 %v2668_v48 }
 0x314   : > { %2331 = vadd.xlane.f32.xlu0 %v6471_v24  ;;  %4679 = vmatpush3.msra.mxu1 %v2668_v48 }
 0x315   : > { %4680 = vmatprep.subr.mxu1 %v2667_v53 }
 0x316   : > { %2405 = vadd.xlane.f32.xlu1 %v2374_v58  ;;  %4681 = vmatpush3.msra.mxu1 %v2667_v53 }
 0x317   : > { %4682 = vmatprep.subr.mxu1 %v2666_v42 }
 0x318   : > { %2403 = vadd.xlane.f32.xlu0 %v2373_v46  ;;  %4683 = vmatpush3.msra.mxu1 %v2666_v42 }
 0x319   : > { %4684 = vmatprep.subr.mxu1 %v2665_v16 }
 0x31a   : > { %2337 = vadd.xlane.f32.xlu1 %v6489_v38  ;;  %4685 = vmatpush3.msra.mxu1 %v2665_v16 }
 0x31b   : > { %4686 = vmatprep.subr.mxu1 %v2664_v13 }
 0x31c   : > { %2335 = vadd.xlane.f32.xlu0 %v6492_v17  ;;  %4687 = vmatpush3.msra.mxu1 %v2664_v13 }
 0x31d   : > { %4688 = vmatprep.subr.mxu1 %v2663_v27 }
 0x31e   : > { %2341 = vadd.xlane.f32.xlu1 %v6495_v43  ;;  %4689 = vmatpush3.msra.mxu1 %v2663_v27 }
 0x31f   : > { %4690 = vmatprep.subr.mxu1 %v2662_v19 }
 0x320   : > { %2409 = vadd.xlane.f32.xlu0 %v2376_v59  ;;  %4691 = vmatpush3.msra.mxu1 %v2662_v19 }
 0x321   : > { %4692 = vmatprep.subr.mxu1 %v2661_v55 }
 0x322   : > { %2339 = vadd.xlane.f32.xlu1 %v6502_v49  ;;  %4693 = vmatpush3.msra.mxu1 %v2661_v55 }
 0x323   : > { %4694 = vmatprep.subr.mxu1 %v2660_v1 }
 0x324   : > { %2407 = vadd.xlane.f32.xlu0 %v2375_v2  ;;  %4695 = vmatpush3.msra.mxu1 %v2660_v1 }
 0x325   : > { %4696 = vmatprep.subr.mxu1 %v2659_v8 }
 0x326   : > { %2411 = vadd.xlane.f32.xlu1 %v2377_v40  ;;  %4697 = vmatpush3.msra.mxu1 %v2659_v8 }
 0x327   : > { %4698 = vmatprep.subr.mxu1 %v2658_v5 }
 0x328   : > { %2413 = vadd.xlane.f32.xlu0 %v2378_v26  ;;  %4699 = vmatpush3.msra.mxu1 %v2658_v5 }
 0x329   : > { %4700 = vmatprep.subr.mxu1 %v2657_v30 }
 0x32a   : > { %4701 = vmatpush3.msra.mxu1 %v2657_v30 }
 0x36b   : > { %v2310_v36 = vpop.xlane.xlu1 %2309 }
 0x36c   : > { %v2344_v50 = vmul.f32 0.0625, %v2310_v36 }
 0x36d   : > { %v2308_v31 = vpop.xlane.xlu0 %2307 }
 0x36e   : > { %v6565_v58 = vmul.f32 0.0625, %v2308_v31  ;;  %v2434_v46 = vmul.f32 %v2344_v50, %v2344_v50 }
 0x36f   : > { %v2382_v63 = vpop.xlane.xlu1 %2381 }
 0x370   : > { %v2416_v25 = vmul.f32 0.0625, %v2382_v63  ;;  %v2433_v2 = vmul.f32 %v6565_v58, %v6565_v58 }
 0x371   : > { %v2380_v59 = vpop.xlane.xlu0 %2379 }
 0x372   : > { %v2452_v40 = vsub.f32 %v2416_v25, %v2434_v46  ;;  %v2415_v26 = vmul.f32 0.0625, %v2380_v59 }
 0x373   : > { %v2314_v15 = vpop.xlane.xlu1 %2313 }
 0x374   : > { %v2470_v35 = vmax.f32 %v2452_v40, 0.0  ;;  %v2451_v56 = vsub.f32 %v2415_v26, %v2433_v2  ;;  %v6569_v28 = vmul.f32 0.0625, %v2314_v15 }
 0x375   : > { %v2312_v48 = vpop.xlane.xlu0 %2311 }
 0x376   : > { %v2506_v53 = vadd.f32 1e-05, %v2470_v35  ;;  %v2469_v42 = vmax.f32 %v2451_v56, 0.0  ;;  %v6571_v16 = vmul.f32 0.0625, %v2312_v48  ;;  %v2436_v19 = vmul.f32 %v6569_v28, %v6569_v28 }
 0x377   : > { %v2386_v13 = vpop.xlane.xlu1 %2385 }
 0x378   : > { %4906 = vrsqrt.f32 %v2506_v53  ;;  %v2505_v27 = vadd.f32 1e-05, %v2469_v42  ;;  %v2418_v55 = vmul.f32 0.0625, %v2386_v13  ;;  %v2435_v8 = vmul.f32 %v6571_v16, %v6571_v16 }
 0x379   : > { %v2384_v1 = vpop.xlane.xlu0 %2383 }
 0x37a   : > { %4908 = vrsqrt.f32 %v2505_v27  ;;  %v2454_v5 = vsub.f32 %v2418_v55, %v2436_v19  ;;  %v2417_v30 = vmul.f32 0.0625, %v2384_v1 }
 0x37b   : > { %v2318_v36 = vpop.xlane.xlu1 %2317 }
 0x37c   : > { %v2472_v31 = vmax.f32 %v2454_v5, 0.0  ;;  %v2453_v63 = vsub.f32 %v2417_v30, %v2435_v8  ;;  %v6577_v46 = vmul.f32 0.0625, %v2318_v36  ;;  %v2488_v5 = vsub.f32 %v6312_v39, %v2344_v50 }
 0x37d   : > { %v2316_v25 = vpop.xlane.xlu0 %2315  ;;  %v2487_v36 = vsub.f32 %v6315_v34, %v6565_v58  ;;  %v6602_v34 = vld [vmem:[%s7331_s9 + $0x5] ss:$0 sm:$0xff] }
 0x37e   : > { %v2508_v59 = vadd.f32 1e-05, %v2472_v31  ;;  %v2471_v2 = vmax.f32 %v2453_v63, 0.0  ;;  %v6579_v40 = vmul.f32 0.0625, %v2316_v25  ;;  %v2438_v35 = vmul.f32 %v6577_v46, %v6577_v46  ;;  %v6593_v25 = vld [vmem:[%s7331_s9 + $0x4] ss:$0 sm:$0xff] }
 0x37f   : > { %v2390_v26 = vpop.xlane.xlu1 %2389 }
 0x380   : > { %4910 = vrsqrt.f32 %v2508_v59  ;;  %v2507_v15 = vadd.f32 1e-05, %v2471_v2  ;;  %v2420_v56 = vmul.f32 0.0625, %v2390_v26  ;;  %v2437_v53 = vmul.f32 %v6579_v40, %v6579_v40 }
 0x381   : > { %v2388_v48 = vpop.xlane.xlu0 %2387 }
 0x382   : > { %4912 = vrsqrt.f32 %v2507_v15  ;;  %v2456_v42 = vsub.f32 %v2420_v56, %v2438_v35  ;;  %v2419_v13 = vmul.f32 0.0625, %v2388_v48 }
 0x383   : > { %v2322_v27 = vpop.xlane.xlu1 %2321 }
 0x384   : > { %v2474_v19 = vmax.f32 %v2456_v42, 0.0  ;;  %v2455_v55 = vsub.f32 %v2419_v13, %v2437_v53  ;;  %v6585_v1 = vmul.f32 0.0625, %v2322_v27 }
 0x385   : > { %v4907_v8 = vpop.eup %4906  ;;  %v2320_v30 = vpop.xlane.xlu0 %2319 }
 0x386   : > { %v2510_v31 = vadd.f32 1e-05, %v2474_v19  ;;  %v2473_v63 = vmax.f32 %v2455_v55, 0.0  ;;  %v2440_v2 = vmul.f32 %v6585_v1, %v6585_v1  ;;  %v6597_v26 = vmul.f32 0.0625, %v2320_v30 }
 0x387   : > { %v4909_v59 = vpop.eup %4908  ;;  %v2394_v15 = vpop.xlane.xlu1 %2393  ;;  %v2542_v35 = vmul.f32 %v4907_v8, %v2488_v5 }
 0x388   : > { %4914 = vrsqrt.f32 %v2510_v31  ;;  %v2509_v39 = vadd.f32 1e-05, %v2473_v63  ;;  %v2422_v50 = vmul.f32 0.0625, %v2394_v15  ;;  %v2541_v58 = vmul.f32 %v4909_v59, %v2487_v36 }
 0x389   : > { %v2439_v56 = vmul.f32 %v6597_v26, %v6597_v26  ;;  %v2392_v48 = vpop.xlane.xlu0 %2391  ;;  %v2564_v53 = vmul.f32 %v6593_v25, %v2542_v35  ;;  %v2490_v63 = vsub.f32 %v6325_v11, %v6569_v28 }
 0x38a   : > { %4916 = vrsqrt.f32 %v2509_v39  ;;  %v2458_v42 = vsub.f32 %v2422_v50, %v2440_v2  ;;  %v2421_v13 = vmul.f32 0.0625, %v2392_v48  ;;  %v2563_v27 = vmul.f32 %v6593_v25, %v2541_v58 }
 0x38b   : > { %v2326_v19 = vpop.xlane.xlu1 %2325  ;;  %v2586_v55 = vadd.f32 %v6602_v34, %v2564_v53  ;;  %v2489_v2 = vsub.f32 %v6327_v4, %v6571_v16 }
 0x38c   : > { %v2476_v8 = vmax.f32 %v2458_v42, 0.0  ;;  %v2457_v5 = vsub.f32 %v2421_v13, %v2439_v56  ;;  %v6609_v30 = vmul.f32 0.0625, %v2326_v19  ;;  %v2585_v36 = vadd.f32 %v6602_v34, %v2563_v27  ;;  %v3045_v19 = vld [vmem:[%s7329_s7 + $0x170] sm:$0xff] }
 0x38d   : > { %v4911_v31 = vpop.eup %4910  ;;  %v2324_v59 = vpop.xlane.xlu0 %2323  ;;  %v6617_v39 = vmul.f32 %v5215_v45, %v2586_v55 }
 0x38e   : > { %v2512_v15 = vadd.f32 1e-05, %v2476_v8  ;;  %v2475_v35 = vmax.f32 %v2457_v5, 0.0  ;;  %v2442_v58 = vmul.f32 %v6609_v30, %v6609_v30  ;;  %v6621_v56 = vmul.f32 0.0625, %v2324_v59 }
 0x38f   : > { %v4913_v50 = vpop.eup %4912  ;;  %v2398_v48 = vpop.xlane.xlu1 %2397  ;;  %v6623_v53 = vmul.f32 0.0, %v2585_v36  ;;  %v2544_v42 = vmul.f32 %v4911_v31, %v2490_v63  ;;  %v3044_v63 = vld [vmem:[%s7329_s7 + $0x168] sm:$0xff] }
 0x390   : > { %4918 = vrsqrt.f32 %v2512_v15  ;;  %v2511_v11 = vadd.f32 1e-05, %v2475_v35  ;;  %v2424_v28 = vmul.f32 0.0625, %v2398_v48  ;;  %v2543_v13 = vmul.f32 %v4913_v50, %v2489_v2 }
 0x391   : > { %v2441_v4 = vmul.f32 %v6621_v56, %v6621_v56  ;;  %4643 = vmatprep.mubr.f32.mxu0 %v6623_v53  ;;  %v2396_v16 = vpop.xlane.xlu0 %2395  ;;  %v2566_v27 = vmul.f32 %v6593_v25, %v2544_v42  ;;  %v7334_v59 = vrot.slane %v6623_v53, 7  ;;  %v7333_v2 = vrot.slane %v6617_v39, 7 }
 0x392   : > { %4920 = vrsqrt.f32 %v2511_v11  ;;  %v2460_v55 = vsub.f32 %v2424_v28, %v2442_v58  ;;  %v2423_v8 = vmul.f32 0.0625, %v2396_v16  ;;  %4644 = vmatmul.mubr.f32.vlgmr.msra.gmra.mxu0 %v6617_v39  ;;  %v2565_v5 = vmul.f32 %v6593_v25, %v2543_v13  ;;  %v3043_v11 = vld [vmem:[%s7329_s7 + $0x160] sm:$0xff] }
 0x393   : > { %v2330_v36 = vpop.xlane.xlu1 %2329  ;;  %v2588_v31 = vadd.f32 %v6602_v34, %v2566_v27  ;;  %4730 = vmatpush3.msra.mxu0 %v6517_v57  ;;  %v2492_v42 = vsub.f32 %v6338_v61, %v6577_v46  ;;  %v6655_v28 = vsel %vm717_vm6, %v7334_v59, %v7333_v2  ;;  %v2491_v13 = vsub.f32 %v6342_v12, %v6579_v40  ;;  %v3042_v12 = vld [vmem:[%s7329_s7 + $0x158] sm:$0xff] }
 0x394   : > { %v2478_v15 = vmax.f32 %v2460_v55, 0.0  ;;  %v2459_v35 = vsub.f32 %v2423_v8, %v2441_v4  ;;  %v6641_v50 = vmul.f32 0.0625, %v2330_v36  ;;  %v2587_v58 = vadd.f32 %v6602_v34, %v2565_v5  ;;  %4731 = vmatprep.subr.mxu0 %v3045_v19 }
 0x395   : > { %v4915_v48 = vpop.eup %4914  ;;  %v2328_v57 = vpop.xlane.xlu0 %2327  ;;  %4732 = vmatpush3.msra.mxu0 %v3045_v19  ;;  %v6660_v61 = vmul.f32 %v5263_v3, %v2588_v31 }
 0x396   : > { %v2514_v4 = vadd.f32 1e-05, %v2478_v15  ;;  %v2477_v16 = vmax.f32 %v2459_v35, 0.0  ;;  %4733 = vmatprep.subr.mxu0 %v3044_v63  ;;  %v2444_v27 = vmul.f32 %v6641_v50, %v6641_v50  ;;  %v6664_v19 = vmul.f32 0.0625, %v2328_v57 }
 0x397   : > { %v4917_v46 = vpop.eup %4916  ;;  %v2402_v55 = vpop.xlane.xlu1 %2401  ;;  %v6667_v8 = vmul.f32 %v5229_v52, %v2587_v58  ;;  %v2546_v5 = vmul.f32 %v4915_v48, %v2492_v42  ;;  %4734 = vmatpush3.msra.mxu0 %v3044_v63  ;;  %v3041_v63 = vld [vmem:[%s7329_s7 + $0x150] sm:$0xff] }
 0x398   : > { %4922 = vrsqrt.f32 %v2514_v4  ;;  %v2513_v40 = vadd.f32 1e-05, %v2477_v16  ;;  %v2426_v36 = vmul.f32 0.0625, %v2402_v55  ;;  %v2545_v31 = vmul.f32 %v4917_v46, %v2491_v13  ;;  %4735 = vmatprep.subr.mxu0 %v3043_v11 }
 0x399   : > { %v2443_v15 = vmul.f32 %v6664_v19, %v6664_v19  ;;  %4646 = vmatprep.mubr.f32.mxu0 %v6667_v8  ;;  %v2400_v35 = vpop.xlane.xlu0 %2399  ;;  %v2568_v58 = vmul.f32 %v6593_v25, %v2546_v5  ;;  %4736 = vmatpush3.msra.mxu0 %v3043_v11  ;;  %v3040_v11 = vld [vmem:[%s7329_s7 + $0x148] sm:$0xff] }
 0x39a   : > { %4924 = vrsqrt.f32 %v2513_v40  ;;  %v2462_v48 = vsub.f32 %v2426_v36, %v2444_v27  ;;  %v2425_v42 = vmul.f32 0.0625, %v2400_v35  ;;  %4647 = vmatmul.mubr.f32.gmra.mxu0 %v6660_v61  ;;  %v2567_v57 = vmul.f32 %v6593_v25, %v2545_v31  ;;  %4737 = vmatprep.subr.mxu0 %v3042_v12 }
 0x39b   : > { %v2334_v13 = vpop.xlane.xlu1 %2333  ;;  %v2590_v4 = vadd.f32 %v6602_v34, %v2568_v58  ;;  %4738 = vmatpush3.msra.mxu0 %v3042_v12  ;;  %v2494_v40 = vsub.f32 %v6369_v10, %v6585_v1  ;;  %v3039_v12 = vld [vmem:[%s7329_s7 + $0x140] sm:$0xff]  ;;  %v2493_v31 = vsub.f32 %v6378_v7, %v6597_v26  ;;  %v3038_v7 = vld [vmem:[%s7329_s7 + $0x138] sm:$0xff] }
 0x39c   : > { %v2480_v16 = vmax.f32 %v2462_v48, 0.0  ;;  %v2461_v46 = vsub.f32 %v2425_v42, %v2443_v15  ;;  %v6685_v55 = vmul.f32 0.0625, %v2334_v13  ;;  %v2589_v27 = vadd.f32 %v6602_v34, %v2567_v57  ;;  %4739 = vmatprep.subr.mxu0 %v3041_v63 }
 0x39d   : > { %v4919_v5 = vpop.eup %4918  ;;  %v2332_v36 = vpop.xlane.xlu0 %2331  ;;  %4740 = vmatpush3.msra.mxu0 %v3041_v63  ;;  %v6696_v58 = vmul.f32 %v5299_v21, %v2590_v4 }
 0x39e   : > { %v2516_v35 = vadd.f32 1e-05, %v2480_v16  ;;  %v2479_v15 = vmax.f32 %v2461_v46, 0.0  ;;  %4741 = vmatprep.subr.mxu0 %v3040_v11  ;;  %v2446_v42 = vmul.f32 %v6685_v55, %v6685_v55  ;;  %v6700_v10 = vmul.f32 0.0625, %v2332_v36 }
 0x39f   : > { %v4921_v48 = vpop.eup %4920  ;;  %v2406_v1 = vpop.xlane.xlu1 %2405  ;;  %v6703_v63 = vmul.f32 %v5281_v14, %v2589_v27  ;;  %v2548_v57 = vmul.f32 %v4919_v5, %v2494_v40  ;;  %4742 = vmatpush3.msra.mxu0 %v3040_v11  ;;  %v3037_v11 = vld [vmem:[%s7329_s7 + $0x130] sm:$0xff] }
 0x3a0   : > { %4926 = vrsqrt.f32 %v2516_v35  ;;  %v2515_v26 = vadd.f32 1e-05, %v2479_v15  ;;  %v2428_v13 = vmul.f32 0.0625, %v2406_v1  ;;  %v2547_v4 = vmul.f32 %v4921_v48, %v2493_v31  ;;  %4743 = vmatprep.subr.mxu0 %v3039_v12  ;;  %v3036_v35 = vld [vmem:[%s7329_s7 + $0x128] sm:$0xff] }
 0x3a1   : > { %v2445_v16 = vmul.f32 %v6700_v10, %v6700_v10  ;;  %4649 = vmatprep.mubr.f32.mxu0 %v6703_v63  ;;  %v2404_v46 = vpop.xlane.xlu0 %2403  ;;  %v2570_v27 = vmul.f32 %v6593_v25, %v2548_v57  ;;  %4744 = vmatpush3.msra.mxu0 %v3039_v12  ;;  %v2496_v57 = vsub.f32 %v6402_v54, %v6609_v30  ;;  %v3034_v30 = vld [vmem:[%s7329_s7 + $0x118] sm:$0xff] }
 0x3a2   : > { %4928 = vrsqrt.f32 %v2515_v26  ;;  %v2464_v5 = vsub.f32 %v2428_v13, %v2446_v42  ;;  %v2427_v40 = vmul.f32 0.0625, %v2404_v46  ;;  %4650 = vmatmul.mubr.f32.gmra.mxu0 %v6696_v58  ;;  %v2569_v36 = vmul.f32 %v6593_v25, %v2547_v4  ;;  %4745 = vmatprep.subr.mxu0 %v3038_v7 }
 0x3a3   : > { %v2338_v31 = vpop.xlane.xlu1 %2337  ;;  %4746 = vmatpush3.msra.mxu0 %v3038_v7  ;;  %v2592_v1 = vadd.f32 %v6602_v34, %v2570_v27  ;;  %v3035_v7 = vld [vmem:[%s7329_s7 + $0x120] sm:$0xff]  ;;  %v2495_v13 = vsub.f32 %v6410_v22, %v6621_v56 }
 0x3a4   : > { %v2482_v15 = vmax.f32 %v2464_v5, 0.0  ;;  %v2463_v12 = vsub.f32 %v2427_v40, %v2445_v16  ;;  %v2591_v48 = vadd.f32 %v6602_v34, %v2569_v36  ;;  %4747 = vmatprep.subr.mxu0 %v3037_v11  ;;  %v6729_v46 = vmul.f32 0.0625, %v2338_v31 }
 0x3a5   : > { %v4923_v42 = vpop.eup %4922  ;;  %v2336_v26 = vpop.xlane.xlu0 %2335  ;;  %4748 = vmatpush3.msra.mxu0 %v3037_v11  ;;  %v6738_v22 = vmul.f32 %v5338_v41, %v2592_v1 }
 0x3a6   : > { %v2518_v4 = vadd.f32 1e-05, %v2482_v15  ;;  %v2481_v16 = vmax.f32 %v2463_v12, 0.0  ;;  %4749 = vmatprep.subr.mxu0 %v3036_v35  ;;  %v6732_v40 = vmul.f32 %v5318_v32, %v2591_v48  ;;  %v2550_v54 = vmul.f32 %v4923_v42, %v2496_v57 }
 0x3a7   : > { %v4925_v27 = vpop.eup %4924  ;;  %v2342_v5 = vpop.xlane.xlu1 %2341  ;;  %4750 = vmatpush3.msra.mxu0 %v3036_v35  ;;  %v3033_v35 = vld [vmem:[%s7329_s7 + $0x110] sm:$0xff]  ;;  %v2448_v15 = vmul.f32 %v6729_v46, %v6729_v46  ;;  %v6747_v12 = vmul.f32 0.0625, %v2336_v26 }
 0x3a8   : > { %4930 = vrsqrt.f32 %v2518_v4  ;;  %v2517_v11 = vadd.f32 1e-05, %v2481_v16  ;;  %v2549_v56 = vmul.f32 %v4925_v27, %v2495_v13  ;;  %4751 = vmatprep.subr.mxu0 %v3035_v7  ;;  %4652 = vmatprep.mubr.f32.mxu0 %v6732_v40  ;;  %v2572_v31 = vmul.f32 %v6593_v25, %v2550_v54 }
 0x3a9   : > { %v2410_v36 = vpop.xlane.xlu0 %2409  ;;  %4752 = vmatpush3.msra.mxu0 %v3035_v7  ;;  %v3032_v7 = vld [vmem:[%s7329_s7 + $0x108] sm:$0xff]  ;;  %v2498_v16 = vsub.f32 %v6433_v47, %v6641_v50  ;;  %v6759_v27 = vmul.f32 0.0625, %v2342_v5 }
 0x3aa   : > { %4932 = vrsqrt.f32 %v2517_v11  ;;  %v2430_v48 = vmul.f32 0.0625, %v2410_v36  ;;  %4653 = vmatmul.mubr.f32.gmra.mxu0 %v6738_v22  ;;  %4753 = vmatprep.subr.mxu0 %v3034_v30  ;;  %v2571_v42 = vmul.f32 %v6593_v25, %v2549_v56  ;;  %v2594_v57 = vadd.f32 %v6602_v34, %v2572_v31 }
 0x3ab   : > { %v2340_v1 = vpop.xlane.xlu1 %2339  ;;  %4754 = vmatpush3.msra.mxu0 %v3034_v30  ;;  %v3031_v30 = vld [vmem:[%s7329_s7 + $0x100] sm:$0xff]  ;;  %v2497_v56 = vsub.f32 %v6439_v29, %v6664_v19  ;;  %v2447_v36 = vmul.f32 %v6747_v12, %v6747_v12 }
 0x3ac   : > { %v2466_v13 = vsub.f32 %v2430_v48, %v2448_v15  ;;  %v6755_v4 = vmul.f32 0.0625, %v2340_v1  ;;  %4755 = vmatprep.subr.mxu0 %v3033_v35  ;;  %v2593_v11 = vadd.f32 %v6602_v34, %v2571_v42  ;;  %v6775_v48 = vmul.f32 %v5369_v0, %v2594_v57 }
 0x3ad   : > { %v4927_v26 = vpop.eup %4926  ;;  %v2408_v54 = vpop.xlane.xlu0 %2407  ;;  %4756 = vmatpush3.msra.mxu0 %v3033_v35 }
 0x3ae   : > { %v2484_v31 = vmax.f32 %v2466_v13, 0.0  ;;  %v2429_v15 = vmul.f32 0.0625, %v2408_v54  ;;  %4757 = vmatprep.subr.mxu0 %v3032_v7  ;;  %v2449_v50 = vmul.f32 %v6755_v4, %v6755_v4  ;;  %v6772_v35 = vmul.f32 %v5354_v51, %v2593_v11 }
 0x3af   : > { %v4929_v47 = vpop.eup %4928  ;;  %v2412_v5 = vpop.xlane.xlu1 %2411  ;;  %v2552_v1 = vmul.f32 %v4927_v26, %v2498_v16  ;;  %4758 = vmatpush3.msra.mxu0 %v3032_v7  ;;  %v2450_v13 = vmul.f32 %v6759_v27, %v6759_v27 }
 0x3b0   : > { %v2520_v29 = vadd.f32 1e-05, %v2484_v31  ;;  %v2465_v19 = vsub.f32 %v2429_v15, %v2447_v36  ;;  %v2431_v42 = vmul.f32 0.0625, %v2412_v5  ;;  %v2551_v2 = vmul.f32 %v4929_v47, %v2497_v56  ;;  %4759 = vmatprep.subr.mxu0 %v3031_v30  ;;  %4655 = vmatprep.mubr.f32.mxu0 %v6772_v35 }
 0x3b1   : > { %v2414_v54 = vpop.xlane.xlu0 %2413  ;;  %v2574_v59 = vmul.f32 %v6593_v25, %v2552_v1  ;;  %4760 = vmatpush3.msra.mxu0 %v3031_v30  ;;  %v2500_v56 = vsub.f32 %v6463_v62, %v6685_v55  ;;  %v2499_v30 = vsub.f32 %v6471_v24, %v6700_v10 }
 0x3b2   : > { %4934 = vrsqrt.f32 %v2520_v29  ;;  %v2483_v11 = vmax.f32 %v2465_v19, 0.0  ;;  %v2467_v57 = vsub.f32 %v2431_v42, %v2449_v50  ;;  %4656 = vmatmul.mubr.f32.gmra.mxu0 %v6775_v48  ;;  %v2432_v7 = vmul.f32 0.0625, %v2414_v54 }
 0x3b3   : > { %v2573_v26 = vmul.f32 %v6593_v25, %v2551_v2  ;;  %v2596_v16 = vadd.f32 %v6602_v34, %v2574_v59  ;;  %v2502_v54 = vsub.f32 %v6489_v38, %v6729_v46  ;;  %v2503_v38 = vsub.f32 %v6502_v49, %v6755_v4 }
 0x3b4   : > { %v2519_v36 = vadd.f32 1e-05, %v2483_v11  ;;  %v2485_v31 = vmax.f32 %v2467_v57, 0.0  ;;  %v2468_v15 = vsub.f32 %v2432_v7, %v2450_v13 }
 0x3b5   : > { %v4931_v47 = vpop.eup %4930  ;;  %v2595_v5 = vadd.f32 %v6602_v34, %v2573_v26  ;;  %v6793_v59 = vmul.f32 %v5415_v33, %v2596_v16  ;;  %v2501_v16 = vsub.f32 %v6492_v17, %v6747_v12 }
 0x3b6   : > { %4936 = vrsqrt.f32 %v2519_v36  ;;  %v2521_v50 = vadd.f32 1e-05, %v2485_v31  ;;  %v2486_v1 = vmax.f32 %v2468_v15, 0.0  ;;  %v2554_v29 = vmul.f32 %v4931_v47, %v2500_v56 }
 0x3b7   : > { %v4933_v19 = vpop.eup %4932  ;;  %v6790_v2 = vmul.f32 %v5399_v20, %v2595_v5  ;;  %v2504_v15 = vsub.f32 %v6495_v43, %v6759_v27 }
 0x3b8   : > { %4938 = vrsqrt.f32 %v2521_v50  ;;  %v2522_v62 = vadd.f32 1e-05, %v2486_v1  ;;  %v2553_v55 = vmul.f32 %v4933_v19, %v2499_v30  ;;  %v2576_v42 = vmul.f32 %v6593_v25, %v2554_v29 }
 0x3b9   : > { %4658 = vmatprep.mubr.f32.mxu0 %v6790_v2 }
 0x3ba   : > { %4940 = vrsqrt.f32 %v2522_v62  ;;  %4659 = vmatmul.mubr.f32.gmra.mxu0 %v6793_v59  ;;  %v2575_v24 = vmul.f32 %v6593_v25, %v2553_v55  ;;  %v2598_v10 = vadd.f32 %v6602_v34, %v2576_v42  ;;  %v2995_v62 = vrot.slane %v6623_v53, 1 }
 0x3bb   : > { %v2997_v42 = vrot.slane %v6667_v8, 1 }
 0x3bc   : > { %v2597_v13 = vadd.f32 %v6602_v34, %v2575_v24  ;;  %v6807_v7 = vmul.f32 %v5451_v60, %v2598_v10  ;;  %v2623_v10 = vrot.slane %v6667_v8, 7  ;;  %v7336_v8 = vrot.slane %v6617_v39, 7 }
 0x3be   : > { %v6804_v11 = vmul.f32 %v5426_v37, %v2597_v13  ;;  %v7335_v13 = vrot.slane %v6623_v53, 7 }
 0x3bf   : > { %v4935_v57 = vpop.eup %4934 }
 0x3c0   : > { %4661 = vmatprep.mubr.f32.mxu0 %v6804_v11  ;;  %v2556_v26 = vmul.f32 %v4935_v57, %v2502_v54  ;;  %v2998_v54 = vrot.slane %v6660_v61, 1  ;;  %v2654_v57 = vsel %vm717_vm6, %v7336_v8, %v2623_v10  ;;  %v3007_v8 = vrot.slane %v6804_v11, 1 }
 0x3c1   : > { %4662 = vmatmul.mubr.f32.gmra.mxu0 %v6807_v7 }
 0x3c2   : > { %v2578_v36 = vmul.f32 %v6593_v25, %v2556_v26 }
 0x3c3   : > { %v4937_v56 = vpop.eup %4936 }
 0x3c4   : > { %v2555_v46 = vmul.f32 %v4937_v56, %v2501_v16  ;;  %v2600_v50 = vadd.f32 %v6602_v34, %v2578_v36  ;;  %v2625_v16 = vrot.slane %v6703_v63, 7  ;;  %v2999_v56 = vrot.slane %v6703_v63, 1 }
 0x3c5   : > { %v4939_v31 = vpop.eup %4938  ;;  %v3027_v36 = vsel %vm1096_vm2, %v2997_v42, %v2998_v54 }
 0x3c6   : > { %v2577_v47 = vmul.f32 %v6593_v25, %v2555_v46  ;;  %v2557_v30 = vmul.f32 %v4939_v31, %v2503_v38  ;;  %v6828_v43 = vmul.f32 %v5485_v18, %v2600_v50  ;;  %v2624_v38 = vrot.slane %v6660_v61, 7 }
 0x3c7   : > { %v4941_v5 = vpop.eup %4940  ;;  %v3026_v63 = vsel %vm1096_vm2, %v2998_v54, %v2999_v56  ;;  %v2627_v31 = vrot.slane %v6732_v40, 7  ;;  %v2633_v54 = vrot.slane %v6804_v11, 7 }
 0x3c8   : > { %v2599_v1 = vadd.f32 %v6602_v34, %v2577_v47  ;;  %v2579_v17 = vmul.f32 %v6593_v25, %v2557_v30  ;;  %v2558_v12 = vmul.f32 %v4941_v5, %v2504_v15  ;;  %v2652_v46 = vsel %vm717_vm6, %v2624_v38, %v2625_v16 }
 0x3c9   : > { %v3001_v15 = vrot.slane %v6732_v40, 1  ;;  %v2626_v47 = vrot.slane %v6696_v58, 7  ;;  %v3002_v5 = vrot.slane %v6738_v22, 1 }
 0x3ca   : > { %v6823_v29 = vmul.f32 %v5468_v6, %v2599_v1  ;;  %v2601_v49 = vadd.f32 %v6602_v34, %v2579_v17  ;;  %v2580_v4 = vmul.f32 %v6593_v25, %v2558_v12  ;;  %v2996_v25 = vrot.slane %v6617_v39, 1 }
 0x3cb   : > { %v2653_v39 = vsel %vm717_vm6, %v2623_v10, %v2624_v38  ;;  %v2651_v30 = vsel %vm717_vm6, %v2625_v16, %v2626_v47  ;;  %v2650_v50 = vsel %vm717_vm6, %v2626_v47, %v2627_v31  ;;  %v2629_v1 = vrot.slane %v6772_v35, 7 }
 0x3cc   : > { %4664 = vmatprep.mubr.f32.mxu0 %v6823_v29  ;;  %v6832_v27 = vmul.f32 %v5498_v23, %v2601_v49  ;;  %v2602_v19 = vadd.f32 %v6602_v34, %v2580_v4  ;;  %v3029_v34 = vsel %vm1096_vm2, %v2995_v62, %v2996_v25  ;;  %v3028_v26 = vsel %vm1096_vm2, %v2996_v25, %v2997_v42 }
 0x3cd   : > { %4665 = vmatmul.mubr.f32.gmra.mxu0 %v6828_v43  ;;  %v3003_v17 = vrot.slane %v6772_v35, 1  ;;  %v2628_v12 = vrot.slane %v6738_v22, 7  ;;  %v3004_v4 = vrot.slane %v6775_v48, 1  ;;  %v2631_v25 = vrot.slane %v6790_v2, 7 }
 0x3ce   : > { %4667 = vmatprep.mubr.f32.mxu0 %v6832_v27  ;;  %v6839_v55 = vmul.f32 %v5210_v44, %v2602_v19  ;;  %v3005_v42 = vrot.slane %v6790_v2, 1  ;;  %v2630_v10 = vrot.slane %v6775_v48, 7  ;;  %v3008_v16 = vrot.slane %v6807_v7, 1 }
 0x3cf   : > { %v2649_v49 = vsel %vm717_vm6, %v2627_v31, %v2628_v12  ;;  %v2648_v19 = vsel %vm717_vm6, %v2628_v12, %v2629_v1  ;;  %v3022_v35 = vsel %vm1096_vm2, %v3002_v5, %v3003_v17  ;;  %v3021_v22 = vsel %vm1096_vm2, %v3003_v17, %v3004_v4 }
 0x3d0   : > { %v2638_v24 = vrot.slane %v6839_v55, 7  ;;  %v3020_v2 = vsel %vm1096_vm2, %v3004_v4, %v3005_v42  ;;  %v3009_v38 = vrot.slane %v6823_v29, 1  ;;  %v2637_v31 = vrot.slane %v6832_v27, 7 }
 0x3d1   : > { %4668 = vmatmul.mubr.f32.gmra.mxu0 %v6839_v55  ;;  %v3012_v47 = vrot.slane %v6839_v55, 1 }
 0x3d2   : > { %4761 = vmatprep.mubr.f32.mxu0 %v3029_v34  ;;  %v2656_v44 = vsel %vm717_vm6, %v2638_v24, %v7335_v13  ;;  %v2647_v34 = vsel %vm717_vm6, %v2629_v1, %v2630_v10  ;;  %v3006_v13 = vrot.slane %v6793_v59, 1 }
 0x3d3   : > { %4702 = vmatprep.mubr.f32.mxu1 %v2656_v44  ;;  %v2646_v44 = vsel %vm717_vm6, %v2630_v10, %v2631_v25 }
 0x3d4   : > { %4703 = vmatmul.mubr.f32.vlgmr.msra.gmra.mxu1 %v6655_v28  ;;  %v3000_v28 = vrot.slane %v6696_v58, 1  ;;  %v3023_v58 = vsel %vm1096_vm2, %v3001_v15, %v3002_v5  ;;  %v3019_v48 = vsel %vm1096_vm2, %v3005_v42, %v3006_v13  ;;  %v3018_v11 = vsel %vm1096_vm2, %v3006_v13, %v3007_v8 }
 0x3d5   : > { %4705 = vmatprep.mubr.f32.mxu1 %v2654_v57  ;;  %4762 = vmatmul.mubr.f32.vlgmr.msra.gmra.mxu0 %v3028_v26  ;;  %v2632_v57 = vrot.slane %v6793_v59, 7  ;;  %v3017_v59 = vsel %vm1096_vm2, %v3007_v8, %v3008_v16 }
 0x3d6   : > { %4764 = vmatprep.mubr.f32.mxu0 %v3027_v36  ;;  %v3025_v61 = vsel %vm1096_vm2, %v2999_v56, %v3000_v28  ;;  %v3024_v40 = vsel %vm1096_vm2, %v3000_v28, %v3001_v15  ;;  %v2635_v36 = vrot.slane %v6823_v29, 7  ;;  %v3016_v29 = vsel %vm1096_vm2, %v3008_v16, %v3009_v38 }
 0x3d7   : > { %v2645_v26 = vsel %vm717_vm6, %v2631_v25, %v2632_v57  ;;  %v2644_v56 = vsel %vm717_vm6, %v2632_v57, %v2633_v54  ;;  %v3011_v15 = vrot.slane %v6832_v27, 1 }
 0x3d8   : > { %4706 = vmatmul.mubr.f32.gmra.mxu1 %v2653_v39  ;;  %v2634_v39 = vrot.slane %v6807_v7, 7 }
 0x3d9   : > { %4708 = vmatprep.mubr.f32.mxu1 %v2652_v46  ;;  %4765 = vmatmul.mubr.f32.gmra.mxu0 %v3026_v63  ;;  %v3010_v46 = vrot.slane %v6828_v43, 1 }
 0x3da   : > { %4767 = vmatprep.mubr.f32.mxu0 %v3025_v61  ;;  %v2643_v28 = vsel %vm717_vm6, %v2633_v54, %v2634_v39  ;;  %v2642_v63 = vsel %vm717_vm6, %v2634_v39, %v2635_v36  ;;  %v2636_v61 = vrot.slane %v6828_v43, 7  ;;  %v2639_v43 = vsel %vm717_vm6, %v2637_v31, %v2638_v24  ;;  %v6979_v54 = vld [vmem:[%s7331_s9 + $0x6] ss:$0 sm:$0xff] }
 0x3db   : > { %v3015_v7 = vsel %vm1096_vm2, %v3009_v38, %v3010_v46  ;;  %v3014_v27 = vsel %vm1096_vm2, %v3010_v46, %v3011_v15 }
 0x3dc   : > { %4709 = vmatmul.mubr.f32.gmra.mxu1 %v2651_v30  ;;  %v2641_v30 = vsel %vm717_vm6, %v2635_v36, %v2636_v61  ;;  %v2640_v5 = vsel %vm717_vm6, %v2636_v61, %v2637_v31 }
 0x3dd   : > { %4711 = vmatprep.mubr.f32.mxu1 %v2650_v50  ;;  %4768 = vmatmul.mubr.f32.gmra.mxu0 %v3024_v40  ;;  %v3013_v50 = vsel %vm1096_vm2, %v3011_v15, %v3012_v47  ;;  %v3030_v40 = vsel %vm1096_vm2, %v3012_v47, %v2995_v62 }
 0x3de   : > { %4770 = vmatprep.mubr.f32.mxu0 %v3023_v58 }
 0x3e0   : > { %4712 = vmatmul.mubr.f32.gmra.mxu1 %v2649_v49 }
 0x3e1   : > { %4714 = vmatprep.mubr.f32.mxu1 %v2648_v19  ;;  %4771 = vmatmul.mubr.f32.gmra.mxu0 %v3022_v35 }
 0x3e2   : > { %4773 = vmatprep.mubr.f32.mxu0 %v3021_v22 }
 0x3e4   : > { %4715 = vmatmul.mubr.f32.gmra.mxu1 %v2647_v34 }
 0x3e5   : > { %4717 = vmatprep.mubr.f32.mxu1 %v2646_v44  ;;  %4774 = vmatmul.mubr.f32.gmra.mxu0 %v3020_v2 }
 0x3e6   : > { %4776 = vmatprep.mubr.f32.mxu0 %v3019_v48 }
 0x3e8   : > { %4718 = vmatmul.mubr.f32.gmra.mxu1 %v2645_v26 }
 0x3e9   : > { %4720 = vmatprep.mubr.f32.mxu1 %v2644_v56  ;;  %4777 = vmatmul.mubr.f32.gmra.mxu0 %v3018_v11 }
 0x3ea   : > { %4779 = vmatprep.mubr.f32.mxu0 %v3017_v59 }
 0x3ec   : > { %4721 = vmatmul.mubr.f32.gmra.mxu1 %v2643_v28 }
 0x3ed   : > { %4723 = vmatprep.mubr.f32.mxu1 %v2642_v63  ;;  %4780 = vmatmul.mubr.f32.gmra.mxu0 %v3016_v29 }
 0x3ee   : > { %4782 = vmatprep.mubr.f32.mxu0 %v3015_v7 }
 0x3f0   : > { %4724 = vmatmul.mubr.f32.gmra.mxu1 %v2641_v30 }
 0x3f1   : > { %4726 = vmatprep.mubr.f32.mxu1 %v2640_v5  ;;  %4783 = vmatmul.mubr.f32.gmra.mxu0 %v3014_v27 }
 0x3f2   : > { %4785 = vmatprep.mubr.f32.mxu0 %v3013_v50 }
 0x3f4   : > { %4727 = vmatmul.mubr.f32.gmra.mxu1 %v2639_v43 }
 0x3f5   : > { %4786 = vmatmul.mubr.f32.gmra.mxu0 %v3030_v40 }
 0x452   : > { %v4645_v1 = vpop.f32.mrf.mxu0 }
 0x454   : > { %v2755_v17 = vpop.f32.mrf.mxu0 }
 0x45a   : > { %v4648_v58 = vpop.f32.mrf.mxu0 }
 0x45c   : > { %v2764_v12 = vpop.f32.mrf.mxu0 }
 0x462   : > { %v4651_v49 = vpop.f32.mrf.mxu0 }
 0x464   : > { %v2774_v4 = vpop.f32.mrf.mxu0 }
 0x46a   : > { %v4654_v19 = vpop.f32.mrf.mxu0 }
 0x46c   : > { %v2784_v35 = vpop.f32.mrf.mxu0 }
 0x472   : > { %v6958_v25 = vpop.f32.mrf.mxu0 }
 0x474   : > { %v6960_v55 = vpop.f32.mrf.mxu0 }
 0x47a   : > { %v6962_v24 = vpop.f32.mrf.mxu0 }
 0x47c   : > { %v6964_v42 = vpop.f32.mrf.mxu0 }
 0x481   : > { %v6966_v53 = vpop.f32.mrf.mxu0 }
 0x483   : > { %v6968_v9 = vpop.f32.mrf.mxu0 }
 0x48d   : > { %v6970_v62 = vpop.f32.mrf.mxu0 }
 0x48f   : > { %v6972_v22 = vpop.f32.mrf.mxu0 }
 0x491   : > { %v4669_v10 = vpop.f32.mrf.mxu0 }
 0x493   : > { %v6974_v34 = vpop.f32.mrf.mxu0 }
 0x494   : > { %v4704_v13 = vpop.f32.mrf.mxu1 }
 0x495   : > { %v2913_v44 = vadd.f32 %v4704_v13, %v4645_v1  ;;  %v4763_v2 = vpop.f32.mrf.mxu0 }
 0x496   : > { %v2908_v8 = vpop.f32.mrf.mxu1 }
 0x497   : > { %v3200_v48 = vadd.f32 %v4763_v2, %v2913_v44  ;;  %v3113_v57 = vpop.f32.mrf.mxu0 }
 0x498   : > { %v4707_v26 = vpop.f32.mrf.mxu1 }
 0x499   : > { %v3221_v16 = vadd.f32 %v6979_v54, %v3200_v48  ;;  %v2923_v56 = vadd.f32 %v4707_v26, %v4648_v58  ;;  %v4766_v11 = vpop.f32.mrf.mxu0 }
 0x49a   : > { %v2917_v36 = vpop.f32.mrf.mxu1 }
 0x49b   : > { %v6982_v38 = vmax.f32 %v3221_v16, 0.0  ;;  %v3202_v59 = vadd.f32 %v4766_v11, %v2923_v56  ;;  %v2918_v39 = vadd.f32 %v2917_v36, %v2764_v12  ;;  %v3122_v28 = vpop.f32.mrf.mxu0 }
 0x49c   : > { %v4710_v46 = vpop.f32.mrf.mxu1 }
 0x49d   : > { %v3201_v63 = vadd.f32 %v3122_v28, %v2918_v39  ;;  %3255 = vadd.xlane.f32.xlu0 %v6982_v38  ;;  %v4769_v29 = vpop.f32.mrf.mxu0  ;;  %v3223_v31 = vadd.f32 %v6979_v54, %v3202_v59  ;;  %v2933_v61 = vadd.f32 %v4710_v46, %v4651_v49  ;;  %v3303_v5 = vmul.f32 %v6982_v38, %v6982_v38 }
 0x49e   : > { %v2927_v15 = vpop.f32.mrf.mxu1 }
 0x49f   : > { %v3222_v7 = vadd.f32 %v6979_v54, %v3201_v63  ;;  %v2928_v47 = vadd.f32 %v2927_v15, %v2774_v4  ;;  %v3132_v30 = vpop.f32.mrf.mxu0  ;;  %v6991_v17 = vmax.f32 %v3223_v31, 0.0  ;;  %v3204_v58 = vadd.f32 %v4769_v29, %v2933_v61 }
 0x4a0   : > { %v4713_v27 = vpop.f32.mrf.mxu1 }
 0x4a1   : > { %v6989_v50 = vmax.f32 %v3222_v7, 0.0  ;;  %v3203_v43 = vadd.f32 %v3132_v30, %v2928_v47  ;;  %3319 = vadd.xlane.f32.xlu0 %v3303_v5  ;;  %v4772_v40 = vpop.f32.mrf.mxu0  ;;  %v3225_v8 = vadd.f32 %v6979_v54, %v3204_v58  ;;  %v2943_v48 = vadd.f32 %v4713_v27, %v4654_v19 }
 0x4a2   : > { %v2937_v1 = vpop.f32.mrf.mxu1  ;;  %v3305_v26 = vmul.f32 %v6991_v17, %v6991_v17 }
 0x4a3   : > { %3257 = vadd.xlane.f32.xlu1 %v6989_v50  ;;  %v3142_v12 = vpop.f32.mrf.mxu0  ;;  %v3224_v49 = vadd.f32 %v6979_v54, %v3203_v43  ;;  %v2938_v4 = vadd.f32 %v2937_v1, %v2784_v35  ;;  %v3304_v44 = vmul.f32 %v6989_v50, %v6989_v50  ;;  %v7003_v59 = vmax.f32 %v3225_v8, 0.0  ;;  %v3548_v8 = vld [vmem:[%s7330_s8 + $0x68] sm:$0xff] }
 0x4a4   : > { %v4716_v10 = vpop.f32.mrf.mxu1  ;;  %v3206_v39 = vadd.f32 %v4772_v40, %v2943_v48 }
 0x4a5   : > { %3259 = vadd.xlane.f32.xlu0 %v6991_v17  ;;  %v4775_v13 = vpop.f32.mrf.mxu0  ;;  %v7001_v56 = vmax.f32 %v3224_v49, 0.0  ;;  %v3205_v11 = vadd.f32 %v3142_v12, %v2938_v4  ;;  %v2953_v61 = vadd.f32 %v4716_v10, %v6958_v25  ;;  %v3307_v30 = vmul.f32 %v7003_v59, %v7003_v59  ;;  %v3550_v12 = vld [vmem:[%s7330_s8 + $0x78] sm:$0xff]  ;;  %v3549_v10 = vld [vmem:[%s7330_s8 + $0x70] sm:$0xff] }
 0x4a6   : > { %v2947_v2 = vpop.f32.mrf.mxu1  ;;  %v3227_v7 = vadd.f32 %v6979_v54, %v3206_v39  ;;  %4788 = vmatprep.subr.mxu1 %v3550_v12 }
 0x4a7   : > { %3321 = vadd.xlane.f32.xlu1 %v3304_v44  ;;  %v3152_v57 = vpop.f32.mrf.mxu0  ;;  %v3226_v19 = vadd.f32 %v6979_v54, %v3205_v11  ;;  %v2948_v63 = vadd.f32 %v2947_v2, %v6960_v55  ;;  %v3306_v31 = vmul.f32 %v7001_v56, %v7001_v56  ;;  %v3208_v58 = vadd.f32 %v4775_v13, %v2953_v61 }
 0x4a8   : > { %v4719_v16 = vpop.f32.mrf.mxu1  ;;  %v7023_v1 = vmax.f32 %v3227_v7, 0.0  ;;  %4789 = vmatpush3.msra.mxu1 %v3550_v12 }
 0x4a9   : > { %3323 = vadd.xlane.f32.xlu0 %v3305_v26  ;;  %v4778_v35 = vpop.f32.mrf.mxu0  ;;  %v7019_v55 = vmax.f32 %v3226_v19, 0.0  ;;  %v3207_v27 = vadd.f32 %v3152_v57, %v2948_v63  ;;  %4790 = vmatprep.subr.mxu1 %v3549_v10  ;;  %v3229_v48 = vadd.f32 %v6979_v54, %v3208_v58  ;;  %v2963_v57 = vadd.f32 %v4719_v16, %v6962_v24  ;;  %v3546_v24 = vld [vmem:[%s7330_s8 + $0x58] sm:$0xff]  ;;  %v3545_v16 = vld [vmem:[%s7330_s8 + $0x50] sm:$0xff] }
 0x4aa   : > { %v2957_v36 = vpop.f32.mrf.mxu1  ;;  %4791 = vmatpush3.msra.mxu1 %v3549_v10  ;;  %v3541_v10 = vld [vmem:[%s7330_s8 + $0x30] sm:$0xff] }
 0x4ab   : > { %3261 = vadd.xlane.f32.xlu1 %v7001_v56  ;;  %v3162_v28 = vpop.f32.mrf.mxu0  ;;  %v3228_v4 = vadd.f32 %v6979_v54, %v3207_v27  ;;  %v2958_v44 = vadd.f32 %v2957_v36, %v6964_v42  ;;  %v3308_v2 = vmul.f32 %v7019_v55, %v7019_v55  ;;  %v3309_v42 = vmul.f32 %v7023_v1, %v7023_v1  ;;  %v3547_v36 = vld [vmem:[%s7330_s8 + $0x60] sm:$0xff] }
 0x4ac   : > { %v4722_v46 = vpop.f32.mrf.mxu1  ;;  %4792 = vmatprep.subr.mxu1 %v3548_v8  ;;  %v7051_v39 = vmax.f32 %v3229_v48, 0.0  ;;  %v3210_v19 = vadd.f32 %v4778_v35, %v2963_v57 }
 0x4ad   : > { %3263 = vadd.xlane.f32.xlu0 %v7003_v59  ;;  %v7009_v29 = vpop.f32.mrf.mxu0  ;;  %v7046_v26 = vmax.f32 %v3228_v4, 0.0  ;;  %v3209_v11 = vadd.f32 %v3162_v28, %v2958_v44  ;;  %4793 = vmatpush3.msra.mxu1 %v3548_v8  ;;  %v2973_v7 = vadd.f32 %v4722_v46, %v6966_v53  ;;  %v3543_v53 = vld [vmem:[%s7330_s8 + $0x40] sm:$0xff]  ;;  %v3542_v46 = vld [vmem:[%s7330_s8 + $0x38] sm:$0xff] }
 0x4ae   : > { %v2967_v15 = vpop.f32.mrf.mxu1  ;;  %4794 = vmatprep.subr.mxu1 %v3547_v36  ;;  %v3311_v61 = vmul.f32 %v7051_v39, %v7051_v39 }
 0x4af   : > { %3325 = vadd.xlane.f32.xlu1 %v3306_v31  ;;  %v3172_v47 = vpop.f32.mrf.mxu0  ;;  %4795 = vmatpush3.msra.mxu1 %v3547_v36  ;;  %v3230_v28 = vadd.f32 %v6979_v54, %v3209_v11  ;;  %v2968_v63 = vadd.f32 %v2967_v15, %v6968_v9  ;;  %v3310_v35 = vmul.f32 %v7046_v26, %v7046_v26  ;;  %v3544_v9 = vld [vmem:[%s7330_s8 + $0x48] sm:$0xff] }
 0x4b0   : > { %v7017_v5 = vpop.f32.mrf.mxu1  ;;  %4796 = vmatprep.subr.mxu1 %v3546_v24  ;;  %v3231_v31 = vadd.f32 %v6979_v54, %v3210_v19  ;;  %v3212_v58 = vadd.f32 %v7009_v29, %v2973_v7  ;;  %v3537_v19 = vld [vmem:[%s7330_s8 + $0x10] sm:$0xff] }
 0x4b1   : > { %3327 = vadd.xlane.f32.xlu0 %v3307_v30  ;;  %v7021_v43 = vpop.f32.mrf.mxu0  ;;  %4797 = vmatpush3.msra.mxu1 %v3546_v24  ;;  %v7069_v30 = vmax.f32 %v3230_v28, 0.0  ;;  %v3211_v27 = vadd.f32 %v3172_v47, %v2968_v63  ;;  %v2983_v4 = vadd.f32 %v7017_v5, %v6970_v62  ;;  %v3539_v5 = vld [vmem:[%s7330_s8 + $0x20] sm:$0xff] }
 0x4b2   : > { %v2977_v40 = vpop.f32.mrf.mxu1  ;;  %4798 = vmatprep.subr.mxu1 %v3545_v16  ;;  %v7074_v15 = vmax.f32 %v3231_v31, 0.0  ;;  %v3535_v63 = vld [vmem:[%s7330_s8] sm:$0xff] }
 0x4b3   : > { %3265 = vadd.xlane.f32.xlu1 %v7019_v55  ;;  %v7026_v25 = vpop.f32.mrf.mxu0  ;;  %4799 = vmatpush3.msra.mxu1 %v3545_v16  ;;  %v3232_v47 = vadd.f32 %v6979_v54, %v3211_v27  ;;  %v2978_v12 = vadd.f32 %v2977_v40, %v6972_v22  ;;  %v3312_v29 = vmul.f32 %v7069_v30, %v7069_v30  ;;  %v3536_v16 = vld [vmem:[%s7330_s8 + $0x8] sm:$0xff] }
 0x4b4   : > { %v4728_v49 = vpop.f32.mrf.mxu1  ;;  %4800 = vmatprep.subr.mxu1 %v3544_v9  ;;  %v3313_v22 = vmul.f32 %v7074_v15, %v7074_v15  ;;  %v3214_v62 = vadd.f32 %v7021_v43, %v2983_v4 }
 0x4b5   : > { %3267 = vadd.xlane.f32.xlu0 %v7023_v1  ;;  %v4787_v13 = vpop.f32.mrf.mxu0  ;;  %4801 = vmatpush3.msra.mxu1 %v3544_v9  ;;  %v3233_v49 = vadd.f32 %v6979_v54, %v3212_v58  ;;  %v7097_v40 = vmax.f32 %v3232_v47, 0.0  ;;  %v3213_v44 = vadd.f32 %v7026_v25, %v2978_v12  ;;  %v3538_v25 = vld [vmem:[%s7330_s8 + $0x18] sm:$0xff] }
 0x4b6   : > { %4802 = vmatprep.subr.mxu1 %v3543_v53  ;;  %v3540_v13 = vld [vmem:[%s7330_s8 + $0x28] sm:$0xff]  ;;  %v3235_v11 = vadd.f32 %v6979_v54, %v3214_v62 }
 0x4b7   : > { %3329 = vadd.xlane.f32.xlu1 %v3308_v2  ;;  %4803 = vmatpush3.msra.mxu1 %v3543_v53  ;;  %v2987_v2 = vpop.f32.mrf.mxu1  ;;  %v7103_v8 = vmax.f32 %v3233_v49, 0.0  ;;  %v3234_v48 = vadd.f32 %v6979_v54, %v3213_v44  ;;  %v3314_v43 = vmul.f32 %v7097_v40, %v7097_v40 }
 0x4b8   : > { %4804 = vmatprep.subr.mxu1 %v3542_v46  ;;  %v2988_v57 = vadd.f32 %v2987_v2, %v6974_v34  ;;  %v7129_v28 = vmax.f32 %v3235_v11, 0.0 }
 0x4b9   : > { %3331 = vadd.xlane.f32.xlu0 %v3309_v42  ;;  %4805 = vmatpush3.msra.mxu1 %v3542_v46  ;;  %v3192_v42 = vpop.f32.mrf.mxu0  ;;  %v3315_v36 = vmul.f32 %v7103_v8, %v7103_v8  ;;  %v7124_v34 = vmax.f32 %v3234_v48, 0.0 }
 0x4ba   : > { %4806 = vmatprep.subr.mxu1 %v3541_v10  ;;  %v3215_v24 = vadd.f32 %v3192_v42, %v2988_v57  ;;  %v3317_v7 = vmul.f32 %v7129_v28, %v7129_v28 }
 0x4bb   : > { %3269 = vadd.xlane.f32.xlu1 %v7046_v26  ;;  %4807 = vmatpush3.msra.mxu1 %v3541_v10  ;;  %v3316_v31 = vmul.f32 %v7124_v34, %v7124_v34 }
 0x4bc   : > { %4808 = vmatprep.subr.mxu1 %v3540_v13 }
 0x4bd   : > { %3271 = vadd.xlane.f32.xlu0 %v7051_v39  ;;  %4809 = vmatpush3.msra.mxu1 %v3540_v13 }
 0x4be   : > { %4810 = vmatprep.subr.mxu1 %v3539_v5 }
 0x4bf   : > { %3333 = vadd.xlane.f32.xlu1 %v3310_v35  ;;  %4811 = vmatpush3.msra.mxu1 %v3539_v5  ;;  %v3236_v35 = vadd.f32 %v6979_v54, %v3215_v24 }
 0x4c0   : > { %4812 = vmatprep.subr.mxu1 %v3538_v25 }
 0x4c1   : > { %3335 = vadd.xlane.f32.xlu0 %v3311_v61  ;;  %4813 = vmatpush3.msra.mxu1 %v3538_v25  ;;  %v7141_v61 = vmax.f32 %v3236_v35, 0.0 }
 0x4c2   : > { %4814 = vmatprep.subr.mxu1 %v3537_v19 }
 0x4c3   : > { %3273 = vadd.xlane.f32.xlu1 %v7069_v30  ;;  %4815 = vmatpush3.msra.mxu1 %v3537_v19  ;;  %v3318_v27 = vmul.f32 %v7141_v61, %v7141_v61 }
 0x4c4   : > { %4816 = vmatprep.subr.mxu1 %v3536_v16 }
 0x4c5   : > { %3275 = vadd.xlane.f32.xlu0 %v7074_v15  ;;  %4817 = vmatpush3.msra.mxu1 %v3536_v16 }
 0x4c6   : > { %4818 = vmatprep.subr.mxu1 %v3535_v63 }
 0x4c7   : > { %3337 = vadd.xlane.f32.xlu1 %v3312_v29  ;;  %4819 = vmatpush3.msra.mxu1 %v3535_v63 }
 0x4c9   : > { %3339 = vadd.xlane.f32.xlu0 %v3313_v22 }
 0x4cb   : > { %3277 = vadd.xlane.f32.xlu1 %v7097_v40 }
 0x4cd   : > { %3279 = vadd.xlane.f32.xlu0 %v7103_v8 }
 0x4cf   : > { %3341 = vadd.xlane.f32.xlu1 %v3314_v43 }
 0x4d1   : > { %3343 = vadd.xlane.f32.xlu0 %v3315_v36 }
 0x4d3   : > { %3281 = vadd.xlane.f32.xlu1 %v7124_v34 }
 0x4d5   : > { %3283 = vadd.xlane.f32.xlu0 %v7129_v28 }
 0x4d7   : > { %3345 = vadd.xlane.f32.xlu1 %v3316_v31 }
 0x4d9   : > { %3347 = vadd.xlane.f32.xlu0 %v3317_v7 }
 0x4db   : > { %3285 = vadd.xlane.f32.xlu1 %v7141_v61 }
 0x4df   : > { %3349 = vadd.xlane.f32.xlu1 %v3318_v27 }
 0x526   : > { %v3256_v54 = vpop.xlane.xlu0 %3255 }
 0x527   : > { %v3287_v9 = vmul.f32 0.0625, %v3256_v54 }
 0x529   : > { %v3367_v53 = vmul.f32 %v3287_v9, %v3287_v9 }
 0x52a   : > { %v3320_v58 = vpop.xlane.xlu0 %3319 }
 0x52b   : > { %v3351_v46 = vmul.f32 0.0625, %v3320_v58 }
 0x52c   : > { %v3258_v47 = vpop.xlane.xlu1 %3257 }
 0x52d   : > { %v3383_v12 = vsub.f32 %v3351_v46, %v3367_v53  ;;  %v7146_v29 = vmul.f32 0.0625, %v3258_v47 }
 0x52e   : > { %v3260_v10 = vpop.xlane.xlu0 %3259 }
 0x52f   : > { %v3399_v49 = vmax.f32 %v3383_v12, 0.0  ;;  %v7148_v4 = vmul.f32 0.0625, %v3260_v10  ;;  %v3368_v13 = vmul.f32 %v7146_v29, %v7146_v29 }
 0x530   : > { %v3322_v22 = vpop.xlane.xlu1 %3321 }
 0x531   : > { %v3431_v44 = vadd.f32 1e-05, %v3399_v49  ;;  %v3352_v2 = vmul.f32 0.0625, %v3322_v22  ;;  %v3369_v5 = vmul.f32 %v7148_v4, %v7148_v4  ;;  %v3415_v22 = vsub.f32 %v6982_v38, %v3287_v9 }
 0x532   : > { %v3324_v62 = vpop.xlane.xlu0 %3323 }
 0x533   : > { %4942 = vrsqrt.f32 %v3431_v44  ;;  %v3384_v25 = vsub.f32 %v3352_v2, %v3368_v13  ;;  %v3353_v48 = vmul.f32 0.0625, %v3324_v62 }
 0x534   : > { %v3262_v57 = vpop.xlane.xlu1 %3261 }
 0x535   : > { %v3400_v43 = vmax.f32 %v3384_v25, 0.0  ;;  %v3385_v42 = vsub.f32 %v3353_v48, %v3369_v5  ;;  %v7154_v11 = vmul.f32 0.0625, %v3262_v57  ;;  %v7172_v48 = vld [vmem:[%s7331_s9 + $0x7] ss:$0 sm:$0xff] }
 0x536   : > { %v3264_v36 = vpop.xlane.xlu0 %3263 }
 0x537   : > { %v3432_v19 = vadd.f32 1e-05, %v3400_v43  ;;  %v3401_v24 = vmax.f32 %v3385_v42, 0.0  ;;  %v7156_v16 = vmul.f32 0.0625, %v3264_v36  ;;  %v3370_v31 = vmul.f32 %v7154_v11, %v7154_v11  ;;  %v7179_v36 = vld [vmem:[%s7331_s9 + $0x8] ss:$0 sm:$0xff] }
 0x538   : > { %v3326_v63 = vpop.xlane.xlu1 %3325 }
 0x539   : > { %4944 = vrsqrt.f32 %v3432_v19  ;;  %v3433_v35 = vadd.f32 1e-05, %v3401_v24  ;;  %v3354_v7 = vmul.f32 0.0625, %v3326_v63  ;;  %v3371_v54 = vmul.f32 %v7156_v16, %v7156_v16 }
 0x53a   : > { %v3328_v27 = vpop.xlane.xlu0 %3327 }
 0x53b   : > { %4946 = vrsqrt.f32 %v3433_v35  ;;  %v3386_v58 = vsub.f32 %v3354_v7, %v3370_v31  ;;  %v3355_v53 = vmul.f32 0.0625, %v3328_v27 }
 0x53c   : > { %v3266_v46 = vpop.xlane.xlu1 %3265 }
 0x53d   : > { %v3402_v47 = vmax.f32 %v3386_v58, 0.0  ;;  %v3387_v12 = vsub.f32 %v3355_v53, %v3371_v54  ;;  %v7162_v10 = vmul.f32 0.0625, %v3266_v46  ;;  %v3416_v53 = vsub.f32 %v6989_v50, %v7146_v29 }
 0x53e   : > { %v3268_v49 = vpop.xlane.xlu0 %3267 }
 0x53f   : > { %v3434_v44 = vadd.f32 1e-05, %v3402_v47  ;;  %v3403_v13 = vmax.f32 %v3387_v12, 0.0  ;;  %v3372_v62 = vmul.f32 %v7162_v10, %v7162_v10  ;;  %v7167_v5 = vmul.f32 0.0625, %v3268_v49 }
 0x540   : > { %v4943_v2 = vpop.eup %4942  ;;  %v3330_v25 = vpop.xlane.xlu1 %3329  ;;  %v3417_v47 = vsub.f32 %v6991_v17, %v7148_v4 }
 0x541   : > { %4948 = vrsqrt.f32 %v3434_v44  ;;  %v3435_v57 = vadd.f32 1e-05, %v3403_v13  ;;  %v3356_v43 = vmul.f32 0.0625, %v3330_v25  ;;  %v3463_v42 = vmul.f32 %v4943_v2, %v3415_v22 }
 0x542   : > { %v3373_v38 = vmul.f32 %v7167_v5, %v7167_v5  ;;  %v3332_v9 = vpop.xlane.xlu0 %3331 }
 0x543   : > { %4950 = vrsqrt.f32 %v3435_v57  ;;  %v3388_v19 = vsub.f32 %v3356_v43, %v3372_v62  ;;  %v3357_v24 = vmul.f32 0.0625, %v3332_v9  ;;  %v3483_v63 = vmul.f32 %v7172_v48, %v3463_v42 }
 0x544   : > { %v3270_v35 = vpop.xlane.xlu1 %3269 }
 0x545   : > { %v3404_v31 = vmax.f32 %v3388_v19, 0.0  ;;  %v3389_v7 = vsub.f32 %v3357_v24, %v3373_v38  ;;  %v7182_v27 = vmul.f32 0.0625, %v3270_v35  ;;  %v3503_v54 = vadd.f32 %v7179_v36, %v3483_v63 }
 0x546   : > { %v4945_v58 = vpop.eup %4944  ;;  %v3272_v46 = vpop.xlane.xlu0 %3271 }
 0x547   : > { %v3436_v12 = vadd.f32 1e-05, %v3404_v31  ;;  %v3405_v49 = vmax.f32 %v3389_v7, 0.0  ;;  %v3374_v44 = vmul.f32 %v7182_v27, %v7182_v27  ;;  %v7191_v13 = vmul.f32 0.0625, %v3272_v46 }
 0x548   : > { %v4947_v22 = vpop.eup %4946  ;;  %v3334_v2 = vpop.xlane.xlu1 %3333  ;;  %v3519_v62 = vmul.f32 %v5215_v45, %v3503_v54  ;;  %v3464_v25 = vmul.f32 %v4945_v58, %v3416_v53  ;;  %v3418_v58 = vsub.f32 %v7001_v56, %v7154_v11 }
 0x549   : > { %4952 = vrsqrt.f32 %v3436_v12  ;;  %v3437_v57 = vadd.f32 1e-05, %v3405_v49  ;;  %v3358_v43 = vmul.f32 0.0625, %v3334_v2  ;;  %v3465_v50 = vmul.f32 %v4947_v22, %v3417_v47 }
 0x54a   : > { %v3375_v29 = vmul.f32 %v7191_v13, %v7191_v13  ;;  %4820 = vmatprep.mubr.f32.mxu1 %v3519_v62  ;;  %v3336_v17 = vpop.xlane.xlu0 %3335  ;;  %v3484_v4 = vmul.f32 %v7172_v48, %v3464_v25  ;;  %v3419_v47 = vsub.f32 %v7003_v59, %v7156_v16 }
 0x54b   : > { %4954 = vrsqrt.f32 %v3437_v57  ;;  %v3390_v42 = vsub.f32 %v3358_v43, %v3374_v44  ;;  %v3359_v38 = vmul.f32 0.0625, %v3336_v17  ;;  %v3485_v9 = vmul.f32 %v7172_v48, %v3465_v50 }
 0x54c   : > { %v3274_v19 = vpop.xlane.xlu1 %3273  ;;  %v3504_v24 = vadd.f32 %v7179_v36, %v3484_v4 }
 0x54d   : > { %v3406_v63 = vmax.f32 %v3390_v42, 0.0  ;;  %v3391_v35 = vsub.f32 %v3359_v38, %v3375_v29  ;;  %v7199_v31 = vmul.f32 0.0625, %v3274_v19  ;;  %v3505_v7 = vadd.f32 %v7179_v36, %v3485_v9 }
 0x54e   : > { %v4949_v54 = vpop.eup %4948  ;;  %v3276_v53 = vpop.xlane.xlu0 %3275  ;;  %v3520_v46 = vmul.f32 %v5229_v52, %v3504_v24 }
 0x54f   : > { %v3438_v12 = vadd.f32 1e-05, %v3406_v63  ;;  %v3407_v49 = vmax.f32 %v3391_v35, 0.0  ;;  %v3376_v44 = vmul.f32 %v7199_v31, %v7199_v31  ;;  %v7209_v2 = vmul.f32 0.0625, %v3276_v53 }
 0x550   : > { %v4951_v22 = vpop.eup %4950  ;;  %4821 = vmatmul.mubr.f32.vlgmr.msra.gmra.mxu1 %v3520_v46  ;;  %v3338_v62 = vpop.xlane.xlu1 %3337  ;;  %v3521_v25 = vmul.f32 %v5263_v3, %v3505_v7  ;;  %v3466_v57 = vmul.f32 %v4949_v54, %v3418_v58  ;;  %v3420_v7 = vsub.f32 %v7019_v55, %v7162_v10  ;;  %v3421_v53 = vsub.f32 %v7023_v1, %v7167_v5 }
 0x551   : > { %4956 = vrsqrt.f32 %v3438_v12  ;;  %v3439_v56 = vadd.f32 1e-05, %v3407_v49  ;;  %v3360_v11 = vmul.f32 0.0625, %v3338_v62  ;;  %v3467_v43 = vmul.f32 %v4951_v22, %v3419_v47 }
 0x552   : > { %v3377_v59 = vmul.f32 %v7209_v2, %v7209_v2  ;;  %4823 = vmatprep.mubr.f32.mxu1 %v3521_v25  ;;  %v3340_v16 = vpop.xlane.xlu0 %3339  ;;  %v3486_v50 = vmul.f32 %v7172_v48, %v3466_v57 }
 0x553   : > { %4958 = vrsqrt.f32 %v3439_v56  ;;  %v3392_v29 = vsub.f32 %v3360_v11, %v3376_v44  ;;  %v3361_v17 = vmul.f32 0.0625, %v3340_v16  ;;  %v3487_v4 = vmul.f32 %v7172_v48, %v3467_v43 }
 0x554   : > { %v3278_v42 = vpop.xlane.xlu1 %3277  ;;  %v3506_v38 = vadd.f32 %v7179_v36, %v3486_v50 }
 0x555   : > { %v3408_v9 = vmax.f32 %v3392_v29, 0.0  ;;  %v3393_v19 = vsub.f32 %v3361_v17, %v3377_v59  ;;  %v7217_v24 = vmul.f32 0.0625, %v3278_v42  ;;  %v3507_v63 = vadd.f32 %v7179_v36, %v3487_v4 }
 0x556   : > { %v4953_v35 = vpop.eup %4952  ;;  %v3280_v54 = vpop.xlane.xlu0 %3279  ;;  %v3522_v58 = vmul.f32 %v5281_v14, %v3506_v38 }
 0x557   : > { %v3440_v46 = vadd.f32 1e-05, %v3408_v9  ;;  %v3409_v47 = vmax.f32 %v3393_v19, 0.0  ;;  %v3378_v49 = vmul.f32 %v7217_v24, %v7217_v24  ;;  %v7227_v22 = vmul.f32 0.0625, %v3280_v54 }
 0x558   : > { %v4955_v12 = vpop.eup %4954  ;;  %4824 = vmatmul.mubr.f32.gmra.mxu1 %v3522_v58  ;;  %v3342_v44 = vpop.xlane.xlu1 %3341  ;;  %v3523_v62 = vmul.f32 %v5299_v21, %v3507_v63  ;;  %v3468_v25 = vmul.f32 %v4953_v35, %v3420_v7  ;;  %v3422_v9 = vsub.f32 %v7046_v26, %v7182_v27  ;;  %v3423_v35 = vsub.f32 %v7051_v39, %v7191_v13 }
 0x559   : > { %4960 = vrsqrt.f32 %v3440_v46  ;;  %v3441_v55 = vadd.f32 1e-05, %v3409_v47  ;;  %v3362_v10 = vmul.f32 0.0625, %v3342_v44  ;;  %v3469_v57 = vmul.f32 %v4955_v12, %v3421_v53 }
 0x55a   : > { %v3379_v1 = vmul.f32 %v7227_v22, %v7227_v22  ;;  %4826 = vmatprep.mubr.f32.mxu1 %v3523_v62  ;;  %v3344_v5 = vpop.xlane.xlu0 %3343  ;;  %v3488_v56 = vmul.f32 %v7172_v48, %v3468_v25 }
 0x55b   : > { %4962 = vrsqrt.f32 %v3441_v55  ;;  %v3394_v11 = vsub.f32 %v3362_v10, %v3378_v49  ;;  %v3363_v43 = vmul.f32 0.0625, %v3344_v5  ;;  %v3489_v59 = vmul.f32 %v7172_v48, %v3469_v57 }
 0x55c   : > { %v3282_v16 = vpop.xlane.xlu1 %3281  ;;  %v3508_v50 = vadd.f32 %v7179_v36, %v3488_v56 }
 0x55d   : > { %v3410_v29 = vmax.f32 %v3394_v11, 0.0  ;;  %v3395_v17 = vsub.f32 %v3363_v43, %v3379_v1  ;;  %v7235_v4 = vmul.f32 0.0625, %v3282_v16  ;;  %v3509_v42 = vadd.f32 %v7179_v36, %v3489_v59 }
 0x55e   : > { %v4957_v38 = vpop.eup %4956  ;;  %v3284_v19 = vpop.xlane.xlu0 %3283  ;;  %v3524_v63 = vmul.f32 %v5318_v32, %v3508_v50  ;;  %v3424_v16 = vsub.f32 %v7069_v30, %v7199_v31 }
 0x55f   : > { %v3442_v7 = vadd.f32 1e-05, %v3410_v29  ;;  %v3411_v54 = vmax.f32 %v3395_v17, 0.0  ;;  %v3380_v53 = vmul.f32 %v7235_v4, %v7235_v4  ;;  %v7245_v46 = vmul.f32 0.0625, %v3284_v19 }
 0x560   : > { %v4959_v58 = vpop.eup %4958  ;;  %4827 = vmatmul.mubr.f32.gmra.mxu1 %v3524_v63  ;;  %v3346_v47 = vpop.xlane.xlu1 %3345  ;;  %v3525_v12 = vmul.f32 %v5338_v41, %v3509_v42  ;;  %v3470_v49 = vmul.f32 %v4957_v38, %v3422_v9  ;;  %v3425_v29 = vsub.f32 %v7074_v15, %v7209_v2 }
 0x561   : > { %4964 = vrsqrt.f32 %v3442_v7  ;;  %v3443_v26 = vadd.f32 1e-05, %v3411_v54  ;;  %v3364_v27 = vmul.f32 0.0625, %v3346_v47  ;;  %v3471_v44 = vmul.f32 %v4959_v58, %v3423_v35 }
 0x562   : > { %v3381_v39 = vmul.f32 %v7245_v46, %v7245_v46  ;;  %4829 = vmatprep.mubr.f32.mxu1 %v3525_v12  ;;  %v3348_v13 = vpop.xlane.xlu0 %3347  ;;  %v3490_v62 = vmul.f32 %v7172_v48, %v3470_v49 }
 0x563   : > { %4966 = vrsqrt.f32 %v3443_v26  ;;  %v3396_v25 = vsub.f32 %v3364_v27, %v3380_v53  ;;  %v3365_v55 = vmul.f32 0.0625, %v3348_v13  ;;  %v3491_v10 = vmul.f32 %v7172_v48, %v3471_v44 }
 0x564   : > { %v3286_v57 = vpop.xlane.xlu1 %3285  ;;  %v3510_v1 = vadd.f32 %v7179_v36, %v3490_v62  ;;  %v3426_v53 = vsub.f32 %v7097_v40, %v7217_v24  ;;  %v3427_v27 = vsub.f32 %v7103_v8, %v7227_v22 }
 0x565   : > { %v3412_v5 = vmax.f32 %v3396_v25, 0.0  ;;  %v3397_v56 = vsub.f32 %v3365_v55, %v3381_v39  ;;  %v3302_v11 = vmul.f32 0.0625, %v3286_v57  ;;  %v3511_v43 = vadd.f32 %v7179_v36, %v3491_v10 }
 0x566   : > { %v4961_v59 = vpop.eup %4960  ;;  %v3526_v50 = vmul.f32 %v5354_v51, %v3510_v1  ;;  %v3428_v10 = vsub.f32 %v7124_v34, %v7235_v4  ;;  %v3429_v1 = vsub.f32 %v7129_v28, %v7245_v46 }
 0x567   : > { %v3444_v17 = vadd.f32 1e-05, %v3412_v5  ;;  %v3413_v42 = vmax.f32 %v3397_v56, 0.0  ;;  %v3382_v9 = vmul.f32 %v3302_v11, %v3302_v11  ;;  %v3527_v63 = vmul.f32 %v5369_v0, %v3511_v43 }
 0x568   : > { %v4963_v38 = vpop.eup %4962  ;;  %4830 = vmatmul.mubr.f32.gmra.mxu1 %v3526_v50  ;;  %v3350_v19 = vpop.xlane.xlu1 %3349  ;;  %v3472_v35 = vmul.f32 %v4961_v59, %v3424_v16  ;;  %v3430_v4 = vsub.f32 %v7141_v61, %v3302_v11  ;;  %v3911_v61 = vld [vmem:[%s7331_s9 + $0x9] ss:$0 sm:$0xff] }
 0x569   : > { %4968 = vrsqrt.f32 %v3444_v17  ;;  %v3445_v7 = vadd.f32 1e-05, %v3413_v42  ;;  %v3366_v54 = vmul.f32 0.0625, %v3350_v19  ;;  %v3473_v58 = vmul.f32 %v4963_v38, %v3425_v29  ;;  %4832 = vmatprep.mubr.f32.mxu1 %v3527_v63 }
 0x56a   : > { %v3492_v30 = vmul.f32 %v7172_v48, %v3472_v35 }
 0x56b   : > { %4970 = vrsqrt.f32 %v3445_v7  ;;  %v3398_v31 = vsub.f32 %v3366_v54, %v3382_v9  ;;  %v3493_v15 = vmul.f32 %v7172_v48, %v3473_v58 }
 0x56c   : > { %v3512_v2 = vadd.f32 %v7179_v36, %v3492_v30 }
 0x56d   : > { %v3414_v47 = vmax.f32 %v3398_v31, 0.0  ;;  %v3513_v12 = vadd.f32 %v7179_v36, %v3493_v15 }
 0x56e   : > { %v4965_v49 = vpop.eup %4964  ;;  %v3528_v26 = vmul.f32 %v5399_v20, %v3512_v2 }
 0x56f   : > { %v3446_v44 = vadd.f32 1e-05, %v3414_v47  ;;  %v3529_v39 = vmul.f32 %v5415_v33, %v3513_v12  ;;  %v3474_v13 = vmul.f32 %v4965_v49, %v3426_v53 }
 0x570   : > { %v4967_v62 = vpop.eup %4966  ;;  %4833 = vmatmul.mubr.f32.gmra.mxu1 %v3528_v26 }
 0x571   : > { %4972 = vrsqrt.f32 %v3446_v44  ;;  %4835 = vmatprep.mubr.f32.mxu1 %v3529_v39  ;;  %v3494_v25 = vmul.f32 %v7172_v48, %v3474_v13  ;;  %v3475_v40 = vmul.f32 %v4967_v62, %v3427_v27 }
 0x573   : > { %v3514_v24 = vadd.f32 %v7179_v36, %v3494_v25  ;;  %v3495_v55 = vmul.f32 %v7172_v48, %v3475_v40 }
 0x575   : > { %v3530_v8 = vmul.f32 %v5426_v37, %v3514_v24  ;;  %v3515_v22 = vadd.f32 %v7179_v36, %v3495_v55 }
 0x576   : > { %v4969_v57 = vpop.eup %4968 }
 0x577   : > { %4836 = vmatmul.mubr.f32.gmra.mxu1 %v3530_v8  ;;  %v3531_v5 = vmul.f32 %v5451_v60, %v3515_v22  ;;  %v3476_v56 = vmul.f32 %v4969_v57, %v3428_v10 }
 0x578   : > { %v4971_v43 = vpop.eup %4970 }
 0x579   : > { %4838 = vmatprep.mubr.f32.mxu1 %v3531_v5  ;;  %v3496_v59 = vmul.f32 %v7172_v48, %v3476_v56  ;;  %v3477_v16 = vmul.f32 %v4971_v43, %v3429_v1 }
 0x57b   : > { %v3516_v50 = vadd.f32 %v7179_v36, %v3496_v59  ;;  %v3497_v34 = vmul.f32 %v7172_v48, %v3477_v16 }
 0x57d   : > { %v3532_v29 = vmul.f32 %v5468_v6, %v3516_v50  ;;  %v3517_v17 = vadd.f32 %v7179_v36, %v3497_v34 }
 0x57e   : > { %v4973_v28 = vpop.eup %4972 }
 0x57f   : > { %4839 = vmatmul.mubr.f32.gmra.mxu1 %v3532_v29  ;;  %v3533_v46 = vmul.f32 %v5485_v18, %v3517_v17  ;;  %v3478_v42 = vmul.f32 %v4973_v28, %v3430_v4 }
 0x581   : > { %4841 = vmatprep.mubr.f32.mxu1 %v3533_v46  ;;  %v3498_v38 = vmul.f32 %v7172_v48, %v3478_v42 }
 0x583   : > { %v3518_v9 = vadd.f32 %v7179_v36, %v3498_v38 }
 0x585   : > { %v3534_v19 = vmul.f32 %v5498_v23, %v3518_v9 }
 0x587   : > { %4842 = vmatmul.mubr.f32.gmra.mxu1 %v3534_v19 }
 0x610   : > { %v4822_v63 = vpop.f32.mrf.mxu1 }
 0x611   : > { %v3628_v7 = vadd.f32 %v4822_v63, %v3911_v61 }
 0x612   : > { %v3622_v11 = vpop.f32.mrf.mxu1 }
 0x613   : > { %v3623_v35 = vadd.f32 %v3911_v61, %v3622_v11  ;;  %v3702_v30 = vmul.f32 %v5229_v52, %v3628_v7 }
 0x615   : > { %v3701_v54 = vmul.f32 %v5215_v45, %v3623_v35 }
 0x617   : > { %3717 = vxpose.xlu0.b32.start [1/16] (narrow) %v3701_v54, 8 }
 0x618   : > { %v4825_v58 = vpop.f32.mrf.mxu1 }
 0x619   : > { %v3638_v36 = vadd.f32 %v4825_v58, %v3911_v61 }
 0x61a   : > { %v3632_v48 = vpop.f32.mrf.mxu1 }
 0x61b   : > { %v3633_v31 = vadd.f32 %v3911_v61, %v3632_v48  ;;  %3718 = vxpose.xlu0.b32.cont [2/16] (narrow) %v3702_v30, 8  ;;  %v3704_v53 = vmul.f32 %v5281_v14, %v3638_v36 }
 0x61d   : > { %v3703_v15 = vmul.f32 %v5263_v3, %v3633_v31 }
 0x61f   : > { %3719 = vxpose.xlu0.b32.cont [3/16] (narrow) %v3703_v15, 8 }
 0x620   : > { %v4828_v2 = vpop.f32.mrf.mxu1 }
 0x621   : > { %v3648_v49 = vadd.f32 %v4828_v2, %v3911_v61 }
 0x622   : > { %v3642_v47 = vpop.f32.mrf.mxu1 }
 0x623   : > { %v3643_v12 = vadd.f32 %v3911_v61, %v3642_v47  ;;  %3720 = vxpose.xlu0.b32.cont [4/16] (narrow) %v3704_v53, 8  ;;  %v3706_v52 = vmul.f32 %v5318_v32, %v3648_v49 }
 0x625   : > { %v3705_v45 = vmul.f32 %v5299_v21, %v3643_v12 }
 0x627   : > { %3721 = vxpose.xlu0.b32.cont [5/16] (narrow) %v3705_v45, 8 }
 0x628   : > { %v4831_v26 = vpop.f32.mrf.mxu1 }
 0x629   : > { %v3658_v39 = vadd.f32 %v4831_v26, %v3911_v61 }
 0x62a   : > { %v3652_v27 = vpop.f32.mrf.mxu1 }
 0x62b   : > { %v3653_v44 = vadd.f32 %v3911_v61, %v3652_v27  ;;  %3722 = vxpose.xlu0.b32.cont [6/16] (narrow) %v3706_v52, 8  ;;  %v3708_v14 = vmul.f32 %v5354_v51, %v3658_v39 }
 0x62d   : > { %v3707_v3 = vmul.f32 %v5338_v41, %v3653_v44 }
 0x62f   : > { %3723 = vxpose.xlu0.b32.cont [7/16] (narrow) %v3707_v3, 8 }
 0x630   : > { %v4834_v13 = vpop.f32.mrf.mxu1 }
 0x631   : > { %v3668_v40 = vadd.f32 %v4834_v13, %v3911_v61 }
 0x632   : > { %v3662_v62 = vpop.f32.mrf.mxu1 }
 0x633   : > { %v3663_v25 = vadd.f32 %v3911_v61, %v3662_v62  ;;  %3724 = vxpose.xlu0.b32.cont [8/16] (narrow) %v3708_v14, 8  ;;  %v3710_v32 = vmul.f32 %v5399_v20, %v3668_v40 }
 0x635   : > { %v3709_v21 = vmul.f32 %v5369_v0, %v3663_v25 }
 0x637   : > { %3725 = vxpose.xlu0.b32.cont [9/16] (narrow) %v3709_v21, 8  ;;  %v4837_v24 = vpop.f32.mrf.mxu1 }
 0x638   : > { %v3678_v41 = vadd.f32 %v4837_v24, %v3911_v61 }
 0x639   : > { %v3672_v55 = vpop.f32.mrf.mxu1 }
 0x63a   : > { %v3673_v10 = vadd.f32 %v3911_v61, %v3672_v55  ;;  %v3712_v51 = vmul.f32 %v5426_v37, %v3678_v41 }
 0x63b   : > { %3726 = vxpose.xlu0.b32.cont [10/16] (narrow) %v3710_v32, 8 }
 0x63c   : > { %v3711_v8 = vmul.f32 %v5415_v33, %v3673_v10 }
 0x63f   : > { %3727 = vxpose.xlu0.b32.cont [11/16] (narrow) %v3711_v8, 8  ;;  %v4840_v22 = vpop.f32.mrf.mxu1 }
 0x640   : > { %v3688_v5 = vadd.f32 %v4840_v22, %v3911_v61 }
 0x641   : > { %v3682_v57 = vpop.f32.mrf.mxu1 }
 0x642   : > { %v3683_v1 = vadd.f32 %v3911_v61, %v3682_v57  ;;  %v3714_v20 = vmul.f32 %v5468_v6, %v3688_v5 }
 0x643   : > { %3728 = vxpose.xlu0.b32.cont [12/16] (narrow) %v3712_v51, 8 }
 0x644   : > { %v3713_v0 = vmul.f32 %v5451_v60, %v3683_v1 }
 0x647   : > { %3729 = vxpose.xlu0.b32.cont [13/16] (narrow) %v3713_v0, 8  ;;  %v4843_v56 = vpop.f32.mrf.mxu1 }
 0x648   : > { %v3698_v16 = vadd.f32 %v4843_v56, %v3911_v61 }
 0x649   : > { %v3692_v43 = vpop.f32.mrf.mxu1 }
 0x64a   : > { %v3693_v59 = vadd.f32 %v3911_v61, %v3692_v43  ;;  %v3716_v37 = vmul.f32 %v5498_v23, %v3698_v16 }
 0x64b   : > { %3730 = vxpose.xlu0.b32.cont [14/16] (narrow) %v3714_v20, 8 }
 0x64c   : > { %v3715_v33 = vmul.f32 %v5485_v18, %v3693_v59 }
 0x64f   : > { %3731 = vxpose.xlu0.b32.cont [15/16] (narrow) %v3715_v33, 8 }
 0x653   : > { %3732 = vxpose.xlu0.b32.end [16/16] (narrow) %v3716_v37, 8 }
 0x693   : > { %v3733_v60 = vpop.trf.xlu0 }
 0x694   : > { %3749 = vst [vmem:[%s505_s28] sm:$0xff] %v3733_v60 }
 0x695 PF: > { %s26_s20 = sadd.s32 1, %s5010_s20   ;;  %s7337_s18 = smov %s5006_s19 }
 0x696   : > { %p23_p10 = scmp.ge.s32.totalorder %s26_s20, 4   ;;  %s7338_s19 = smov %s7340_s0 }
 0x698   :  { %25 = sbr.rel (!%p23_p10) target bundleno = 17 (0x11), region = 95 }

</bundles_post_ra>
